<compile_context>
chip_gen: v7x
topology: tpu7x:2x2x1
jax: 0.10.0
libtpu: 0.0.40
codegen_flags: <defaults>
</compile_context>

<pallas_src>
import math
import numpy as np

import jax
import jax.numpy as jnp
from jax import lax
from jax.experimental import pallas as pl
from jax.experimental.pallas import tpu as pltpu


N_HEADS = 8  # MultiHeadAttentionLayer hardcodes n_heads=8

# Matmul operand dtype.  Flip to jnp.bfloat16 to feed the MXU its native operand type
# (2-4x matmul throughput on v5e/v6e/v7x; accumulation stays f32 via
# preferred_element_type, and the softmax / BatchNorm / disagreement-loss math is f32
# either way).  Left at f32 so the numerical check against the f32 reference is tight.
MXU_DTYPE = jnp.float32


def _gelu_tanh(x):
    # TODO(synk): PyTorch nn.GELU() default is the exact erf GELU; the tanh
    # approximation is used because erf lowering is not guaranteed in Mosaic.
    c = math.sqrt(2.0 / math.pi)
    return 0.5 * x * (1.0 + jnp.tanh(c * (x + 0.044715 * x * x * x)))


def _offdiag_sim_sum(t):
    """t: (G, N, d) -> scalar sum of off-diagonal cosine similarities over all G blocks.

    F.normalize(p=2, eps=1e-12) == t * rsqrt(max(sum(t^2), 1e-24)).  The diagonal of
    the similarity matrix is sum(tn*tn) per row, so the off-diagonal sum is
    total_sum - sum(tn*tn): no iota/where mask and exact even for all-zero rows."""
    ssq = jnp.sum(t * t, axis=-1, keepdims=True)
    tn = t * lax.rsqrt(jnp.maximum(ssq, 1e-24))
    sim = lax.dot_general(tn, tn, (((2,), (2,)), ((0,), (0,))),
                          preferred_element_type=jnp.float32)          # (G, N, N)
    return jnp.sum(sim) - jnp.sum(tn * tn)


# ------------------------------------------------------------------ fused layer kernel
def _make_fused_kernel(B, N, D, H, dk):
    G = B * H
    norm_factor = 1.0 / math.sqrt(dk)
    inv_count = 1.0 / (3.0 * H * B * N * N)

    dn_xw = (((2,), (1,)), ((0,), (0,)))   # (G,N,D) x (G,D,dk) -> (G,N,dk)
    dn_qk = (((2,), (2,)), ((0,), (0,)))   # (G,N,dk) x (G,N,dk) -> (G,N,N)   (q @ k^T)
    dn_av = (((2,), (1,)), ((0,), (0,)))   # (G,N,N) x (G,N,dk) -> (G,N,dk)
    dn_ho = (((2,), (1,)), ((0,), (0,)))   # (G,N,dk) x (G,dk,D) -> (G,N,D)

    def kernel(x_ref, wq_ref, wk_ref, wv_ref, wo_ref,
               g1_ref, b1_ref, w1_ref, bf1_ref, w2_ref, bf2_ref, g2_ref, b2_ref,
               out_ref, loss_ref):
        # ---- (G, N, D) / (G, ., .) operands built with leading-axis ops only (no
        #      lane/sublane relayouts): broadcast x per head, tile weights per batch.
        xg = jnp.concatenate(
            [jnp.broadcast_to(x_ref[b], (H, N, D)) for b in range(B)], axis=0)

        def tile_b(w):                                   # (H, a, c) -> (B*H, a, c)
            return jnp.concatenate([w] * B, axis=0)

        xg_m = xg.astype(MXU_DTYPE)
        wq = tile_b(wq_ref[...].astype(MXU_DTYPE))
        wk = tile_b(wk_ref[...].astype(MXU_DTYPE))
        wv = tile_b(wv_ref[...].astype(MXU_DTYPE))
        wo = tile_b(wo_ref[...].astype(MXU_DTYPE))

        # ---- attention: every dot is a leading-batch (G = B*H) 3-D dot_general ------
        q = lax.dot_general(xg_m, wq, dn_xw, preferred_element_type=jnp.float32)
        k = lax.dot_general(xg_m, wk, dn_xw, preferred_element_type=jnp.float32)
        v = lax.dot_general(xg_m, wv, dn_xw, preferred_element_type=jnp.float32)

        s = norm_factor * lax.dot_general(q.astype(MXU_DTYPE), k.astype(MXU_DTYPE),
                                          dn_qk, preferred_element_type=jnp.float32)
        s = s - jnp.max(s, axis=-1, keepdims=True)
        e = jnp.exp(s)
        attn = e * pl.reciprocal(jnp.sum(e, axis=-1, keepdims=True), approx=True)

        heads = lax.dot_general(attn.astype(MXU_DTYPE), v.astype(MXU_DTYPE),
                                dn_av, preferred_element_type=jnp.float32)  # (G,N,dk)

        # Output projection with NO heads-concat: batched (N,dk)@(dk,D) per (b,h),
        # then a leading-axis reduction over heads; residual fused into the same sum.
        proj = lax.dot_general(heads.astype(MXU_DTYPE), wo,
                               dn_ho, preferred_element_type=jnp.float32)   # (G,N,D)
        y = jnp.concatenate(
            [x_ref[b] + jnp.sum(proj[b * H:(b + 1) * H], axis=0) for b in range(B)],
            axis=0)                                                         # (B*N, D)

        # ---- disagreement regularization (f32 path), reduced to the final scalar ----
        lsum = (_offdiag_sim_sum(heads)
                + _offdiag_sim_sum(attn)
                + _offdiag_sim_sum(v))
        # Single (1,1) store per call (no grid), so an SMEM scalar output is not needed.
        loss_ref[...] = jnp.broadcast_to(lsum * inv_count, (1, 1))

        # ---- BatchNorm1d -> Linear -> GELU -> Linear (+SkipConnection) -> BatchNorm1d
        m1 = jnp.mean(y, axis=0, keepdims=True)
        v1 = jnp.mean((y - m1) ** 2, axis=0, keepdims=True)       # biased (training)
        h1 = (y - m1) * lax.rsqrt(v1 + 1e-5) * g1_ref[...] + b1_ref[...]

        t = jnp.dot(h1.astype(MXU_DTYPE), w1_ref[...].astype(MXU_DTYPE),
                    preferred_element_type=jnp.float32) + bf1_ref[...]
        t = _gelu_tanh(t)
        f = jnp.dot(t.astype(MXU_DTYPE), w2_ref[...].astype(MXU_DTYPE),
                    preferred_element_type=jnp.float32) + bf2_ref[...]
        z = h1 + f                                                 # SkipConnection

        m2 = jnp.mean(z, axis=0, keepdims=True)
        v2 = jnp.mean((z - m2) ** 2, axis=0, keepdims=True)
        out_ref[...] = (z - m2) * lax.rsqrt(v2 + 1e-5) * g2_ref[...] + b2_ref[...]

    return kernel


def multi_head_attention_layer(x, params):
    """Pallas forward of MultiHeadAttentionLayer (adj_mat / mask = None).

    Returns (output of shape (B, N, D), total_disagreement_loss scalar)."""
    B, N, D = x.shape
    H, _, dk = params["Wq"].shape
    F = params["W1"].shape[1]
    G = B * H

    flops = (6 * G * N * D * dk                 # Q, K, V projections
             + 4 * G * N * N * dk               # scores + attn @ V
             + 2 * G * N * dk * D               # output projection
             + 2 * G * N * N * (2 * dk + N)     # disagreement similarity matmuls
             + 4 * B * N * D * F)               # FFN
    transcendentals = G * N * N + B * N * F + 3 * G * N + 4 * D
    nbytes = 4 * (int(x.size) + sum(int(p.size) for p in params.values())
                  + B * N * D + 1)

    out2d, loss = pl.pallas_call(
        _make_fused_kernel(B, N, D, H, dk),
        out_shape=(jax.ShapeDtypeStruct((B * N, D), jnp.float32),
                   jax.ShapeDtypeStruct((1, 1), jnp.float32)),
        compiler_params=pltpu.CompilerParams(vmem_limit_bytes=32 * 1024 * 1024),
        cost_estimate=pl.CostEstimate(flops=int(flops),
                                      transcendentals=int(transcendentals),
                                      bytes_accessed=int(nbytes)),
    )(x,
      params["Wq"], params["Wk"], params["Wv"], params["Wo"],
      params["g1"].reshape(1, D), params["b1"].reshape(1, D),
      params["W1"], params["bf1"].reshape(1, F),
      params["W2"], params["bf2"].reshape(1, D),
      params["g2"].reshape(1, D), params["b2"].reshape(1, D))
    return out2d.reshape(B, N, D), loss[0, 0]


# ----------------------------------------------------------------------------- params
def init_params(key, embed_dim, ff_hidden, n_heads=N_HEADS):
    dk = embed_dim // n_heads

    def unif(k, shape, stdv):
        return jax.random.uniform(k, shape, jnp.float32, -stdv, stdv)

    ks = jax.random.split(key, 8)
    return dict(
        Wq=unif(ks[0], (n_heads, embed_dim, dk), 1.0 / math.sqrt(dk)),
        Wk=unif(ks[1], (n_heads, embed_dim, dk), 1.0 / math.sqrt(dk)),
        Wv=unif(ks[2], (n_heads, embed_dim, dk), 1.0 / math.sqrt(dk)),
        Wo=unif(ks[3], (n_heads, dk, embed_dim), 1.0 / math.sqrt(embed_dim)),
        g1=jnp.ones((embed_dim,), jnp.float32),
        b1=jnp.zeros((embed_dim,), jnp.float32),
        W1=unif(ks[4], (embed_dim, ff_hidden), 1.0 / math.sqrt(embed_dim)),
        bf1=unif(ks[5], (ff_hidden,), 1.0 / math.sqrt(embed_dim)),
        W2=unif(ks[6], (ff_hidden, embed_dim), 1.0 / math.sqrt(ff_hidden)),
        bf2=unif(ks[7], (embed_dim,), 1.0 / math.sqrt(ff_hidden)),
        g2=jnp.ones((embed_dim,), jnp.float32),
        b2=jnp.zeros((embed_dim,), jnp.float32),
    )


# --------------------------------------------------------------- pure-JAX reference
def ref_forward(x, params):
    B, N, D = x.shape
    H, _, dk = params["Wq"].shape
    xf = x.reshape(-1, D)
    Q = jnp.einsum("md,hdk->hmk", xf, params["Wq"]).reshape(H, B, N, dk)
    K = jnp.einsum("md,hdk->hmk", xf, params["Wk"]).reshape(H, B, N, dk)
    V = jnp.einsum("md,hdk->hmk", xf, params["Wv"]).reshape(H, B, N, dk)
    compat = (1.0 / math.sqrt(dk)) * jnp.einsum("hbqd,hbkd->hbqk", Q, K)
    attn = jax.nn.softmax(compat, axis=-1)
    heads = jnp.einsum("hbqk,hbkd->hbqd", attn, V)

    def dis(t):
        d = t.shape[-1]
        tf = t.reshape(H * B, N, d)
        tn = tf / jnp.maximum(jnp.linalg.norm(tf, axis=-1, keepdims=True), 1e-12)
        sim = jnp.einsum("xnd,xmd->xnm", tn, tn)
        sim = sim * (1.0 - jnp.eye(N))
        return jnp.mean(sim)

    loss = (dis(heads) + dis(attn) + dis(V)) / 3.0
    out = (heads.transpose(1, 2, 0, 3).reshape(B * N, H * dk)
           @ params["Wo"].reshape(H * dk, D)).reshape(B, N, D)
    y = out + x

    def bn(z, g, b):
        zf = z.reshape(-1, D)
        m = zf.mean(0)
        v = ((zf - m) ** 2).mean(0)
        return (((zf - m) / jnp.sqrt(v + 1e-5)) * g + b).reshape(B, N, D)

    h1 = bn(y, params["g1"], params["b1"])
    hf = h1.reshape(-1, D)
    ff = _gelu_tanh(hf @ params["W1"] + params["bf1"]) @ params["W2"] + params["bf2"]
    z = bn((hf + ff).reshape(B, N, D), params["g2"], params["b2"])
    return z, loss


# ------------------------------------------------------------------------------ main
if __name__ == "__main__":
    # n_heads is hardcoded to 8 inside MultiHeadAttentionLayer; D=128 / FF=512 keep
    # every kernel store lane-dense (last dim a multiple of 128).
    B, N, embed_dim, ff_hidden = 2, 8, 128, 512

    key = jax.random.PRNGKey(0)
    kx, kp = jax.random.split(key)
    x = jax.random.normal(kx, (B, N, embed_dim), jnp.float32)
    params = init_params(kp, embed_dim, ff_hidden)

    out, loss = multi_head_attention_layer(x, params)
    jax.block_until_ready((out, loss))

    ref_out, ref_loss = ref_forward(x, params)
    # 5e-3 tolerance: the kernel softmax uses the EUP approximate reciprocal
    # (pl.reciprocal(approx=True)); all other math is f32.
    np.testing.assert_allclose(np.asarray(out), np.asarray(ref_out), rtol=5e-3, atol=5e-3)
    np.testing.assert_allclose(np.asarray(loss), np.asarray(ref_loss), rtol=5e-3, atol=5e-3)

    print("KERNEL_OK")
</pallas_src>

<mosaic_0001>
module attributes {stable_mosaic.version = 11 : i64} {
  func.func @kernel(%arg0: memref<2x8x128xf32, #tpu.memory_space<vmem>>, %arg1: memref<8x128x16xf32, #tpu.memory_space<vmem>>, %arg2: memref<8x128x16xf32, #tpu.memory_space<vmem>>, %arg3: memref<8x128x16xf32, #tpu.memory_space<vmem>>, %arg4: memref<8x16x128xf32, #tpu.memory_space<vmem>>, %arg5: memref<1x128xf32, #tpu.memory_space<vmem>>, %arg6: memref<1x128xf32, #tpu.memory_space<vmem>>, %arg7: memref<128x512xf32, #tpu.memory_space<vmem>>, %arg8: memref<1x512xf32, #tpu.memory_space<vmem>>, %arg9: memref<512x128xf32, #tpu.memory_space<vmem>>, %arg10: memref<1x128xf32, #tpu.memory_space<vmem>>, %arg11: memref<1x128xf32, #tpu.memory_space<vmem>>, %arg12: memref<1x128xf32, #tpu.memory_space<vmem>>, %arg13: memref<16x128xf32, #tpu.memory_space<vmem>>, %arg14: memref<1x1xf32, #tpu.memory_space<vmem>>) attributes {dimension_semantics = [], scalar_prefetch = 0 : i64, scratch_operands = 0 : i64, tpu.core_type = #tpu.core_type<tc>} {
    %c0 = arith.constant 0 : index
    %c0_0 = arith.constant 0 : index
    %c0_1 = arith.constant 0 : index
    %0 = vector.load %arg0[%c0, %c0_0, %c0_1] : memref<2x8x128xf32, #tpu.memory_space<vmem>>, vector<1x8x128xf32>
    %1 = vector.shape_cast %0 : vector<1x8x128xf32> to vector<8x128xf32>
    %2 = vector.shape_cast %1 : vector<8x128xf32> to vector<1x8x128xf32>
    %3 = vector.broadcast %2 : vector<1x8x128xf32> to vector<8x8x128xf32>
    %c1 = arith.constant 1 : index
    %c0_2 = arith.constant 0 : index
    %c0_3 = arith.constant 0 : index
    %4 = vector.load %arg0[%c1, %c0_2, %c0_3] : memref<2x8x128xf32, #tpu.memory_space<vmem>>, vector<1x8x128xf32>
    %5 = vector.shape_cast %4 : vector<1x8x128xf32> to vector<8x128xf32>
    %6 = vector.shape_cast %5 : vector<8x128xf32> to vector<1x8x128xf32>
    %7 = vector.broadcast %6 : vector<1x8x128xf32> to vector<8x8x128xf32>
    %8 = tpu.concatenate %3, %7 in 0 : vector<8x8x128xf32>, vector<8x8x128xf32> -> vector<16x8x128xf32>
    %c0_4 = arith.constant 0 : index
    %c0_5 = arith.constant 0 : index
    %c0_6 = arith.constant 0 : index
    %9 = vector.load %arg1[%c0_4, %c0_5, %c0_6] : memref<8x128x16xf32, #tpu.memory_space<vmem>>, vector<8x128x16xf32>
    %10 = tpu.concatenate %9, %9 in 0 : vector<8x128x16xf32>, vector<8x128x16xf32> -> vector<16x128x16xf32>
    %c0_7 = arith.constant 0 : index
    %c0_8 = arith.constant 0 : index
    %c0_9 = arith.constant 0 : index
    %11 = vector.load %arg2[%c0_7, %c0_8, %c0_9] : memref<8x128x16xf32, #tpu.memory_space<vmem>>, vector<8x128x16xf32>
    %12 = tpu.concatenate %11, %11 in 0 : vector<8x128x16xf32>, vector<8x128x16xf32> -> vector<16x128x16xf32>
    %c0_10 = arith.constant 0 : index
    %c0_11 = arith.constant 0 : index
    %c0_12 = arith.constant 0 : index
    %13 = vector.load %arg3[%c0_10, %c0_11, %c0_12] : memref<8x128x16xf32, #tpu.memory_space<vmem>>, vector<8x128x16xf32>
    %14 = tpu.concatenate %13, %13 in 0 : vector<8x128x16xf32>, vector<8x128x16xf32> -> vector<16x128x16xf32>
    %c0_13 = arith.constant 0 : index
    %c0_14 = arith.constant 0 : index
    %c0_15 = arith.constant 0 : index
    %15 = vector.load %arg4[%c0_13, %c0_14, %c0_15] : memref<8x16x128xf32, #tpu.memory_space<vmem>>, vector<8x16x128xf32>
    %16 = tpu.concatenate %15, %15 in 0 : vector<8x16x128xf32>, vector<8x16x128xf32> -> vector<16x16x128xf32>
    %cst = arith.constant dense<0.000000e+00> : vector<16x8x16xf32>
    %17 = tpu.matmul %8, %10, %cst {dimension_numbers = #tpu.dot_dimension_numbers<[2], [1], [1], [2], [0, 0, 0, 1, 1, 2], [0], [0]>} : vector<16x8x128xf32>, vector<16x128x16xf32>, vector<16x8x16xf32> -> vector<16x8x16xf32>
    %cst_16 = arith.constant dense<0.000000e+00> : vector<16x8x16xf32>
    %18 = tpu.matmul %8, %12, %cst_16 {dimension_numbers = #tpu.dot_dimension_numbers<[2], [1], [1], [2], [0, 0, 0, 1, 1, 2], [0], [0]>} : vector<16x8x128xf32>, vector<16x128x16xf32>, vector<16x8x16xf32> -> vector<16x8x16xf32>
    %cst_17 = arith.constant dense<0.000000e+00> : vector<16x8x16xf32>
    %19 = tpu.matmul %8, %14, %cst_17 {dimension_numbers = #tpu.dot_dimension_numbers<[2], [1], [1], [2], [0, 0, 0, 1, 1, 2], [0], [0]>} : vector<16x8x128xf32>, vector<16x128x16xf32>, vector<16x8x16xf32> -> vector<16x8x16xf32>
    %cst_18 = arith.constant dense<0.000000e+00> : vector<16x8x8xf32>
    %20 = tpu.matmul %17, %18, %cst_18 {dimension_numbers = #tpu.dot_dimension_numbers<[2], [2], [1], [1], [0, 0, 0, 1, 1, 1], [0], [0]>} : vector<16x8x16xf32>, vector<16x8x16xf32>, vector<16x8x8xf32> -> vector<16x8x8xf32>
    %cst_19 = arith.constant 2.500000e-01 : f32
    %21 = vector.broadcast %cst_19 : f32 to vector<16x8x8xf32>
    %22 = arith.mulf %21, %20 : vector<16x8x8xf32>
    %cst_20 = arith.constant dense<0xFF800000> : vector<16x8xf32>
    %23 = vector.multi_reduction <maximumf>, %22, %cst_20 [2] : vector<16x8x8xf32> to vector<16x8xf32>
    %24 = vector.shape_cast %23 : vector<16x8xf32> to vector<16x8x1xf32>
    %25 = vector.broadcast %24 : vector<16x8x1xf32> to vector<16x8x8xf32>
    %26 = arith.subf %22, %25 : vector<16x8x8xf32>
    %27 = math.exp %26 : vector<16x8x8xf32>
    %cst_21 = arith.constant dense<0.000000e+00> : vector<16x8xf32>
    %28 = vector.multi_reduction <add>, %27, %cst_21 [2] : vector<16x8x8xf32> to vector<16x8xf32>
    %29 = vector.shape_cast %28 : vector<16x8xf32> to vector<16x8x1xf32>
    %30 = tpu.reciprocal %29 {approx = true} : vector<16x8x1xf32> -> vector<16x8x1xf32>
    %31 = vector.broadcast %30 : vector<16x8x1xf32> to vector<16x8x8xf32>
    %32 = arith.mulf %27, %31 : vector<16x8x8xf32>
    %cst_22 = arith.constant dense<0.000000e+00> : vector<16x8x16xf32>
    %33 = tpu.matmul %32, %19, %cst_22 {dimension_numbers = #tpu.dot_dimension_numbers<[2], [1], [1], [2], [0, 0, 0, 1, 1, 2], [0], [0]>} : vector<16x8x8xf32>, vector<16x8x16xf32>, vector<16x8x16xf32> -> vector<16x8x16xf32>
    %cst_23 = arith.constant dense<0.000000e+00> : vector<16x8x128xf32>
    %34 = tpu.matmul %33, %16, %cst_23 {dimension_numbers = #tpu.dot_dimension_numbers<[2], [1], [1], [2], [0, 0, 0, 1, 1, 2], [0], [0]>} : vector<16x8x16xf32>, vector<16x16x128xf32>, vector<16x8x128xf32> -> vector<16x8x128xf32>
    %c0_24 = arith.constant 0 : index
    %c0_25 = arith.constant 0 : index
    %c0_26 = arith.constant 0 : index
    %35 = vector.load %arg0[%c0_24, %c0_25, %c0_26] : memref<2x8x128xf32, #tpu.memory_space<vmem>>, vector<1x8x128xf32>
    %36 = vector.shape_cast %35 : vector<1x8x128xf32> to vector<8x128xf32>
    %37 = vector.extract_strided_slice %34 {offsets = [0, 0, 0], sizes = [8, 8, 128], strides = [1, 1, 1]} : vector<16x8x128xf32> to vector<8x8x128xf32>
    %cst_27 = arith.constant dense<0.000000e+00> : vector<8x128xf32>
    %38 = vector.multi_reduction <add>, %37, %cst_27 [0] : vector<8x8x128xf32> to vector<8x128xf32>
    %39 = arith.addf %36, %38 : vector<8x128xf32>
    %c1_28 = arith.constant 1 : index
    %c0_29 = arith.constant 0 : index
    %c0_30 = arith.constant 0 : index
    %40 = vector.load %arg0[%c1_28, %c0_29, %c0_30] : memref<2x8x128xf32, #tpu.memory_space<vmem>>, vector<1x8x128xf32>
    %41 = vector.shape_cast %40 : vector<1x8x128xf32> to vector<8x128xf32>
    %42 = vector.extract_strided_slice %34 {offsets = [8, 0, 0], sizes = [8, 8, 128], strides = [1, 1, 1]} : vector<16x8x128xf32> to vector<8x8x128xf32>
    %cst_31 = arith.constant dense<0.000000e+00> : vector<8x128xf32>
    %43 = vector.multi_reduction <add>, %42, %cst_31 [0] : vector<8x8x128xf32> to vector<8x128xf32>
    %44 = arith.addf %41, %43 : vector<8x128xf32>
    %45 = tpu.concatenate %39, %44 in 0 : vector<8x128xf32>, vector<8x128xf32> -> vector<16x128xf32>
    %46 = arith.mulf %33, %33 : vector<16x8x16xf32>
    %cst_32 = arith.constant dense<0.000000e+00> : vector<16x8xf32>
    %47 = vector.multi_reduction <add>, %46, %cst_32 [2] : vector<16x8x16xf32> to vector<16x8xf32>
    %48 = vector.shape_cast %47 : vector<16x8xf32> to vector<16x8x1xf32>
    %cst_33 = arith.constant 1.000000e-24 : f32
    %49 = vector.broadcast %cst_33 : f32 to vector<16x8x1xf32>
    %50 = arith.maximumf %48, %49 : vector<16x8x1xf32>
    %51 = math.rsqrt %50 : vector<16x8x1xf32>
    %52 = vector.broadcast %51 : vector<16x8x1xf32> to vector<16x8x16xf32>
    %53 = arith.mulf %33, %52 : vector<16x8x16xf32>
    %cst_34 = arith.constant dense<0.000000e+00> : vector<16x8x8xf32>
    %54 = tpu.matmul %53, %53, %cst_34 {dimension_numbers = #tpu.dot_dimension_numbers<[2], [2], [1], [1], [0, 0, 0, 1, 1, 1], [0], [0]>} : vector<16x8x16xf32>, vector<16x8x16xf32>, vector<16x8x8xf32> -> vector<16x8x8xf32>
    %55 = vector.shape_cast %54 : vector<16x8x8xf32> to vector<1x16x8x8xf32>
    %cst_35 = arith.constant dense<0.000000e+00> : vector<1xf32>
    %56 = vector.multi_reduction <add>, %55, %cst_35 [1, 2, 3] : vector<1x16x8x8xf32> to vector<1xf32>
    %57 = vector.shape_cast %56 : vector<1xf32> to vector<1x1x1x1xf32>
    %58 = vector.extract %57[0, 0, 0, 0] : f32 from vector<1x1x1x1xf32>
    %59 = arith.mulf %53, %53 : vector<16x8x16xf32>
    %60 = vector.shape_cast %59 : vector<16x8x16xf32> to vector<1x16x8x16xf32>
    %cst_36 = arith.constant dense<0.000000e+00> : vector<1xf32>
    %61 = vector.multi_reduction <add>, %60, %cst_36 [1, 2, 3] : vector<1x16x8x16xf32> to vector<1xf32>
    %62 = vector.shape_cast %61 : vector<1xf32> to vector<1x1x1x1xf32>
    %63 = vector.extract %62[0, 0, 0, 0] : f32 from vector<1x1x1x1xf32>
    %64 = arith.subf %58, %63 : f32
    %65 = arith.mulf %32, %32 : vector<16x8x8xf32>
    %cst_37 = arith.constant dense<0.000000e+00> : vector<16x8xf32>
    %66 = vector.multi_reduction <add>, %65, %cst_37 [2] : vector<16x8x8xf32> to vector<16x8xf32>
    %67 = vector.shape_cast %66 : vector<16x8xf32> to vector<16x8x1xf32>
    %cst_38 = arith.constant 1.000000e-24 : f32
    %68 = vector.broadcast %cst_38 : f32 to vector<16x8x1xf32>
    %69 = arith.maximumf %67, %68 : vector<16x8x1xf32>
    %70 = math.rsqrt %69 : vector<16x8x1xf32>
    %71 = vector.broadcast %70 : vector<16x8x1xf32> to vector<16x8x8xf32>
    %72 = arith.mulf %32, %71 : vector<16x8x8xf32>
    %cst_39 = arith.constant dense<0.000000e+00> : vector<16x8x8xf32>
    %73 = tpu.matmul %72, %72, %cst_39 {dimension_numbers = #tpu.dot_dimension_numbers<[2], [2], [1], [1], [0, 0, 0, 1, 1, 1], [0], [0]>} : vector<16x8x8xf32>, vector<16x8x8xf32>, vector<16x8x8xf32> -> vector<16x8x8xf32>
    %74 = vector.shape_cast %73 : vector<16x8x8xf32> to vector<1x16x8x8xf32>
    %cst_40 = arith.constant dense<0.000000e+00> : vector<1xf32>
    %75 = vector.multi_reduction <add>, %74, %cst_40 [1, 2, 3] : vector<1x16x8x8xf32> to vector<1xf32>
    %76 = vector.shape_cast %75 : vector<1xf32> to vector<1x1x1x1xf32>
    %77 = vector.extract %76[0, 0, 0, 0] : f32 from vector<1x1x1x1xf32>
    %78 = arith.mulf %72, %72 : vector<16x8x8xf32>
    %79 = vector.shape_cast %78 : vector<16x8x8xf32> to vector<1x16x8x8xf32>
    %cst_41 = arith.constant dense<0.000000e+00> : vector<1xf32>
    %80 = vector.multi_reduction <add>, %79, %cst_41 [1, 2, 3] : vector<1x16x8x8xf32> to vector<1xf32>
    %81 = vector.shape_cast %80 : vector<1xf32> to vector<1x1x1x1xf32>
    %82 = vector.extract %81[0, 0, 0, 0] : f32 from vector<1x1x1x1xf32>
    %83 = arith.subf %77, %82 : f32
    %84 = arith.addf %64, %83 : f32
    %85 = arith.mulf %19, %19 : vector<16x8x16xf32>
    %cst_42 = arith.constant dense<0.000000e+00> : vector<16x8xf32>
    %86 = vector.multi_reduction <add>, %85, %cst_42 [2] : vector<16x8x16xf32> to vector<16x8xf32>
    %87 = vector.shape_cast %86 : vector<16x8xf32> to vector<16x8x1xf32>
    %cst_43 = arith.constant 1.000000e-24 : f32
    %88 = vector.broadcast %cst_43 : f32 to vector<16x8x1xf32>
    %89 = arith.maximumf %87, %88 : vector<16x8x1xf32>
    %90 = math.rsqrt %89 : vector<16x8x1xf32>
    %91 = vector.broadcast %90 : vector<16x8x1xf32> to vector<16x8x16xf32>
    %92 = arith.mulf %19, %91 : vector<16x8x16xf32>
    %cst_44 = arith.constant dense<0.000000e+00> : vector<16x8x8xf32>
    %93 = tpu.matmul %92, %92, %cst_44 {dimension_numbers = #tpu.dot_dimension_numbers<[2], [2], [1], [1], [0, 0, 0, 1, 1, 1], [0], [0]>} : vector<16x8x16xf32>, vector<16x8x16xf32>, vector<16x8x8xf32> -> vector<16x8x8xf32>
    %94 = vector.shape_cast %93 : vector<16x8x8xf32> to vector<1x16x8x8xf32>
    %cst_45 = arith.constant dense<0.000000e+00> : vector<1xf32>
    %95 = vector.multi_reduction <add>, %94, %cst_45 [1, 2, 3] : vector<1x16x8x8xf32> to vector<1xf32>
    %96 = vector.shape_cast %95 : vector<1xf32> to vector<1x1x1x1xf32>
    %97 = vector.extract %96[0, 0, 0, 0] : f32 from vector<1x1x1x1xf32>
    %98 = arith.mulf %92, %92 : vector<16x8x16xf32>
    %99 = vector.shape_cast %98 : vector<16x8x16xf32> to vector<1x16x8x16xf32>
    %cst_46 = arith.constant dense<0.000000e+00> : vector<1xf32>
    %100 = vector.multi_reduction <add>, %99, %cst_46 [1, 2, 3] : vector<1x16x8x16xf32> to vector<1xf32>
    %101 = vector.shape_cast %100 : vector<1xf32> to vector<1x1x1x1xf32>
    %102 = vector.extract %101[0, 0, 0, 0] : f32 from vector<1x1x1x1xf32>
    %103 = arith.subf %97, %102 : f32
    %104 = arith.addf %84, %103 : f32
    %cst_47 = arith.constant 3.25520843E-4 : f32
    %105 = arith.mulf %104, %cst_47 : f32
    %106 = vector.broadcast %105 : f32 to vector<1x1xf32>
    %c0_48 = arith.constant 0 : index
    %c0_49 = arith.constant 0 : index
    %107 = vector.load %arg14[%c0_48, %c0_49] : memref<1x1xf32, #tpu.memory_space<vmem>>, vector<1x1xf32>
    tpu.vector_store %arg14[%c0_48, %c0_49], %106 {strides = array<i32>} : memref<1x1xf32, #tpu.memory_space<vmem>>, vector<1x1xf32>,
    %cst_50 = arith.constant dense<0.000000e+00> : vector<128xf32>
    %108 = vector.multi_reduction <add>, %45, %cst_50 [0] : vector<16x128xf32> to vector<128xf32>
    %109 = vector.shape_cast %108 : vector<128xf32> to vector<1x128xf32>
    %cst_51 = arith.constant 1.600000e+01 : f32
    %110 = vector.broadcast %cst_51 : f32 to vector<1x128xf32>
    %111 = arith.divf %109, %110 : vector<1x128xf32>
    %112 = vector.broadcast %111 : vector<1x128xf32> to vector<16x128xf32>
    %113 = arith.subf %45, %112 : vector<16x128xf32>
    %114 = arith.mulf %113, %113 : vector<16x128xf32>
    %cst_52 = arith.constant dense<0.000000e+00> : vector<128xf32>
    %115 = vector.multi_reduction <add>, %114, %cst_52 [0] : vector<16x128xf32> to vector<128xf32>
    %116 = vector.shape_cast %115 : vector<128xf32> to vector<1x128xf32>
    %cst_53 = arith.constant 1.600000e+01 : f32
    %117 = vector.broadcast %cst_53 : f32 to vector<1x128xf32>
    %118 = arith.divf %116, %117 : vector<1x128xf32>
    %119 = vector.broadcast %111 : vector<1x128xf32> to vector<16x128xf32>
    %120 = arith.subf %45, %119 : vector<16x128xf32>
    %cst_54 = arith.constant 9.99999974E-6 : f32
    %121 = vector.broadcast %cst_54 : f32 to vector<1x128xf32>
    %122 = arith.addf %118, %121 : vector<1x128xf32>
    %123 = math.rsqrt %122 : vector<1x128xf32>
    %124 = vector.broadcast %123 : vector<1x128xf32> to vector<16x128xf32>
    %125 = arith.mulf %120, %124 : vector<16x128xf32>
    %c0_55 = arith.constant 0 : index
    %c0_56 = arith.constant 0 : index
    %126 = vector.load %arg5[%c0_55, %c0_56] : memref<1x128xf32, #tpu.memory_space<vmem>>, vector<1x128xf32>
    %127 = vector.broadcast %126 : vector<1x128xf32> to vector<16x128xf32>
    %128 = arith.mulf %125, %127 : vector<16x128xf32>
    %c0_57 = arith.constant 0 : index
    %c0_58 = arith.constant 0 : index
    %129 = vector.load %arg6[%c0_57, %c0_58] : memref<1x128xf32, #tpu.memory_space<vmem>>, vector<1x128xf32>
    %130 = vector.broadcast %129 : vector<1x128xf32> to vector<16x128xf32>
    %131 = arith.addf %128, %130 : vector<16x128xf32>
    %c0_59 = arith.constant 0 : index
    %c0_60 = arith.constant 0 : index
    %132 = vector.load %arg7[%c0_59, %c0_60] : memref<128x512xf32, #tpu.memory_space<vmem>>, vector<128x512xf32>
    %cst_61 = arith.constant dense<0.000000e+00> : vector<16x512xf32>
    %133 = tpu.matmul %131, %132, %cst_61 {dimension_numbers = #tpu.dot_dimension_numbers<[1], [0], [0], [1], [0, 0, 1, 1], [], []>} : vector<16x128xf32>, vector<128x512xf32>, vector<16x512xf32> -> vector<16x512xf32>
    %c0_62 = arith.constant 0 : index
    %c0_63 = arith.constant 0 : index
    %134 = vector.load %arg8[%c0_62, %c0_63] : memref<1x512xf32, #tpu.memory_space<vmem>>, vector<1x512xf32>
    %135 = vector.broadcast %134 : vector<1x512xf32> to vector<16x512xf32>
    %136 = arith.addf %133, %135 : vector<16x512xf32>
    %cst_64 = arith.constant 5.000000e-01 : f32
    %137 = vector.broadcast %cst_64 : f32 to vector<16x512xf32>
    %138 = arith.mulf %137, %136 : vector<16x512xf32>
    %cst_65 = arith.constant 4.471500e-02 : f32
    %139 = vector.broadcast %cst_65 : f32 to vector<16x512xf32>
    %140 = arith.mulf %139, %136 : vector<16x512xf32>
    %141 = arith.mulf %140, %136 : vector<16x512xf32>
    %142 = arith.mulf %141, %136 : vector<16x512xf32>
    %143 = arith.addf %136, %142 : vector<16x512xf32>
    %cst_66 = arith.constant 0.797884583 : f32
    %144 = vector.broadcast %cst_66 : f32 to vector<16x512xf32>
    %145 = arith.mulf %144, %143 : vector<16x512xf32>
    %146 = math.tanh %145 : vector<16x512xf32>
    %cst_67 = arith.constant 1.000000e+00 : f32
    %147 = vector.broadcast %cst_67 : f32 to vector<16x512xf32>
    %148 = arith.addf %147, %146 : vector<16x512xf32>
    %149 = arith.mulf %138, %148 : vector<16x512xf32>
    %c0_68 = arith.constant 0 : index
    %c0_69 = arith.constant 0 : index
    %150 = vector.load %arg9[%c0_68, %c0_69] : memref<512x128xf32, #tpu.memory_space<vmem>>, vector<512x128xf32>
    %cst_70 = arith.constant dense<0.000000e+00> : vector<16x128xf32>
    %151 = tpu.matmul %149, %150, %cst_70 {dimension_numbers = #tpu.dot_dimension_numbers<[1], [0], [0], [1], [0, 0, 1, 1], [], []>} : vector<16x512xf32>, vector<512x128xf32>, vector<16x128xf32> -> vector<16x128xf32>
    %c0_71 = arith.constant 0 : index
    %c0_72 = arith.constant 0 : index
    %152 = vector.load %arg10[%c0_71, %c0_72] : memref<1x128xf32, #tpu.memory_space<vmem>>, vector<1x128xf32>
    %153 = vector.broadcast %152 : vector<1x128xf32> to vector<16x128xf32>
    %154 = arith.addf %151, %153 : vector<16x128xf32>
    %155 = arith.addf %131, %154 : vector<16x128xf32>
    %cst_73 = arith.constant dense<0.000000e+00> : vector<128xf32>
    %156 = vector.multi_reduction <add>, %155, %cst_73 [0] : vector<16x128xf32> to vector<128xf32>
    %157 = vector.shape_cast %156 : vector<128xf32> to vector<1x128xf32>
    %cst_74 = arith.constant 1.600000e+01 : f32
    %158 = vector.broadcast %cst_74 : f32 to vector<1x128xf32>
    %159 = arith.divf %157, %158 : vector<1x128xf32>
    %160 = vector.broadcast %159 : vector<1x128xf32> to vector<16x128xf32>
    %161 = arith.subf %155, %160 : vector<16x128xf32>
    %162 = arith.mulf %161, %161 : vector<16x128xf32>
    %cst_75 = arith.constant dense<0.000000e+00> : vector<128xf32>
    %163 = vector.multi_reduction <add>, %162, %cst_75 [0] : vector<16x128xf32> to vector<128xf32>
    %164 = vector.shape_cast %163 : vector<128xf32> to vector<1x128xf32>
    %cst_76 = arith.constant 1.600000e+01 : f32
    %165 = vector.broadcast %cst_76 : f32 to vector<1x128xf32>
    %166 = arith.divf %164, %165 : vector<1x128xf32>
    %167 = vector.broadcast %159 : vector<1x128xf32> to vector<16x128xf32>
    %168 = arith.subf %155, %167 : vector<16x128xf32>
    %cst_77 = arith.constant 9.99999974E-6 : f32
    %169 = vector.broadcast %cst_77 : f32 to vector<1x128xf32>
    %170 = arith.addf %166, %169 : vector<1x128xf32>
    %171 = math.rsqrt %170 : vector<1x128xf32>
    %172 = vector.broadcast %171 : vector<1x128xf32> to vector<16x128xf32>
    %173 = arith.mulf %168, %172 : vector<16x128xf32>
    %c0_78 = arith.constant 0 : index
    %c0_79 = arith.constant 0 : index
    %174 = vector.load %arg11[%c0_78, %c0_79] : memref<1x128xf32, #tpu.memory_space<vmem>>, vector<1x128xf32>
    %175 = vector.broadcast %174 : vector<1x128xf32> to vector<16x128xf32>
    %176 = arith.mulf %173, %175 : vector<16x128xf32>
    %c0_80 = arith.constant 0 : index
    %c0_81 = arith.constant 0 : index
    %177 = vector.load %arg12[%c0_80, %c0_81] : memref<1x128xf32, #tpu.memory_space<vmem>>, vector<1x128xf32>
    %178 = vector.broadcast %177 : vector<1x128xf32> to vector<16x128xf32>
    %179 = arith.addf %176, %178 : vector<16x128xf32>
    %c0_82 = arith.constant 0 : index
    %c0_83 = arith.constant 0 : index
    %180 = vector.load %arg13[%c0_82, %c0_83] : memref<16x128xf32, #tpu.memory_space<vmem>>, vector<16x128xf32>
    tpu.vector_store %arg13[%c0_82, %c0_83], %179 {strides = array<i32>} : memref<16x128xf32, #tpu.memory_space<vmem>>, vector<16x128xf32>,
    return
  }
}

</mosaic_0001>

<bundles_post_ra>
// kernel: tpu_custom_call.1
= control target key start
LH: loop header
LB: loop body
LE: loop exit
PB: predicated region body
PF: predicated region fallthrough
CT: control target
= control target key end

     0   :  { %20 = vsyncpa [#allocation3], 0  ;;  %v17401_v3 = vmov 0.0|0.0   ;;  %vm17402_vm0 = vmmov 0   ;;  %v21715_v11 = vmov 0.0   ;;  %s21700_s0 = inlined_call_operand.vmem [shape: f32[2,8,128], index: 0, kind: input, shape index: {}]   ;;  %s21701_s1 = inlined_call_operand.vmem [shape: f32[8,128,16], index: 1, kind: input, shape index: {}]   ;;  %s21702_s2 = inlined_call_operand.vmem [shape: f32[8,128,16], index: 2, kind: input, shape index: {}]   ;;  %s21703_s3 = inlined_call_operand.vmem [shape: f32[8,128,16], index: 3, kind: input, shape index: {}]   ;;  %s21704_s4 = inlined_call_operand.vmem [shape: f32[8,16,128], index: 4, kind: input, shape index: {}]   ;;  %s21705_s5 = inlined_call_operand.vmem [shape: f32[1,128], index: 5, kind: input, shape index: {}]   ;;  %s21706_s6 = inlined_call_operand.vmem [shape: f32[1,128], index: 6, kind: input, shape index: {}]   ;;  %s21707_s7 = inlined_call_operand.vmem [shape: f32[128,512], index: 7, kind: input, shape index: {}]   ;;  %s21708_s8 = inlined_call_operand.vmem [shape: f32[1,512], index: 8, kind: input, shape index: {}]   ;;  %s21709_s9 = inlined_call_operand.vmem [shape: f32[512,128], index: 9, kind: input, shape index: {}]   ;;  %s21710_s10 = inlined_call_operand.vmem [shape: f32[1,128], index: 10, kind: input, shape index: {}]   ;;  %s21711_s11 = inlined_call_operand.vmem [shape: f32[1,128], index: 11, kind: input, shape index: {}]   ;;  %s21712_s12 = inlined_call_operand.vmem [shape: f32[1,128], index: 12, kind: input, shape index: {}]   ;;  %s21713_s13 = inlined_call_operand.hbm [shape: f32[16,128], index: 13, kind: output, shape index: {0}]   ;;  %s21714_s14 = inlined_call_operand.hbm [shape: f32[1,1], index: 14, kind: output, shape index: {1}]  }
   0x1   :  { %v51_v0 = vld [vmem:[%s21701_s1] sm:$0xff]  ;;  %v52_v1 = vld [vmem:[%s21701_s1 + $0x8] sm:$0xff]  ;;  %15820 = vmatprep.subr.bf16.mxu0 %v17401_v3  ;;  %15844 = vmatprep.subr.bf16.mxu1 %v17401_v3  ;;  %v53_v6 = vld [vmem:[%s21701_s1 + $0x10] sm:$0xff] }
   0x2   :  { %v67_v2 = vld [vmem:[%s21701_s1 + $0x80] sm:$0xff]  ;;  %v17494_v4 = vpack.c.bf16 %v52_v1, %v51_v0  ;;  %v68_v5 = vld [vmem:[%s21701_s1 + $0x88] sm:$0xff]  ;;  %v54_v7 = vld [vmem:[%s21701_s1 + $0x18] sm:$0xff]  ;;  %13660 = vmatprep.mubr.msk.f32.mxu0 %vm17402_vm0, %v21715_v11  ;;  %13695 = vmatprep.mubr.msk.f32.mxu1 %vm17402_vm0, %v21715_v11 }
   0x3   :  { %v17505_v8 = vpack.c.bf16 %v68_v5, %v67_v2  ;;  %v69_v9 = vld [vmem:[%s21701_s1 + $0x90] sm:$0xff]  ;;  %v70_v10 = vld [vmem:[%s21701_s1 + $0x98] sm:$0xff]  ;;  %v17518_v12 = vpack.c.bf16 %v54_v7, %v53_v6  ;;  %v55_v14 = vld [vmem:[%s21701_s1 + $0x20] sm:$0xff] }
   0x4   :  { %15822 = vmatpush3.bf16.msra.mxu0 %v17494_v4  ;;  %v17522_v13 = vpack.c.bf16 %v70_v10, %v69_v9  ;;  %v56_v15 = vld [vmem:[%s21701_s1 + $0x28] sm:$0xff]  ;;  %v71_v16 = vld [vmem:[%s21701_s1 + $0xa0] sm:$0xff]  ;;  %v57_v20 = vld [vmem:[%s21701_s1 + $0x30] sm:$0xff] }
   0x5   :  { %15846 = vmatpush3.bf16.msra.mxu1 %v17505_v8  ;;  %15823 = vmatprep.subr.bf16.mxu0 %v17401_v3  ;;  %v72_v17 = vld [vmem:[%s21701_s1 + $0xa8] sm:$0xff]  ;;  %v17538_v18 = vpack.c.bf16 %v56_v15, %v55_v14  ;;  %v58_v21 = vld [vmem:[%s21701_s1 + $0x38] sm:$0xff]  ;;  %v73_v22 = vld [vmem:[%s21701_s1 + $0xb0] sm:$0xff] }
   0x6   :  { %15847 = vmatprep.subr.bf16.mxu1 %v17401_v3  ;;  %v17542_v19 = vpack.c.bf16 %v72_v17, %v71_v16  ;;  %v74_v23 = vld [vmem:[%s21701_s1 + $0xb8] sm:$0xff]  ;;  %v17558_v24 = vpack.c.bf16 %v58_v21, %v57_v20  ;;  %v59_v26 = vld [vmem:[%s21701_s1 + $0x40] sm:$0xff]  ;;  %v60_v27 = vld [vmem:[%s21701_s1 + $0x48] sm:$0xff] }
   0x7   :  { %v17562_v25 = vpack.c.bf16 %v74_v23, %v73_v22  ;;  %v75_v28 = vld [vmem:[%s21701_s1 + $0xc0] sm:$0xff]  ;;  %v76_v29 = vld [vmem:[%s21701_s1 + $0xc8] sm:$0xff]  ;;  %v17578_v30 = vpack.c.bf16 %v60_v27, %v59_v26  ;;  %v61_v32 = vld [vmem:[%s21701_s1 + $0x50] sm:$0xff] }
   0x8   :  { %15825 = vmatpush3.bf16.msra.mxu0 %v17518_v12  ;;  %v17582_v31 = vpack.c.bf16 %v76_v29, %v75_v28  ;;  %v62_v33 = vld [vmem:[%s21701_s1 + $0x58] sm:$0xff]  ;;  %v77_v34 = vld [vmem:[%s21701_s1 + $0xd0] sm:$0xff]  ;;  %v63_v38 = vld [vmem:[%s21701_s1 + $0x60] sm:$0xff] }
   0x9   :  { %15849 = vmatpush3.bf16.msra.mxu1 %v17522_v13  ;;  %15826 = vmatprep.subr.bf16.mxu0 %v17401_v3  ;;  %v78_v35 = vld [vmem:[%s21701_s1 + $0xd8] sm:$0xff]  ;;  %v17598_v36 = vpack.c.bf16 %v62_v33, %v61_v32  ;;  %v64_v39 = vld [vmem:[%s21701_s1 + $0x68] sm:$0xff]  ;;  %v79_v40 = vld [vmem:[%s21701_s1 + $0xe0] sm:$0xff] }
   0xa   :  { %15850 = vmatprep.subr.bf16.mxu1 %v17401_v3  ;;  %v17602_v37 = vpack.c.bf16 %v78_v35, %v77_v34  ;;  %v80_v41 = vld [vmem:[%s21701_s1 + $0xe8] sm:$0xff]  ;;  %v17618_v42 = vpack.c.bf16 %v64_v39, %v63_v38  ;;  %v65_v44 = vld [vmem:[%s21701_s1 + $0x70] sm:$0xff]  ;;  %v66_v45 = vld [vmem:[%s21701_s1 + $0x78] sm:$0xff] }
   0xb   :  { %v17622_v43 = vpack.c.bf16 %v80_v41, %v79_v40  ;;  %v81_v46 = vld [vmem:[%s21701_s1 + $0xf0] sm:$0xff]  ;;  %v82_v47 = vld [vmem:[%s21701_s1 + $0xf8] sm:$0xff]  ;;  %v17638_v48 = vpack.c.bf16 %v66_v45, %v65_v44  ;;  %v83_v50 = vld [vmem:[%s21701_s1 + $0x100] sm:$0xff] }
   0xc   :  { %15828 = vmatpush3.bf16.msra.mxu0 %v17538_v18  ;;  %v17642_v49 = vpack.c.bf16 %v82_v47, %v81_v46  ;;  %v84_v51 = vld [vmem:[%s21701_s1 + $0x108] sm:$0xff]  ;;  %v99_v52 = vld [vmem:[%s21701_s1 + $0x180] sm:$0xff]  ;;  %v85_v57 = vld [vmem:[%s21701_s1 + $0x110] sm:$0xff] }
   0xd   :  { %15852 = vmatpush3.bf16.msra.mxu1 %v17542_v19  ;;  %15829 = vmatprep.subr.bf16.mxu0 %v17401_v3  ;;  %v100_v53 = vld [vmem:[%s21701_s1 + $0x188] sm:$0xff]  ;;  %v17661_v54 = vld [vmem:[%s21700_s0] sm:$0xff]  ;;  %v17663_v55 = vpack.c.bf16 %v84_v51, %v83_v50  ;;  %v86_v58 = vld [vmem:[%s21701_s1 + $0x118] sm:$0xff] }
   0xe   :  { %15853 = vmatprep.subr.bf16.mxu1 %v17401_v3  ;;  %v17667_v56 = vpack.c.bf16 %v100_v53, %v99_v52  ;;  %v101_v59 = vld [vmem:[%s21701_s1 + $0x190] sm:$0xff]  ;;  %v102_v60 = vld [vmem:[%s21701_s1 + $0x198] sm:$0xff]  ;;  %v17685_v61 = vpack.c.bf16 %v86_v58, %v85_v57  ;;  %v87_v63 = vld [vmem:[%s21701_s1 + $0x120] sm:$0xff] }
   0xf   :  { %v17689_v62 = vpack.c.bf16 %v102_v60, %v101_v59  ;;  %v88_v0 = vld [vmem:[%s21701_s1 + $0x128] sm:$0xff]  ;;  %v103_v1 = vld [vmem:[%s21701_s1 + $0x1a0] sm:$0xff]  ;;  %v89_v7 = vld [vmem:[%s21701_s1 + $0x130] sm:$0xff] }
  0x10   :  { %15831 = vmatpush3.bf16.msra.mxu0 %v17558_v24  ;;  %v104_v2 = vld [vmem:[%s21701_s1 + $0x1a8] sm:$0xff]  ;;  %v17709_v5 = vpack.c.bf16 %v88_v0, %v87_v63  ;;  %v90_v9 = vld [vmem:[%s21701_s1 + $0x138] sm:$0xff]  ;;  %v105_v10 = vld [vmem:[%s21701_s1 + $0x1b0] sm:$0xff] }
  0x11   :  { %15855 = vmatpush3.bf16.msra.mxu1 %v17562_v25  ;;  %15832 = vmatprep.subr.bf16.mxu0 %v17401_v3  ;;  %v17713_v6 = vpack.c.bf16 %v104_v2, %v103_v1  ;;  %v106_v14 = vld [vmem:[%s21701_s1 + $0x1b8] sm:$0xff]  ;;  %v17729_v15 = vpack.c.bf16 %v90_v9, %v89_v7 }
  0x12   :  { %15856 = vmatprep.subr.bf16.mxu1 %v17401_v3 }
  0x14   :  { %15834 = vmatpush3.bf16.msra.mxu0 %v17578_v30 }
  0x15   :  { %15858 = vmatpush3.bf16.msra.mxu1 %v17582_v31  ;;  %15835 = vmatprep.subr.bf16.mxu0 %v17401_v3 }
  0x16   :  { %15859 = vmatprep.subr.bf16.mxu1 %v17401_v3 }
  0x18   :  { %15837 = vmatpush3.bf16.msra.mxu0 %v17598_v36 }
  0x19   :  { %15861 = vmatpush3.bf16.msra.mxu1 %v17602_v37  ;;  %15838 = vmatprep.subr.bf16.mxu0 %v17401_v3 }
  0x1a   :  { %15862 = vmatprep.subr.bf16.mxu1 %v17401_v3 }
  0x1c   :  { %15840 = vmatpush3.bf16.msra.mxu0 %v17618_v42 }
  0x1d   :  { %15864 = vmatpush3.bf16.msra.mxu1 %v17622_v43  ;;  %15841 = vmatprep.subr.bf16.mxu0 %v17401_v3 }
  0x1e   :  { %15865 = vmatprep.subr.bf16.mxu1 %v17401_v3 }
  0x20   :  { %15843 = vmatpush3.bf16.msra.mxu0 %v17638_v48 }
  0x21   :  { %15867 = vmatpush3.bf16.msra.mxu1 %v17642_v49  ;;  %15868 = vmatprep.subr.bf16.mxu0 %v17401_v3 }
  0x22   :  { %15892 = vmatprep.subr.bf16.mxu1 %v17401_v3 }
  0x23   :  { %13661 = vmatmul.mubr.f32.vlgmr.msra.gmra.mrb[0].mxu0 %v17661_v54 }
  0x24   :  { %13696 = vmatmul.mubr.f32.vlgmr.msra.gmra.mrb[0].mxu1 %v17661_v54  ;;  %15870 = vmatpush3.bf16.msra.mxu0 %v17663_v55 }
  0x25   :  { %15894 = vmatpush3.bf16.msra.mxu1 %v17667_v56  ;;  %15871 = vmatprep.subr.bf16.mxu0 %v17401_v3 }
  0x26   :  { %15895 = vmatprep.subr.bf16.mxu1 %v17401_v3  ;;  %13730 = vmatprep.mubr.msk.f32.mxu0 %vm17402_vm0, %v21715_v11 }
  0x27   :  { %13765 = vmatprep.mubr.msk.f32.mxu1 %vm17402_vm0, %v21715_v11 }
  0x28   :  { %15873 = vmatpush3.bf16.msra.mxu0 %v17685_v61 }
  0x29   :  { %15897 = vmatpush3.bf16.msra.mxu1 %v17689_v62  ;;  %15874 = vmatprep.subr.bf16.mxu0 %v17401_v3 }
  0x2a   :  { %15898 = vmatprep.subr.bf16.mxu1 %v17401_v3 }
  0x2c   :  { %15876 = vmatpush3.bf16.msra.mxu0 %v17709_v5 }
  0x2d   :  { %21 = vsyncpa [#allocation5], 0  ;;  %15900 = vmatpush3.bf16.msra.mxu1 %v17713_v6  ;;  %15877 = vmatprep.subr.bf16.mxu0 %v17401_v3  ;;  %v17733_v16 = vpack.c.bf16 %v106_v14, %v105_v10  ;;  %v91_v17 = vld [vmem:[%s21701_s1 + $0x140] sm:$0xff]  ;;  %v92_v20 = vld [vmem:[%s21701_s1 + $0x148] sm:$0xff]  ;;  %vm3811_vm1 = vcmask 130048   ;;  %vm5044_vm2 = vcmask 64512  }
  0x2e   :  { %15901 = vmatprep.subr.bf16.mxu1 %v17401_v3  ;;  %v107_v21 = vld [vmem:[%s21701_s1 + $0x1c0] sm:$0xff]  ;;  %v108_v22 = vld [vmem:[%s21701_s1 + $0x1c8] sm:$0xff]  ;;  %v17749_v23 = vpack.c.bf16 %v92_v20, %v91_v17  ;;  %v93_v27 = vld [vmem:[%s21701_s1 + $0x150] sm:$0xff]  ;;  %vm11708_vm3 = vcmask 0  }
  0x2f   :  { %v17753_v26 = vpack.c.bf16 %v108_v22, %v107_v21  ;;  %v94_v28 = vld [vmem:[%s21701_s1 + $0x158] sm:$0xff]  ;;  %v109_v29 = vld [vmem:[%s21701_s1 + $0x1d0] sm:$0xff]  ;;  %v95_v35 = vld [vmem:[%s21701_s1 + $0x160] sm:$0xff] }
  0x30   :  { %15879 = vmatpush3.bf16.msra.mxu0 %v17729_v15  ;;  %v110_v32 = vld [vmem:[%s21701_s1 + $0x1d8] sm:$0xff]  ;;  %v17769_v33 = vpack.c.bf16 %v94_v28, %v93_v27  ;;  %v96_v38 = vld [vmem:[%s21701_s1 + $0x168] sm:$0xff]  ;;  %v111_v39 = vld [vmem:[%s21701_s1 + $0x1e0] sm:$0xff] }
  0x31   :  { %15903 = vmatpush3.bf16.msra.mxu1 %v17733_v16  ;;  %15880 = vmatprep.subr.bf16.mxu0 %v17401_v3  ;;  %v17773_v34 = vpack.c.bf16 %v110_v32, %v109_v29  ;;  %v112_v40 = vld [vmem:[%s21701_s1 + $0x1e8] sm:$0xff]  ;;  %v17789_v41 = vpack.c.bf16 %v96_v38, %v95_v35  ;;  %v97_v45 = vld [vmem:[%s21701_s1 + $0x170] sm:$0xff]  ;;  %v98_v46 = vld [vmem:[%s21701_s1 + $0x178] sm:$0xff] }
  0x32   :  { %15904 = vmatprep.subr.bf16.mxu1 %v17401_v3  ;;  %v17793_v44 = vpack.c.bf16 %v112_v40, %v111_v39  ;;  %v113_v47 = vld [vmem:[%s21701_s1 + $0x1f0] sm:$0xff]  ;;  %v114_v50 = vld [vmem:[%s21701_s1 + $0x1f8] sm:$0xff]  ;;  %v17809_v51 = vpack.c.bf16 %v98_v46, %v97_v45  ;;  %v115_v53 = vld [vmem:[%s21701_s1 + $0x200] sm:$0xff] }
  0x33   :  { %v17813_v52 = vpack.c.bf16 %v114_v50, %v113_v47  ;;  %v116_v57 = vld [vmem:[%s21701_s1 + $0x208] sm:$0xff]  ;;  %v131_v58 = vld [vmem:[%s21701_s1 + $0x280] sm:$0xff]  ;;  %v117_v0 = vld [vmem:[%s21701_s1 + $0x210] sm:$0xff] }
  0x34   :  { %15882 = vmatpush3.bf16.msra.mxu0 %v17749_v23  ;;  %v132_v59 = vld [vmem:[%s21701_s1 + $0x288] sm:$0xff]  ;;  %v17829_v60 = vpack.c.bf16 %v116_v57, %v115_v53  ;;  %v118_v1 = vld [vmem:[%s21701_s1 + $0x218] sm:$0xff]  ;;  %v133_v2 = vld [vmem:[%s21701_s1 + $0x290] sm:$0xff] }
  0x35   :  { %15906 = vmatpush3.bf16.msra.mxu1 %v17753_v26  ;;  %15883 = vmatprep.subr.bf16.mxu0 %v17401_v3  ;;  %v17833_v63 = vpack.c.bf16 %v132_v59, %v131_v58  ;;  %v134_v7 = vld [vmem:[%s21701_s1 + $0x298] sm:$0xff]  ;;  %v17851_v9 = vpack.c.bf16 %v118_v1, %v117_v0  ;;  %v119_v14 = vld [vmem:[%s21701_s1 + $0x220] sm:$0xff]  ;;  %v120_v17 = vld [vmem:[%s21701_s1 + $0x228] sm:$0xff] }
  0x36   :  { %15907 = vmatprep.subr.bf16.mxu1 %v17401_v3  ;;  %v17855_v10 = vpack.c.bf16 %v134_v7, %v133_v2  ;;  %v135_v20 = vld [vmem:[%s21701_s1 + $0x2a0] sm:$0xff]  ;;  %v136_v21 = vld [vmem:[%s21701_s1 + $0x2a8] sm:$0xff]  ;;  %v17875_v22 = vpack.c.bf16 %v120_v17, %v119_v14  ;;  %v121_v28 = vld [vmem:[%s21701_s1 + $0x230] sm:$0xff] }
  0x37   :  { %v17879_v27 = vpack.c.bf16 %v136_v21, %v135_v20  ;;  %v122_v29 = vld [vmem:[%s21701_s1 + $0x238] sm:$0xff]  ;;  %v137_v32 = vld [vmem:[%s21701_s1 + $0x2b0] sm:$0xff]  ;;  %v123_v40 = vld [vmem:[%s21701_s1 + $0x240] sm:$0xff] }
  0x38   :  { %15885 = vmatpush3.bf16.msra.mxu0 %v17769_v33  ;;  %v138_v35 = vld [vmem:[%s21701_s1 + $0x2b8] sm:$0xff]  ;;  %v17895_v38 = vpack.c.bf16 %v122_v29, %v121_v28  ;;  %v124_v45 = vld [vmem:[%s21701_s1 + $0x248] sm:$0xff]  ;;  %v139_v46 = vld [vmem:[%s21701_s1 + $0x2c0] sm:$0xff] }
  0x39   :  { %15909 = vmatpush3.bf16.msra.mxu1 %v17773_v34  ;;  %15886 = vmatprep.subr.bf16.mxu0 %v17401_v3  ;;  %v17899_v39 = vpack.c.bf16 %v138_v35, %v137_v32  ;;  %v140_v47 = vld [vmem:[%s21701_s1 + $0x2c8] sm:$0xff]  ;;  %v17915_v50 = vpack.c.bf16 %v124_v45, %v123_v40  ;;  %v125_v57 = vld [vmem:[%s21701_s1 + $0x250] sm:$0xff]  ;;  %v126_v58 = vld [vmem:[%s21701_s1 + $0x258] sm:$0xff] }
  0x3a   :  { %15910 = vmatprep.subr.bf16.mxu1 %v17401_v3  ;;  %v17919_v53 = vpack.c.bf16 %v140_v47, %v139_v46  ;;  %v141_v59 = vld [vmem:[%s21701_s1 + $0x2d0] sm:$0xff]  ;;  %v142_v0 = vld [vmem:[%s21701_s1 + $0x2d8] sm:$0xff]  ;;  %v17935_v1 = vpack.c.bf16 %v126_v58, %v125_v57  ;;  %v127_v7 = vld [vmem:[%s21701_s1 + $0x260] sm:$0xff] }
  0x3b   :  { %v17939_v2 = vpack.c.bf16 %v142_v0, %v141_v59  ;;  %v128_v14 = vld [vmem:[%s21701_s1 + $0x268] sm:$0xff]  ;;  %v143_v17 = vld [vmem:[%s21701_s1 + $0x2e0] sm:$0xff]  ;;  %v129_v29 = vld [vmem:[%s21701_s1 + $0x270] sm:$0xff] }
  0x3c   :  { %15888 = vmatpush3.bf16.msra.mxu0 %v17789_v41  ;;  %v144_v20 = vld [vmem:[%s21701_s1 + $0x2e8] sm:$0xff]  ;;  %v17955_v21 = vpack.c.bf16 %v128_v14, %v127_v7  ;;  %v130_v32 = vld [vmem:[%s21701_s1 + $0x278] sm:$0xff]  ;;  %v145_v35 = vld [vmem:[%s21701_s1 + $0x2f0] sm:$0xff] }
  0x3d   :  { %15912 = vmatpush3.bf16.msra.mxu1 %v17793_v44  ;;  %15889 = vmatprep.subr.bf16.mxu0 %v17401_v3  ;;  %v17959_v28 = vpack.c.bf16 %v144_v20, %v143_v17  ;;  %v146_v40 = vld [vmem:[%s21701_s1 + $0x2f8] sm:$0xff]  ;;  %v17975_v45 = vpack.c.bf16 %v130_v32, %v129_v29  ;;  %v147_v47 = vld [vmem:[%s21701_s1 + $0x300] sm:$0xff]  ;;  %v148_v57 = vld [vmem:[%s21701_s1 + $0x308] sm:$0xff] }
  0x3e   :  { %15913 = vmatprep.subr.bf16.mxu1 %v17401_v3  ;;  %v17979_v46 = vpack.c.bf16 %v146_v40, %v145_v35  ;;  %v163_v58 = vld [vmem:[%s21701_s1 + $0x380] sm:$0xff]  ;;  %v164_v59 = vld [vmem:[%s21701_s1 + $0x388] sm:$0xff]  ;;  %v17995_v0 = vpack.c.bf16 %v148_v57, %v147_v47  ;;  %v149_v14 = vld [vmem:[%s21701_s1 + $0x310] sm:$0xff] }
  0x3f   :  { %v17999_v7 = vpack.c.bf16 %v164_v59, %v163_v58  ;;  %v150_v17 = vld [vmem:[%s21701_s1 + $0x318] sm:$0xff]  ;;  %v165_v20 = vld [vmem:[%s21701_s1 + $0x390] sm:$0xff]  ;;  %v151_v40 = vld [vmem:[%s21701_s1 + $0x320] sm:$0xff] }
  0x40   :  { %15891 = vmatpush3.bf16.msra.mxu0 %v17809_v51  ;;  %v166_v29 = vld [vmem:[%s21701_s1 + $0x398] sm:$0xff]  ;;  %v18017_v32 = vpack.c.bf16 %v150_v17, %v149_v14  ;;  %v152_v47 = vld [vmem:[%s21701_s1 + $0x328] sm:$0xff]  ;;  %v167_v57 = vld [vmem:[%s21701_s1 + $0x3a0] sm:$0xff] }
  0x41   :  { %15915 = vmatpush3.bf16.msra.mxu1 %v17813_v52  ;;  %15916 = vmatprep.subr.bf16.mxu0 %v17401_v3  ;;  %v18021_v35 = vpack.c.bf16 %v166_v29, %v165_v20  ;;  %v168_v58 = vld [vmem:[%s21701_s1 + $0x3a8] sm:$0xff]  ;;  %v18041_v59 = vpack.c.bf16 %v152_v47, %v151_v40  ;;  %v153_v17 = vld [vmem:[%s21701_s1 + $0x330] sm:$0xff]  ;;  %v154_v20 = vld [vmem:[%s21701_s1 + $0x338] sm:$0xff] }
  0x42   :  { %15940 = vmatprep.subr.bf16.mxu1 %v17401_v3  ;;  %v18045_v14 = vpack.c.bf16 %v168_v58, %v167_v57  ;;  %v169_v29 = vld [vmem:[%s21701_s1 + $0x3b0] sm:$0xff]  ;;  %v170_v40 = vld [vmem:[%s21701_s1 + $0x3b8] sm:$0xff]  ;;  %v18061_v47 = vpack.c.bf16 %v154_v20, %v153_v17  ;;  %v155_v58 = vld [vmem:[%s21701_s1 + $0x340] sm:$0xff] }
  0x43   :  { %13731 = vmatmul.mubr.f32.vlgmr.msra.gmra.mrb[2].mxu0 %v17661_v54  ;;  %21743 = vst [vmem:[#allocation8_spill] sm:$0xff] %v18041_v59  ;;  %v18065_v57 = vpack.c.bf16 %v170_v40, %v169_v29  ;;  %v171_v17 = vld [vmem:[%s21701_s1 + $0x3c0] sm:$0xff]  ;;  %v172_v20 = vld [vmem:[%s21701_s1 + $0x3c8] sm:$0xff] }
  0x44   :  { %13766 = vmatmul.mubr.f32.vlgmr.msra.gmra.mrb[2].mxu1 %v17661_v54  ;;  %15918 = vmatpush3.bf16.msra.mxu0 %v17829_v60  ;;  %21744 = vst [vmem:[#allocation9_spill] sm:$0xff] %v18045_v14  ;;  %21745 = vst [vmem:[#allocation10_spill] sm:$0xff] %v18061_v47  ;;  %v18085_v40 = vpack.c.bf16 %v172_v20, %v171_v17 }
  0x45   :  { %15942 = vmatpush3.bf16.msra.mxu1 %v17833_v63  ;;  %15919 = vmatprep.subr.bf16.mxu0 %v17401_v3  ;;  %21746 = vst [vmem:[#allocation11_spill] sm:$0xff] %v18065_v57 }
  0x46   :  { %15943 = vmatprep.subr.bf16.mxu1 %v17401_v3  ;;  %13800 = vmatprep.mubr.msk.f32.mxu0 %vm17402_vm0, %v21715_v11  ;;  %21748 = vst [vmem:[#allocation13_spill] sm:$0xff] %v18085_v40 }
  0x47   :  { %13835 = vmatprep.mubr.msk.f32.mxu1 %vm17402_vm0, %v21715_v11 }
  0x48   :  { %15921 = vmatpush3.bf16.msra.mxu0 %v17851_v9 }
  0x49   :  { %15945 = vmatpush3.bf16.msra.mxu1 %v17855_v10  ;;  %15922 = vmatprep.subr.bf16.mxu0 %v17401_v3 }
  0x4a   :  { %15946 = vmatprep.subr.bf16.mxu1 %v17401_v3 }
  0x4c   :  { %15924 = vmatpush3.bf16.msra.mxu0 %v17875_v22 }
  0x4d   :  { %15948 = vmatpush3.bf16.msra.mxu1 %v17879_v27  ;;  %15925 = vmatprep.subr.bf16.mxu0 %v17401_v3 }
  0x4e   :  { %15949 = vmatprep.subr.bf16.mxu1 %v17401_v3 }
  0x50   :  { %15927 = vmatpush3.bf16.msra.mxu0 %v17895_v38 }
  0x51   :  { %15951 = vmatpush3.bf16.msra.mxu1 %v17899_v39  ;;  %15928 = vmatprep.subr.bf16.mxu0 %v17401_v3 }
  0x52   :  { %15952 = vmatprep.subr.bf16.mxu1 %v17401_v3 }
  0x54   :  { %15930 = vmatpush3.bf16.msra.mxu0 %v17915_v50 }
  0x55   :  { %15954 = vmatpush3.bf16.msra.mxu1 %v17919_v53  ;;  %15931 = vmatprep.subr.bf16.mxu0 %v17401_v3 }
  0x56   :  { %15955 = vmatprep.subr.bf16.mxu1 %v17401_v3 }
  0x58   :  { %15933 = vmatpush3.bf16.msra.mxu0 %v17935_v1 }
  0x59   :  { %15957 = vmatpush3.bf16.msra.mxu1 %v17939_v2  ;;  %15934 = vmatprep.subr.bf16.mxu0 %v17401_v3 }
  0x5a   :  { %15958 = vmatprep.subr.bf16.mxu1 %v17401_v3 }
  0x5c   :  { %15936 = vmatpush3.bf16.msra.mxu0 %v17955_v21 }
  0x5d   :  { %15960 = vmatpush3.bf16.msra.mxu1 %v17959_v28  ;;  %15937 = vmatprep.subr.bf16.mxu0 %v17401_v3 }
  0x5e   :  { %15961 = vmatprep.subr.bf16.mxu1 %v17401_v3 }
  0x60   :  { %15939 = vmatpush3.bf16.msra.mxu0 %v17975_v45 }
  0x61   :  { %15963 = vmatpush3.bf16.msra.mxu1 %v17979_v46  ;;  %15964 = vmatprep.subr.bf16.mxu0 %v17401_v3 }
  0x62   :  { %15988 = vmatprep.subr.bf16.mxu1 %v17401_v3 }
  0x63   :  { %13801 = vmatmul.mubr.f32.vlgmr.msra.gmra.mrb[4].mxu0 %v17661_v54 }
  0x64   :  { %13836 = vmatmul.mubr.f32.vlgmr.msra.gmra.mrb[4].mxu1 %v17661_v54  ;;  %15966 = vmatpush3.bf16.msra.mxu0 %v17995_v0 }
  0x65   :  { %15990 = vmatpush3.bf16.msra.mxu1 %v17999_v7  ;;  %15967 = vmatprep.subr.bf16.mxu0 %v17401_v3 }
  0x66   :  { %15991 = vmatprep.subr.bf16.mxu1 %v17401_v3  ;;  %13870 = vmatprep.mubr.msk.f32.mxu0 %vm17402_vm0, %v21715_v11 }
  0x67   :  { %13905 = vmatprep.mubr.msk.f32.mxu1 %vm17402_vm0, %v21715_v11  ;;  %v156_v11 = vld [vmem:[%s21701_s1 + $0x348] sm:$0xff] }
  0x68   :  { %15969 = vmatpush3.bf16.msra.mxu0 %v18017_v32  ;;  %v18081_v29 = vpack.c.bf16 %v156_v11, %v155_v58  ;;  %v173_v11 = vld [vmem:[%s21701_s1 + $0x3d0] sm:$0xff]  ;;  %v174_v58 = vld [vmem:[%s21701_s1 + $0x3d8] sm:$0xff] }
  0x69   :  { %15993 = vmatpush3.bf16.msra.mxu1 %v18021_v35  ;;  %15970 = vmatprep.subr.bf16.mxu0 %v17401_v3  ;;  %v18105_v20 = vpack.c.bf16 %v174_v58, %v173_v11 }
  0x6a   :  { %15994 = vmatprep.subr.bf16.mxu1 %v17401_v3  ;;  %21747 = vst [vmem:[#allocation12_spill] sm:$0xff] %v18081_v29 }
  0x6c   :  { %15972 = vmatpush3.bf16.msra.mxu0 %v18041_v59  ;;  %v158_v59 = vld [vmem:[%s21701_s1 + $0x358] sm:$0xff] }
  0x6d   :  { %15996 = vmatpush3.bf16.msra.mxu1 %v18045_v14  ;;  %15973 = vmatprep.subr.bf16.mxu0 %v17401_v3  ;;  %v157_v14 = vld [vmem:[%s21701_s1 + $0x350] sm:$0xff] }
  0x6e   :  { %15997 = vmatprep.subr.bf16.mxu1 %v17401_v3  ;;  %v18101_v17 = vpack.c.bf16 %v158_v59, %v157_v14  ;;  %v175_v59 = vld [vmem:[%s21701_s1 + $0x3e0] sm:$0xff]  ;;  %v176_v14 = vld [vmem:[%s21701_s1 + $0x3e8] sm:$0xff] }
  0x6f   :  { %v18125_v58 = vpack.c.bf16 %v176_v14, %v175_v59 }
  0x70   :  { %15975 = vmatpush3.bf16.msra.mxu0 %v18061_v47  ;;  %v160_v47 = vld [vmem:[%s21701_s1 + $0x368] sm:$0xff] }
  0x71   :  { %15999 = vmatpush3.bf16.msra.mxu1 %v18065_v57  ;;  %15976 = vmatprep.subr.bf16.mxu0 %v17401_v3  ;;  %v159_v57 = vld [vmem:[%s21701_s1 + $0x360] sm:$0xff] }
  0x72   :  { %16000 = vmatprep.subr.bf16.mxu1 %v17401_v3  ;;  %v18121_v11 = vpack.c.bf16 %v160_v47, %v159_v57  ;;  %v177_v47 = vld [vmem:[%s21701_s1 + $0x3f0] sm:$0xff]  ;;  %v178_v57 = vld [vmem:[%s21701_s1 + $0x3f8] sm:$0xff] }
  0x73   :  { %v18145_v14 = vpack.c.bf16 %v178_v57, %v177_v47  ;;  %v193_v47 = vld [vmem:[%s21702_s2 + $0x70] sm:$0xff]  ;;  %v194_v57 = vld [vmem:[%s21702_s2 + $0x78] sm:$0xff] }
  0x74   :  { %15978 = vmatpush3.bf16.msra.mxu0 %v18081_v29  ;;  %v162_v29 = vld [vmem:[%s21701_s1 + $0x378] sm:$0xff] }
  0x75   :  { %16002 = vmatpush3.bf16.msra.mxu1 %v18085_v40  ;;  %15979 = vmatprep.subr.bf16.mxu0 %v17401_v3  ;;  %v161_v40 = vld [vmem:[%s21701_s1 + $0x370] sm:$0xff] }
  0x76   :  { %16003 = vmatprep.subr.bf16.mxu1 %v17401_v3  ;;  %v18141_v59 = vpack.c.bf16 %v162_v29, %v161_v40  ;;  %v21749_v29 = vmov 0.0  }
  0x78   :  { %15981 = vmatpush3.bf16.msra.mxu0 %v18101_v17 }
  0x79   :  { %16005 = vmatpush3.bf16.msra.mxu1 %v18105_v20  ;;  %15982 = vmatprep.subr.bf16.mxu0 %v17401_v3 }
  0x7a   :  { %16006 = vmatprep.subr.bf16.mxu1 %v17401_v3 }
  0x7c   :  { %15984 = vmatpush3.bf16.msra.mxu0 %v18121_v11 }
  0x7d   :  { %16008 = vmatpush3.bf16.msra.mxu1 %v18125_v58  ;;  %15985 = vmatprep.subr.bf16.mxu0 %v17401_v3 }
  0x7e   :  { %16009 = vmatprep.subr.bf16.mxu1 %v17401_v3 }
  0x80   :  { %15987 = vmatpush3.bf16.msra.mxu0 %v18141_v59 }
  0x81   :  { %16011 = vmatpush3.bf16.msra.mxu1 %v18145_v14  ;;  %16012 = vmatprep.subr.bf16.mxu0 %v17401_v3 }
  0x82   :  { %16036 = vmatprep.subr.bf16.mxu1 %v17401_v3 }
  0x83   :  { %13871 = vmatmul.mubr.f32.vlgmr.msra.gmra.mrb[6].mxu0 %v17661_v54 }
  0x84   :  { %13906 = vmatmul.mubr.f32.vlgmr.msra.gmra.mrb[6].mxu1 %v17661_v54  ;;  %16014 = vmatpush3.bf16.msra.mxu0 %v17494_v4  ;;  %v18190_v4 = vld [vmem:[%s21700_s0 + $0x8] sm:$0xff] }
  0x85   :  { %16038 = vmatpush3.bf16.msra.mxu1 %v17505_v8  ;;  %16015 = vmatprep.subr.bf16.mxu0 %v17401_v3  ;;  %v21750_v8 = vld [vmem:[#allocation8_spill] sm:$0xff] }
  0x86   :  { %16039 = vmatprep.subr.bf16.mxu1 %v17401_v3  ;;  %13940 = vmatprep.mubr.msk.f32.mxu0 %vm17402_vm0, %v21749_v29 }
  0x87   :  { %13975 = vmatprep.mubr.msk.f32.mxu1 %vm17402_vm0, %v21749_v29 }
  0x88   :  { %16017 = vmatpush3.bf16.msra.mxu0 %v17518_v12  ;;  %v21751_v12 = vld [vmem:[#allocation9_spill] sm:$0xff] }
  0x89   :  { %16041 = vmatpush3.bf16.msra.mxu1 %v17522_v13  ;;  %16018 = vmatprep.subr.bf16.mxu0 %v17401_v3  ;;  %v21752_v13 = vld [vmem:[#allocation10_spill] sm:$0xff] }
  0x8a   :  { %16042 = vmatprep.subr.bf16.mxu1 %v17401_v3 }
  0x8c   :  { %16020 = vmatpush3.bf16.msra.mxu0 %v17538_v18  ;;  %v21753_v18 = vld [vmem:[#allocation11_spill] sm:$0xff] }
  0x8d   :  { %16044 = vmatpush3.bf16.msra.mxu1 %v17542_v19  ;;  %16021 = vmatprep.subr.bf16.mxu0 %v17401_v3  ;;  %v21754_v19 = vld [vmem:[#allocation12_spill] sm:$0xff] }
  0x8e   :  { %16045 = vmatprep.subr.bf16.mxu1 %v17401_v3 }
  0x90   :  { %16023 = vmatpush3.bf16.msra.mxu0 %v17558_v24  ;;  %v21755_v24 = vld [vmem:[#allocation13_spill] sm:$0xff] }
  0x91   :  { %16047 = vmatpush3.bf16.msra.mxu1 %v17562_v25  ;;  %16024 = vmatprep.subr.bf16.mxu0 %v17401_v3 }
  0x92   :  { %16048 = vmatprep.subr.bf16.mxu1 %v17401_v3 }
  0x94   :  { %16026 = vmatpush3.bf16.msra.mxu0 %v17578_v30 }
  0x95   :  { %16050 = vmatpush3.bf16.msra.mxu1 %v17582_v31  ;;  %16027 = vmatprep.subr.bf16.mxu0 %v17401_v3 }
  0x96   :  { %16051 = vmatprep.subr.bf16.mxu1 %v17401_v3 }
  0x98   :  { %16029 = vmatpush3.bf16.msra.mxu0 %v17598_v36 }
  0x99   :  { %16053 = vmatpush3.bf16.msra.mxu1 %v17602_v37  ;;  %16030 = vmatprep.subr.bf16.mxu0 %v17401_v3  ;;  %v179_v37 = vld [vmem:[%s21702_s2] sm:$0xff] }
  0x9a   :  { %16054 = vmatprep.subr.bf16.mxu1 %v17401_v3 }
  0x9c   :  { %16032 = vmatpush3.bf16.msra.mxu0 %v17618_v42  ;;  %v180_v42 = vld [vmem:[%s21702_s2 + $0x8] sm:$0xff] }
  0x9d   :  { %16056 = vmatpush3.bf16.msra.mxu1 %v17622_v43  ;;  %16033 = vmatprep.subr.bf16.mxu0 %v17401_v3  ;;  %v195_v43 = vld [vmem:[%s21702_s2 + $0x80] sm:$0xff] }
  0x9e   :  { %16057 = vmatprep.subr.bf16.mxu1 %v17401_v3 }
  0xa0   :  { %16035 = vmatpush3.bf16.msra.mxu0 %v17638_v48  ;;  %v196_v48 = vld [vmem:[%s21702_s2 + $0x88] sm:$0xff] }
  0xa1   :  { %16059 = vmatpush3.bf16.msra.mxu1 %v17642_v49  ;;  %16060 = vmatprep.subr.bf16.mxu0 %v17401_v3  ;;  %v18322_v49 = vpack.c.bf16 %v180_v42, %v179_v37  ;;  %v213_v37 = vld [vmem:[%s21702_s2 + $0x110] sm:$0xff]  ;;  %v214_v42 = vld [vmem:[%s21702_s2 + $0x118] sm:$0xff] }
  0xa2   :  { %16084 = vmatprep.subr.bf16.mxu1 %v17401_v3 }
  0xa3   :  { %13941 = vmatmul.mubr.f32.vlgmr.msra.gmra.mrb[8].mxu0 %v18190_v4 }
  0xa4   :  { %13976 = vmatmul.mubr.f32.vlgmr.msra.gmra.mrb[8].mxu1 %v18190_v4  ;;  %16062 = vmatpush3.bf16.msra.mxu0 %v17663_v55  ;;  %v18326_v55 = vpack.c.bf16 %v196_v48, %v195_v43  ;;  %v229_v43 = vld [vmem:[%s21702_s2 + $0x190] sm:$0xff]  ;;  %v230_v48 = vld [vmem:[%s21702_s2 + $0x198] sm:$0xff] }
  0xa5   :  { %16086 = vmatpush3.bf16.msra.mxu1 %v17667_v56  ;;  %16063 = vmatprep.subr.bf16.mxu0 %v17401_v3  ;;  %v181_v56 = vld [vmem:[%s21702_s2 + $0x10] sm:$0xff] }
  0xa6   :  { %16087 = vmatprep.subr.bf16.mxu1 %v17401_v3  ;;  %14010 = vmatprep.mubr.msk.f32.mxu0 %vm17402_vm0, %v21749_v29 }
  0xa7   :  { %14045 = vmatprep.mubr.msk.f32.mxu1 %vm17402_vm0, %v21749_v29 }
  0xa8   :  { %16065 = vmatpush3.bf16.msra.mxu0 %v17685_v61  ;;  %v182_v61 = vld [vmem:[%s21702_s2 + $0x18] sm:$0xff] }
  0xa9   :  { %16089 = vmatpush3.bf16.msra.mxu1 %v17689_v62  ;;  %16066 = vmatprep.subr.bf16.mxu0 %v17401_v3  ;;  %v197_v62 = vld [vmem:[%s21702_s2 + $0x90] sm:$0xff] }
  0xaa   :  { %16090 = vmatprep.subr.bf16.mxu1 %v17401_v3 }
  0xac   :  { %16068 = vmatpush3.bf16.msra.mxu0 %v17709_v5  ;;  %v198_v5 = vld [vmem:[%s21702_s2 + $0x98] sm:$0xff] }
  0xad   :  { %16092 = vmatpush3.bf16.msra.mxu1 %v17713_v6  ;;  %16069 = vmatprep.subr.bf16.mxu0 %v17401_v3  ;;  %v18344_v6 = vpack.c.bf16 %v182_v61, %v181_v56  ;;  %v18514_v56 = vpack.c.bf16 %v214_v42, %v213_v37  ;;  %v18518_v61 = vpack.c.bf16 %v230_v48, %v229_v43  ;;  %v225_v42 = vld [vmem:[%s21702_s2 + $0x170] sm:$0xff]  ;;  %v226_v43 = vld [vmem:[%s21702_s2 + $0x178] sm:$0xff] }
  0xae   :  { %16093 = vmatprep.subr.bf16.mxu1 %v17401_v3  ;;  %v241_v48 = vld [vmem:[%s21702_s2 + $0x1f0] sm:$0xff] }
  0xb0   :  { %16071 = vmatpush3.bf16.msra.mxu0 %v17729_v15  ;;  %v18348_v15 = vpack.c.bf16 %v198_v5, %v197_v62  ;;  %v215_v62 = vld [vmem:[%s21702_s2 + $0x120] sm:$0xff]  ;;  %v216_v5 = vld [vmem:[%s21702_s2 + $0x128] sm:$0xff] }
  0xb1   :  { %16095 = vmatpush3.bf16.msra.mxu1 %v17733_v16  ;;  %16072 = vmatprep.subr.bf16.mxu0 %v17401_v3  ;;  %v183_v16 = vld [vmem:[%s21702_s2 + $0x20] sm:$0xff] }
  0xb2   :  { %16096 = vmatprep.subr.bf16.mxu1 %v17401_v3 }
  0xb4   :  { %16074 = vmatpush3.bf16.msra.mxu0 %v17749_v23  ;;  %v184_v23 = vld [vmem:[%s21702_s2 + $0x28] sm:$0xff] }
  0xb5   :  { %16098 = vmatpush3.bf16.msra.mxu1 %v17753_v26  ;;  %16075 = vmatprep.subr.bf16.mxu0 %v17401_v3  ;;  %v199_v26 = vld [vmem:[%s21702_s2 + $0xa0] sm:$0xff] }
  0xb6   :  { %16099 = vmatprep.subr.bf16.mxu1 %v17401_v3 }
  0xb8   :  { %16077 = vmatpush3.bf16.msra.mxu0 %v17769_v33  ;;  %v200_v33 = vld [vmem:[%s21702_s2 + $0xa8] sm:$0xff] }
  0xb9   :  { %16101 = vmatpush3.bf16.msra.mxu1 %v17773_v34  ;;  %16078 = vmatprep.subr.bf16.mxu0 %v17401_v3  ;;  %v18368_v34 = vpack.c.bf16 %v184_v23, %v183_v16  ;;  %v232_v16 = vld [vmem:[%s21702_s2 + $0x1a8] sm:$0xff]  ;;  %v18538_v23 = vpack.c.bf16 %v216_v5, %v215_v62  ;;  %v242_v62 = vld [vmem:[%s21702_s2 + $0x1f8] sm:$0xff]  ;;  %v18642_v5 = vpack.c.bf16 %v226_v43, %v225_v42  ;;  %v249_v42 = vld [vmem:[%s21702_s2 + $0x230] sm:$0xff] }
  0xba   :  { %16102 = vmatprep.subr.bf16.mxu1 %v17401_v3  ;;  %v250_v43 = vld [vmem:[%s21702_s2 + $0x238] sm:$0xff] }
  0xbc   :  { %16080 = vmatpush3.bf16.msra.mxu0 %v17789_v41  ;;  %v18372_v41 = vpack.c.bf16 %v200_v33, %v199_v26  ;;  %v217_v33 = vld [vmem:[%s21702_s2 + $0x130] sm:$0xff] }
  0xbd   :  { %16104 = vmatpush3.bf16.msra.mxu1 %v17793_v44  ;;  %16081 = vmatprep.subr.bf16.mxu0 %v17401_v3  ;;  %v185_v44 = vld [vmem:[%s21702_s2 + $0x30] sm:$0xff] }
  0xbe   :  { %16105 = vmatprep.subr.bf16.mxu1 %v17401_v3 }
  0xc0   :  { %16083 = vmatpush3.bf16.msra.mxu0 %v17809_v51  ;;  %v186_v51 = vld [vmem:[%s21702_s2 + $0x38] sm:$0xff] }
  0xc1   :  { %16107 = vmatpush3.bf16.msra.mxu1 %v17813_v52  ;;  %16108 = vmatprep.subr.bf16.mxu0 %v17401_v3  ;;  %v201_v52 = vld [vmem:[%s21702_s2 + $0xb0] sm:$0xff] }
  0xc2   :  { %16132 = vmatprep.subr.bf16.mxu1 %v17401_v3 }
  0xc3   :  { %14011 = vmatmul.mubr.f32.vlgmr.msra.gmra.mrb[10].mxu0 %v18190_v4 }
  0xc4   :  { %14046 = vmatmul.mubr.f32.vlgmr.msra.gmra.mrb[10].mxu1 %v18190_v4  ;;  %16110 = vmatpush3.bf16.msra.mxu0 %v17829_v60  ;;  %v202_v60 = vld [vmem:[%s21702_s2 + $0xb8] sm:$0xff] }
  0xc5   :  { %16134 = vmatpush3.bf16.msra.mxu1 %v17833_v63  ;;  %16111 = vmatprep.subr.bf16.mxu0 %v17401_v3  ;;  %v18388_v63 = vpack.c.bf16 %v186_v51, %v185_v44  ;;  %v218_v44 = vld [vmem:[%s21702_s2 + $0x138] sm:$0xff]  ;;  %v233_v51 = vld [vmem:[%s21702_s2 + $0x1b0] sm:$0xff] }
  0xc6   :  { %16135 = vmatprep.subr.bf16.mxu1 %v17401_v3  ;;  %14080 = vmatprep.mubr.msk.f32.mxu0 %vm17402_vm0, %v21749_v29 }
  0xc7   :  { %14115 = vmatprep.mubr.msk.f32.mxu1 %vm17402_vm0, %v21749_v29 }
  0xc8   :  { %16113 = vmatpush3.bf16.msra.mxu0 %v17851_v9  ;;  %v18392_v9 = vpack.c.bf16 %v202_v60, %v201_v52  ;;  %v234_v52 = vld [vmem:[%s21702_s2 + $0x1b8] sm:$0xff]  ;;  %v18558_v60 = vpack.c.bf16 %v218_v44, %v217_v33  ;;  %v244_v33 = vld [vmem:[%s21702_s2 + $0x208] sm:$0xff]  ;;  %v259_v44 = vld [vmem:[%s21702_s2 + $0x280] sm:$0xff] }
  0xc9   :  { %16137 = vmatpush3.bf16.msra.mxu1 %v17855_v10  ;;  %16114 = vmatprep.subr.bf16.mxu0 %v17401_v3  ;;  %v187_v10 = vld [vmem:[%s21702_s2 + $0x40] sm:$0xff] }
  0xca   :  { %16138 = vmatprep.subr.bf16.mxu1 %v17401_v3 }
  0xcc   :  { %16116 = vmatpush3.bf16.msra.mxu0 %v17875_v22  ;;  %v188_v22 = vld [vmem:[%s21702_s2 + $0x48] sm:$0xff] }
  0xcd   :  { %16140 = vmatpush3.bf16.msra.mxu1 %v17879_v27  ;;  %16117 = vmatprep.subr.bf16.mxu0 %v17401_v3  ;;  %v203_v27 = vld [vmem:[%s21702_s2 + $0xc0] sm:$0xff] }
  0xce   :  { %16141 = vmatprep.subr.bf16.mxu1 %v17401_v3 }
  0xd0   :  { %16119 = vmatpush3.bf16.msra.mxu0 %v17895_v38  ;;  %v204_v38 = vld [vmem:[%s21702_s2 + $0xc8] sm:$0xff] }
  0xd1   :  { %16143 = vmatpush3.bf16.msra.mxu1 %v17899_v39  ;;  %16120 = vmatprep.subr.bf16.mxu0 %v17401_v3  ;;  %v18408_v39 = vpack.c.bf16 %v188_v22, %v187_v10  ;;  %v18562_v10 = vpack.c.bf16 %v234_v52, %v233_v51  ;;  %v219_v22 = vld [vmem:[%s21702_s2 + $0x140] sm:$0xff]  ;;  %v260_v51 = vld [vmem:[%s21702_s2 + $0x288] sm:$0xff] }
  0xd2   :  { %16144 = vmatprep.subr.bf16.mxu1 %v17401_v3 }
  0xd4   :  { %16122 = vmatpush3.bf16.msra.mxu0 %v17915_v50  ;;  %v18412_v50 = vpack.c.bf16 %v204_v38, %v203_v27  ;;  %v220_v27 = vld [vmem:[%s21702_s2 + $0x148] sm:$0xff]  ;;  %v235_v38 = vld [vmem:[%s21702_s2 + $0x1c0] sm:$0xff] }
  0xd5   :  { %16146 = vmatpush3.bf16.msra.mxu1 %v17919_v53  ;;  %16123 = vmatprep.subr.bf16.mxu0 %v17401_v3  ;;  %v189_v53 = vld [vmem:[%s21702_s2 + $0x50] sm:$0xff] }
  0xd6   :  { %16147 = vmatprep.subr.bf16.mxu1 %v17401_v3 }
  0xd8   :  { %16125 = vmatpush3.bf16.msra.mxu0 %v17935_v1  ;;  %v190_v1 = vld [vmem:[%s21702_s2 + $0x58] sm:$0xff] }
  0xd9   :  { %16149 = vmatpush3.bf16.msra.mxu1 %v17939_v2  ;;  %16126 = vmatprep.subr.bf16.mxu0 %v17401_v3  ;;  %v205_v2 = vld [vmem:[%s21702_s2 + $0xd0] sm:$0xff] }
  0xda   :  { %16150 = vmatprep.subr.bf16.mxu1 %v17401_v3 }
  0xdc   :  { %16128 = vmatpush3.bf16.msra.mxu0 %v17955_v21  ;;  %v206_v21 = vld [vmem:[%s21702_s2 + $0xd8] sm:$0xff] }
  0xdd   :  { %16152 = vmatpush3.bf16.msra.mxu1 %v17959_v28  ;;  %16129 = vmatprep.subr.bf16.mxu0 %v17401_v3  ;;  %v18428_v28 = vpack.c.bf16 %v190_v1, %v189_v53  ;;  %v236_v53 = vld [vmem:[%s21702_s2 + $0x1c8] sm:$0xff]  ;;  %v18578_v1 = vpack.c.bf16 %v220_v27, %v219_v22  ;;  %v18666_v22 = vpack.c.bf16 %v260_v51, %v259_v44  ;;  %v245_v27 = vld [vmem:[%s21702_s2 + $0x210] sm:$0xff]  ;;  %v251_v44 = vld [vmem:[%s21702_s2 + $0x240] sm:$0xff] }
  0xde   :  { %16153 = vmatprep.subr.bf16.mxu1 %v17401_v3  ;;  %v252_v51 = vld [vmem:[%s21702_s2 + $0x248] sm:$0xff] }
  0xe0   :  { %16131 = vmatpush3.bf16.msra.mxu0 %v17975_v45  ;;  %v18432_v45 = vpack.c.bf16 %v206_v21, %v205_v2  ;;  %v18582_v2 = vpack.c.bf16 %v236_v53, %v235_v38  ;;  %v221_v21 = vld [vmem:[%s21702_s2 + $0x150] sm:$0xff]  ;;  %v246_v38 = vld [vmem:[%s21702_s2 + $0x218] sm:$0xff] }
  0xe1   :  { %16155 = vmatpush3.bf16.msra.mxu1 %v17979_v46  ;;  %16156 = vmatprep.subr.bf16.mxu0 %v17401_v3  ;;  %v191_v46 = vld [vmem:[%s21702_s2 + $0x60] sm:$0xff]  ;;  %v261_v53 = vld [vmem:[%s21702_s2 + $0x290] sm:$0xff] }
  0xe2   :  { %16180 = vmatprep.subr.bf16.mxu1 %v17401_v3 }
  0xe3   :  { %14081 = vmatmul.mubr.f32.vlgmr.msra.gmra.mrb[12].mxu0 %v18190_v4 }
  0xe4   :  { %14116 = vmatmul.mubr.f32.vlgmr.msra.gmra.mrb[12].mxu1 %v18190_v4  ;;  %16158 = vmatpush3.bf16.msra.mxu0 %v17995_v0  ;;  %v192_v0 = vld [vmem:[%s21702_s2 + $0x68] sm:$0xff] }
  0xe5   :  { %16182 = vmatpush3.bf16.msra.mxu1 %v17999_v7  ;;  %16159 = vmatprep.subr.bf16.mxu0 %v17401_v3 }
  0xe6   :  { %16183 = vmatprep.subr.bf16.mxu1 %v17401_v3  ;;  %14150 = vmatprep.mubr.msk.f32.mxu0 %vm17402_vm0, %v21749_v29 }
  0xe7   :  { %14185 = vmatprep.mubr.msk.f32.mxu1 %vm17402_vm0, %v21749_v29 }
  0xe8   :  { %16161 = vmatpush3.bf16.msra.mxu0 %v18017_v32  ;;  %v207_v32 = vld [vmem:[%s21702_s2 + $0xe0] sm:$0xff] }
  0xe9   :  { %16185 = vmatpush3.bf16.msra.mxu1 %v18021_v35  ;;  %16162 = vmatprep.subr.bf16.mxu0 %v17401_v3  ;;  %v208_v35 = vld [vmem:[%s21702_s2 + $0xe8] sm:$0xff] }
  0xea   :  { %16186 = vmatprep.subr.bf16.mxu1 %v17401_v3 }
  0xec   :  { %16164 = vmatpush3.bf16.msra.mxu0 %v21750_v8  ;;  %v18472_v8 = vpack.c.bf16 %v194_v57, %v193_v47  ;;  %v224_v47 = vld [vmem:[%s21702_s2 + $0x168] sm:$0xff] }
  0xed   :  { %16188 = vmatpush3.bf16.msra.mxu1 %v21751_v12  ;;  %16165 = vmatprep.subr.bf16.mxu0 %v17401_v3 }
  0xee   :  { %16189 = vmatprep.subr.bf16.mxu1 %v17401_v3 }
  0xf0   :  { %16167 = vmatpush3.bf16.msra.mxu0 %v21752_v13  ;;  %v211_v13 = vld [vmem:[%s21702_s2 + $0x100] sm:$0xff] }
  0xf1   :  { %16191 = vmatpush3.bf16.msra.mxu1 %v21753_v18  ;;  %16168 = vmatprep.subr.bf16.mxu0 %v17401_v3  ;;  %v212_v18 = vld [vmem:[%s21702_s2 + $0x108] sm:$0xff] }
  0xf2   :  { %16192 = vmatprep.subr.bf16.mxu1 %v17401_v3 }
  0xf4   :  { %16170 = vmatpush3.bf16.msra.mxu0 %v21754_v19  ;;  %v227_v19 = vld [vmem:[%s21702_s2 + $0x180] sm:$0xff] }
  0xf5   :  { %16194 = vmatpush3.bf16.msra.mxu1 %v21755_v24  ;;  %16171 = vmatprep.subr.bf16.mxu0 %v17401_v3  ;;  %v228_v24 = vld [vmem:[%s21702_s2 + $0x188] sm:$0xff] }
  0xf6   :  { %v18296_v25 = vpop.f32.mrb[0].mxu0  ;;  %16195 = vmatprep.subr.bf16.mxu1 %v17401_v3 }
  0xf7   :  { %21756 = vst [vmem:[#allocation8_spill] sm:$0xff] %v18296_v25  ;;  %v13662_v30 = vpop.f32.mrb[1].mxu0  ;;  %v18299_v31 = vpop.f32.mrb[0].mxu1  ;;  %v282_v25 = vld [vmem:[%s21702_s2 + $0x338] sm:$0xff] }
  0xf8   :  { %21757 = vst [vmem:[#allocation9_spill] sm:$0xff] %v18299_v31  ;;  %16173 = vmatpush3.bf16.msra.mxu0 %v18101_v17  ;;  %v13697_v36 = vpop.f32.mrb[1].mxu1  ;;  %v18492_v30 = vpack.c.bf16 %v212_v18, %v211_v13  ;;  %v281_v31 = vld [vmem:[%s21702_s2 + $0x330] sm:$0xff] }
  0xf9   :  { %16197 = vmatpush3.bf16.msra.mxu1 %v18105_v20  ;;  %16174 = vmatprep.subr.bf16.mxu0 %v17401_v3  ;;  %v18496_v36 = vpack.c.bf16 %v228_v24, %v227_v19 }
  0xfa   :  { %16198 = vmatprep.subr.bf16.mxu1 %v17401_v3 }
  0xfc   :  { %16176 = vmatpush3.bf16.msra.mxu0 %v18121_v11  ;;  %v18452_v11 = vpack.c.bf16 %v192_v0, %v191_v46  ;;  %v222_v46 = vld [vmem:[%s21702_s2 + $0x158] sm:$0xff]  ;;  %v237_v0 = vld [vmem:[%s21702_s2 + $0x1d0] sm:$0xff] }
  0xfd   :  { %16200 = vmatpush3.bf16.msra.mxu1 %v18125_v58  ;;  %16177 = vmatprep.subr.bf16.mxu0 %v17401_v3  ;;  %v18456_v58 = vpack.c.bf16 %v208_v35, %v207_v32  ;;  %v238_v32 = vld [vmem:[%s21702_s2 + $0x1d8] sm:$0xff]  ;;  %v18598_v35 = vpack.c.bf16 %v222_v46, %v221_v21  ;;  %v18684_v46 = vld [vmem:[%s21700_s0] sm:$0xff] }
  0xfe   :  { %16201 = vmatprep.subr.bf16.mxu1 %v17401_v3  ;;  %v262_v21 = vld [vmem:[%s21702_s2 + $0x298] sm:$0xff] }
 0x100   :  { %16179 = vmatpush3.bf16.msra.mxu0 %v18141_v59  ;;  %v209_v59 = vld [vmem:[%s21702_s2 + $0xf0] sm:$0xff] }
 0x101   :  { %16203 = vmatpush3.bf16.msra.mxu1 %v18145_v14  ;;  %16204 = vmatprep.subr.bf16.mxu0 %v17401_v3  ;;  %v210_v14 = vld [vmem:[%s21702_s2 + $0xf8] sm:$0xff] }
 0x102   :  { %16228 = vmatprep.subr.bf16.mxu1 %v17401_v3  ;;  %v18476_v12 = vpack.c.bf16 %v210_v14, %v209_v59  ;;  %v239_v59 = vld [vmem:[%s21702_s2 + $0x1e0] sm:$0xff]  ;;  %v240_v14 = vld [vmem:[%s21702_s2 + $0x1e8] sm:$0xff] }
 0x103   :  { %14151 = vmatmul.mubr.f32.vlgmr.msra.gmra.mrb[14].mxu0 %v18190_v4  ;;  %v18626_v37 = vpack.c.bf16 %v240_v14, %v239_v59  ;;  %v263_v59 = vld [vmem:[%s21702_s2 + $0x2a0] sm:$0xff]  ;;  %v264_v14 = vld [vmem:[%s21702_s2 + $0x2a8] sm:$0xff] }
 0x104   :  { %14186 = vmatmul.mubr.f32.vlgmr.msra.gmra.mrb[14].mxu1 %v18190_v4  ;;  %16206 = vmatpush3.bf16.msra.mxu0 %v18322_v49 }
 0x105   :  { %16230 = vmatpush3.bf16.msra.mxu1 %v18326_v55  ;;  %16207 = vmatprep.subr.bf16.mxu0 %v17401_v3 }
 0x106   :  { %16231 = vmatprep.subr.bf16.mxu1 %v17401_v3  ;;  %14220 = vmatprep.mubr.msk.f32.mxu0 %vm17402_vm0, %v21749_v29 }
 0x107   :  { %14255 = vmatprep.mubr.msk.f32.mxu1 %vm17402_vm0, %v21749_v29 }
 0x108   :  { %16209 = vmatpush3.bf16.msra.mxu0 %v18344_v6 }
 0x109   :  { %16233 = vmatpush3.bf16.msra.mxu1 %v18348_v15  ;;  %16210 = vmatprep.subr.bf16.mxu0 %v17401_v3 }
 0x10a   :  { %16234 = vmatprep.subr.bf16.mxu1 %v17401_v3 }
 0x10c   :  { %16212 = vmatpush3.bf16.msra.mxu0 %v18368_v34 }
 0x10d   :  { %16236 = vmatpush3.bf16.msra.mxu1 %v18372_v41  ;;  %16213 = vmatprep.subr.bf16.mxu0 %v17401_v3 }
 0x10e   :  { %16237 = vmatprep.subr.bf16.mxu1 %v17401_v3 }
 0x110   :  { %16215 = vmatpush3.bf16.msra.mxu0 %v18388_v63 }
 0x111   :  { %16239 = vmatpush3.bf16.msra.mxu1 %v18392_v9  ;;  %16216 = vmatprep.subr.bf16.mxu0 %v17401_v3 }
 0x112   :  { %16240 = vmatprep.subr.bf16.mxu1 %v17401_v3 }
 0x114   :  { %16218 = vmatpush3.bf16.msra.mxu0 %v18408_v39 }
 0x115   :  { %16242 = vmatpush3.bf16.msra.mxu1 %v18412_v50  ;;  %16219 = vmatprep.subr.bf16.mxu0 %v17401_v3 }
 0x116   :  { %v18440_v7 = vpop.f32.mrb[2].mxu0  ;;  %16243 = vmatprep.subr.bf16.mxu1 %v17401_v3 }
 0x117   :  { %21758 = vst [vmem:[#allocation10_spill] sm:$0xff] %v18440_v7  ;;  %v13732_v40 = vpop.f32.mrb[3].mxu0  ;;  %v18449_v17 = vpop.f32.mrb[2].mxu1  ;;  %v280_v7 = vld [vmem:[%s21702_s2 + $0x328] sm:$0xff] }
 0x118   :  { %21759 = vst [vmem:[#allocation11_spill] sm:$0xff] %v18449_v17  ;;  %16221 = vmatpush3.bf16.msra.mxu0 %v18428_v28  ;;  %v13767_v20 = vpop.f32.mrb[3].mxu1  ;;  %v18602_v40 = vpack.c.bf16 %v238_v32, %v237_v0  ;;  %v18689_v0 = vpack.c.bf16 %v246_v38, %v245_v27  ;;  %v18693_v32 = vpack.c.bf16 %v262_v21, %v261_v53  ;;  %v267_v27 = vld [vmem:[%s21702_s2 + $0x2c0] sm:$0xff]  ;;  %v268_v38 = vld [vmem:[%s21702_s2 + $0x2c8] sm:$0xff] }
 0x119   :  { %16245 = vmatpush3.bf16.msra.mxu1 %v18432_v45  ;;  %16222 = vmatprep.subr.bf16.mxu0 %v17401_v3  ;;  %v223_v20 = vld [vmem:[%s21702_s2 + $0x160] sm:$0xff]  ;;  %v18753_v53 = vpack.c.bf16 %v252_v51, %v251_v44  ;;  %v18757_v21 = vpack.c.bf16 %v268_v38, %v267_v27  ;;  %v272_v27 = vld [vmem:[%s21702_s2 + $0x2e8] sm:$0xff] }
 0x11a   :  { %16246 = vmatprep.subr.bf16.mxu1 %v17401_v3  ;;  %v18622_v24 = vpack.c.bf16 %v224_v47, %v223_v20  ;;  %v247_v20 = vld [vmem:[%s21702_s2 + $0x220] sm:$0xff]  ;;  %v248_v47 = vld [vmem:[%s21702_s2 + $0x228] sm:$0xff] }
 0x11b   :  { %v271_v51 = vld [vmem:[%s21702_s2 + $0x2e0] sm:$0xff] }
 0x11c   :  { %16224 = vmatpush3.bf16.msra.mxu0 %v18452_v11  ;;  %v279_v17 = vld [vmem:[%s21702_s2 + $0x320] sm:$0xff] }
 0x11d   :  { %16248 = vmatpush3.bf16.msra.mxu1 %v18456_v58  ;;  %16225 = vmatprep.subr.bf16.mxu0 %v17401_v3 }
 0x11e   :  { %16249 = vmatprep.subr.bf16.mxu1 %v17401_v3 }
 0x120   :  { %16227 = vmatpush3.bf16.msra.mxu0 %v18472_v8 }
 0x121   :  { %16251 = vmatpush3.bf16.msra.mxu1 %v18476_v12  ;;  %16252 = vmatprep.subr.bf16.mxu0 %v17401_v3 }
 0x122   :  { %16276 = vmatprep.subr.bf16.mxu1 %v17401_v3 }
 0x123   :  { %14221 = vmatmul.mubr.f32.vlgmr.msra.gmra.mrb[16].mxu0 %v17661_v54 }
 0x124   :  { %14256 = vmatmul.mubr.f32.vlgmr.msra.gmra.mrb[16].mxu1 %v17661_v54  ;;  %16254 = vmatpush3.bf16.msra.mxu0 %v18492_v30  ;;  %v231_v54 = vld [vmem:[%s21702_s2 + $0x1a0] sm:$0xff] }
 0x125   :  { %16278 = vmatpush3.bf16.msra.mxu1 %v18496_v36  ;;  %16255 = vmatprep.subr.bf16.mxu0 %v17401_v3  ;;  %v18542_v26 = vpack.c.bf16 %v232_v16, %v231_v54  ;;  %v18646_v54 = vpack.c.bf16 %v242_v62, %v241_v48  ;;  %v243_v16 = vld [vmem:[%s21702_s2 + $0x200] sm:$0xff]  ;;  %v265_v48 = vld [vmem:[%s21702_s2 + $0x2b0] sm:$0xff]  ;;  %v266_v62 = vld [vmem:[%s21702_s2 + $0x2b8] sm:$0xff] }
 0x126   :  { %16279 = vmatprep.subr.bf16.mxu1 %v17401_v3  ;;  %14290 = vmatprep.mubr.msk.f32.mxu0 %vm17402_vm0, %v21749_v29  ;;  %v18662_v52 = vpack.c.bf16 %v244_v33, %v243_v16  ;;  %v18733_v16 = vpack.c.bf16 %v250_v43, %v249_v42  ;;  %v18737_v33 = vpack.c.bf16 %v266_v62, %v265_v48  ;;  %v255_v48 = vld [vmem:[%s21702_s2 + $0x260] sm:$0xff]  ;;  %v256_v62 = vld [vmem:[%s21702_s2 + $0x268] sm:$0xff] }
 0x127   :  { %14325 = vmatprep.mubr.msk.f32.mxu1 %vm17402_vm0, %v21749_v29 }
 0x128   :  { %16257 = vmatpush3.bf16.msra.mxu0 %v18514_v56 }
 0x129   :  { %16281 = vmatpush3.bf16.msra.mxu1 %v18518_v61  ;;  %16258 = vmatprep.subr.bf16.mxu0 %v17401_v3 }
 0x12a   :  { %16282 = vmatprep.subr.bf16.mxu1 %v17401_v3 }
 0x12c   :  { %16260 = vmatpush3.bf16.msra.mxu0 %v18538_v23 }
 0x12d   :  { %16284 = vmatpush3.bf16.msra.mxu1 %v18542_v26  ;;  %16261 = vmatprep.subr.bf16.mxu0 %v17401_v3 }
 0x12e   :  { %16285 = vmatprep.subr.bf16.mxu1 %v17401_v3 }
 0x130   :  { %16263 = vmatpush3.bf16.msra.mxu0 %v18558_v60 }
 0x131   :  { %16287 = vmatpush3.bf16.msra.mxu1 %v18562_v10  ;;  %16264 = vmatprep.subr.bf16.mxu0 %v17401_v3 }
 0x132   :  { %16288 = vmatprep.subr.bf16.mxu1 %v17401_v3 }
 0x134   :  { %16266 = vmatpush3.bf16.msra.mxu0 %v18578_v1 }
 0x135   :  { %16290 = vmatpush3.bf16.msra.mxu1 %v18582_v2  ;;  %16267 = vmatprep.subr.bf16.mxu0 %v17401_v3 }
 0x136   :  { %v18610_v57 = vpop.f32.mrb[4].mxu0  ;;  %16291 = vmatprep.subr.bf16.mxu1 %v17401_v3 }
 0x137   :  { %21760 = vst [vmem:[#allocation12_spill] sm:$0xff] %v18610_v57  ;;  %v13802_v13 = vpop.f32.mrb[5].mxu0  ;;  %v18619_v18 = vpop.f32.mrb[4].mxu1  ;;  %v278_v57 = vld [vmem:[%s21702_s2 + $0x318] sm:$0xff] }
 0x138   :  { %21761 = vst [vmem:[#allocation13_spill] sm:$0xff] %v18619_v18  ;;  %16269 = vmatpush3.bf16.msra.mxu0 %v18598_v35  ;;  %v13837_v19 = vpop.f32.mrb[5].mxu1  ;;  %v18713_v13 = vpack.c.bf16 %v248_v47, %v247_v20  ;;  %v253_v20 = vld [vmem:[%s21702_s2 + $0x250] sm:$0xff]  ;;  %v254_v47 = vld [vmem:[%s21702_s2 + $0x258] sm:$0xff] }
 0x139   :  { %16293 = vmatpush3.bf16.msra.mxu1 %v18602_v40  ;;  %16270 = vmatprep.subr.bf16.mxu0 %v17401_v3  ;;  %v18717_v19 = vpack.c.bf16 %v264_v14, %v263_v59  ;;  %v269_v59 = vld [vmem:[%s21702_s2 + $0x2d0] sm:$0xff]  ;;  %v270_v14 = vld [vmem:[%s21702_s2 + $0x2d8] sm:$0xff]  ;;  %v18773_v42 = vpack.c.bf16 %v254_v47, %v253_v20 }
 0x13a   :  { %16294 = vmatprep.subr.bf16.mxu1 %v17401_v3  ;;  %v18777_v43 = vpack.c.bf16 %v270_v14, %v269_v59  ;;  %v18797_v59 = vpack.c.bf16 %v256_v62, %v255_v48  ;;  %v18801_v14 = vpack.c.bf16 %v272_v27, %v271_v51  ;;  %v273_v48 = vld [vmem:[%s21702_s2 + $0x2f0] sm:$0xff]  ;;  %v274_v62 = vld [vmem:[%s21702_s2 + $0x2f8] sm:$0xff] }
 0x13b   :  { %v18821_v27 = vpack.c.bf16 %v274_v62, %v273_v48  ;;  %v277_v18 = vld [vmem:[%s21702_s2 + $0x310] sm:$0xff] }
 0x13c   :  { %16272 = vmatpush3.bf16.msra.mxu0 %v18622_v24 }
 0x13d   :  { %16296 = vmatpush3.bf16.msra.mxu1 %v18626_v37  ;;  %16273 = vmatprep.subr.bf16.mxu0 %v17401_v3 }
 0x13e   :  { %16297 = vmatprep.subr.bf16.mxu1 %v17401_v3 }
 0x140   :  { %16275 = vmatpush3.bf16.msra.mxu0 %v18642_v5 }
 0x141   :  { %16299 = vmatpush3.bf16.msra.mxu1 %v18646_v54  ;;  %16300 = vmatprep.subr.bf16.mxu0 %v17401_v3 }
 0x142   :  { %16324 = vmatprep.subr.bf16.mxu1 %v17401_v3 }
 0x143   :  { %14291 = vmatmul.mubr.f32.vlgmr.msra.gmra.mrb[18].mxu0 %v18684_v46 }
 0x144   :  { %14326 = vmatmul.mubr.f32.vlgmr.msra.gmra.mrb[18].mxu1 %v18684_v46  ;;  %16302 = vmatpush3.bf16.msra.mxu0 %v18662_v52 }
 0x145   :  { %16326 = vmatpush3.bf16.msra.mxu1 %v18666_v22  ;;  %16303 = vmatprep.subr.bf16.mxu0 %v17401_v3 }
 0x146   :  { %16327 = vmatprep.subr.bf16.mxu1 %v17401_v3  ;;  %14360 = vmatprep.mubr.msk.f32.mxu0 %vm17402_vm0, %v21749_v29 }
 0x147   :  { %14395 = vmatprep.mubr.msk.f32.mxu1 %vm17402_vm0, %v21749_v29 }
 0x148   :  { %16305 = vmatpush3.bf16.msra.mxu0 %v18689_v0 }
 0x149   :  { %16329 = vmatpush3.bf16.msra.mxu1 %v18693_v32  ;;  %16306 = vmatprep.subr.bf16.mxu0 %v17401_v3 }
 0x14a   :  { %16330 = vmatprep.subr.bf16.mxu1 %v17401_v3 }
 0x14c   :  { %16308 = vmatpush3.bf16.msra.mxu0 %v18713_v13 }
 0x14d   :  { %16332 = vmatpush3.bf16.msra.mxu1 %v18717_v19  ;;  %16309 = vmatprep.subr.bf16.mxu0 %v17401_v3 }
 0x14e   :  { %16333 = vmatprep.subr.bf16.mxu1 %v17401_v3 }
 0x150   :  { %16311 = vmatpush3.bf16.msra.mxu0 %v18733_v16 }
 0x151   :  { %16335 = vmatpush3.bf16.msra.mxu1 %v18737_v33  ;;  %16312 = vmatprep.subr.bf16.mxu0 %v17401_v3 }
 0x152   :  { %16336 = vmatprep.subr.bf16.mxu1 %v17401_v3 }
 0x154   :  { %16314 = vmatpush3.bf16.msra.mxu0 %v18753_v53 }
 0x155   :  { %16338 = vmatpush3.bf16.msra.mxu1 %v18757_v21  ;;  %16315 = vmatprep.subr.bf16.mxu0 %v17401_v3 }
 0x156   :  { %v18785_v44 = vpop.f32.mrb[6].mxu0  ;;  %16339 = vmatprep.subr.bf16.mxu1 %v17401_v3 }
 0x157   :  { %21762 = vst [vmem:[#allocation14_spill] sm:$0xff] %v18785_v44  ;;  %v13872_v38 = vpop.f32.mrb[7].mxu0  ;;  %v18794_v20 = vpop.f32.mrb[6].mxu1  ;;  %v257_v44 = vld [vmem:[%s21702_s2 + $0x270] sm:$0xff] }
 0x158   :  { %21763 = vst [vmem:[#allocation15_spill] sm:$0xff] %v18794_v20  ;;  %16317 = vmatpush3.bf16.msra.mxu0 %v18773_v42  ;;  %v13907_v47 = vpop.f32.mrb[7].mxu1  ;;  %v258_v38 = vld [vmem:[%s21702_s2 + $0x278] sm:$0xff]  ;;  %v276_v20 = vld [vmem:[%s21702_s2 + $0x308] sm:$0xff] }
 0x159   :  { %16341 = vmatpush3.bf16.msra.mxu1 %v18777_v43  ;;  %16318 = vmatprep.subr.bf16.mxu0 %v17401_v3  ;;  %v18817_v51 = vpack.c.bf16 %v258_v38, %v257_v44  ;;  %v275_v47 = vld [vmem:[%s21702_s2 + $0x300] sm:$0xff]  ;;  %v292_v38 = vld [vmem:[%s21702_s2 + $0x388] sm:$0xff] }
 0x15a   :  { %16342 = vmatprep.subr.bf16.mxu1 %v17401_v3  ;;  %v291_v44 = vld [vmem:[%s21702_s2 + $0x380] sm:$0xff]  ;;  %v18837_v48 = vpack.c.bf16 %v276_v20, %v275_v47  ;;  %v293_v20 = vld [vmem:[%s21702_s2 + $0x390] sm:$0xff]  ;;  %v294_v47 = vld [vmem:[%s21702_s2 + $0x398] sm:$0xff] }
 0x15b   :  { %v18841_v62 = vpack.c.bf16 %v292_v38, %v291_v44  ;;  %v18859_v44 = vpack.c.bf16 %v278_v57, %v277_v18  ;;  %v18863_v38 = vpack.c.bf16 %v294_v47, %v293_v20  ;;  %v295_v57 = vld [vmem:[%s21702_s2 + $0x3a0] sm:$0xff]  ;;  %v296_v18 = vld [vmem:[%s21702_s2 + $0x3a8] sm:$0xff]  ;;  %v18883_v20 = vpack.c.bf16 %v280_v7, %v279_v17  ;;  %v297_v7 = vld [vmem:[%s21702_s2 + $0x3b0] sm:$0xff] }
 0x15c   :  { %16320 = vmatpush3.bf16.msra.mxu0 %v18797_v59  ;;  %21764 = vst [vmem:[#allocation16_spill] sm:$0xff] %v18837_v48  ;;  %v18887_v47 = vpack.c.bf16 %v296_v18, %v295_v57  ;;  %v298_v17 = vld [vmem:[%s21702_s2 + $0x3b8] sm:$0xff]  ;;  %v18903_v57 = vpack.c.bf16 %v282_v25, %v281_v31  ;;  %v299_v25 = vld [vmem:[%s21702_s2 + $0x3c0] sm:$0xff]  ;;  %v300_v31 = vld [vmem:[%s21702_s2 + $0x3c8] sm:$0xff] }
 0x15d   :  { %16344 = vmatpush3.bf16.msra.mxu1 %v18801_v14  ;;  %16321 = vmatprep.subr.bf16.mxu0 %v17401_v3  ;;  %21765 = vst [vmem:[#allocation17_spill] sm:$0xff] %v18841_v62  ;;  %21766 = vst [vmem:[#allocation18_spill] sm:$0xff] %v18859_v44  ;;  %v18907_v18 = vpack.c.bf16 %v298_v17, %v297_v7  ;;  %v18927_v17 = vpack.c.bf16 %v300_v31, %v299_v25 }
 0x15e   :  { %16345 = vmatprep.subr.bf16.mxu1 %v17401_v3  ;;  %21767 = vst [vmem:[#allocation19_spill] sm:$0xff] %v18863_v38  ;;  %21768 = vst [vmem:[#allocation20_spill] sm:$0xff] %v18883_v20 }
 0x15f   :  { %21769 = vst [vmem:[#allocation21_spill] sm:$0xff] %v18887_v47  ;;  %21770 = vst [vmem:[#allocation22_spill] sm:$0xff] %v18903_v57 }
 0x160   :  { %16323 = vmatpush3.bf16.msra.mxu0 %v18817_v51  ;;  %21771 = vst [vmem:[#allocation23_spill] sm:$0xff] %v18907_v18  ;;  %21773 = vst [vmem:[#allocation25_spill] sm:$0xff] %v18927_v17 }
 0x161   :  { %16347 = vmatpush3.bf16.msra.mxu1 %v18821_v27  ;;  %16348 = vmatprep.subr.bf16.mxu0 %v17401_v3 }
 0x162   :  { %16372 = vmatprep.subr.bf16.mxu1 %v17401_v3 }
 0x163   :  { %14361 = vmatmul.mubr.f32.vlgmr.msra.gmra.mrb[20].mxu0 %v18684_v46 }
 0x164   :  { %14396 = vmatmul.mubr.f32.vlgmr.msra.gmra.mrb[20].mxu1 %v18684_v46  ;;  %16350 = vmatpush3.bf16.msra.mxu0 %v18837_v48  ;;  %v289_v48 = vld [vmem:[%s21702_s2 + $0x370] sm:$0xff] }
 0x165   :  { %16374 = vmatpush3.bf16.msra.mxu1 %v18841_v62  ;;  %16351 = vmatprep.subr.bf16.mxu0 %v17401_v3 }
 0x166   :  { %16375 = vmatprep.subr.bf16.mxu1 %v17401_v3  ;;  %14430 = vmatprep.mubr.msk.f32.mxu0 %vm17402_vm0, %v21749_v29 }
 0x167   :  { %14465 = vmatprep.mubr.msk.f32.mxu1 %vm17402_vm0, %v21749_v29 }
 0x168   :  { %16353 = vmatpush3.bf16.msra.mxu0 %v18859_v44  ;;  %v284_v44 = vld [vmem:[%s21702_s2 + $0x348] sm:$0xff] }
 0x169   :  { %16377 = vmatpush3.bf16.msra.mxu1 %v18863_v38  ;;  %16354 = vmatprep.subr.bf16.mxu0 %v17401_v3  ;;  %v283_v38 = vld [vmem:[%s21702_s2 + $0x340] sm:$0xff] }
 0x16a   :  { %16378 = vmatprep.subr.bf16.mxu1 %v17401_v3  ;;  %v18923_v7 = vpack.c.bf16 %v284_v44, %v283_v38  ;;  %v301_v44 = vld [vmem:[%s21702_s2 + $0x3d0] sm:$0xff]  ;;  %v302_v38 = vld [vmem:[%s21702_s2 + $0x3d8] sm:$0xff] }
 0x16b   :  { %v18947_v31 = vpack.c.bf16 %v302_v38, %v301_v44 }
 0x16c   :  { %16356 = vmatpush3.bf16.msra.mxu0 %v18883_v20  ;;  %21772 = vst [vmem:[#allocation24_spill] sm:$0xff] %v18923_v7  ;;  %v286_v20 = vld [vmem:[%s21702_s2 + $0x358] sm:$0xff] }
 0x16d   :  { %16380 = vmatpush3.bf16.msra.mxu1 %v18887_v47  ;;  %16357 = vmatprep.subr.bf16.mxu0 %v17401_v3  ;;  %v285_v47 = vld [vmem:[%s21702_s2 + $0x350] sm:$0xff] }
 0x16e   :  { %16381 = vmatprep.subr.bf16.mxu1 %v17401_v3  ;;  %v18943_v25 = vpack.c.bf16 %v286_v20, %v285_v47  ;;  %v303_v20 = vld [vmem:[%s21702_s2 + $0x3e0] sm:$0xff]  ;;  %v304_v47 = vld [vmem:[%s21702_s2 + $0x3e8] sm:$0xff] }
 0x170   :  { %16359 = vmatpush3.bf16.msra.mxu0 %v18903_v57  ;;  %v288_v57 = vld [vmem:[%s21702_s2 + $0x368] sm:$0xff] }
 0x171   :  { %16383 = vmatpush3.bf16.msra.mxu1 %v18907_v18  ;;  %16360 = vmatprep.subr.bf16.mxu0 %v17401_v3  ;;  %v287_v18 = vld [vmem:[%s21702_s2 + $0x360] sm:$0xff] }
 0x172   :  { %16384 = vmatprep.subr.bf16.mxu1 %v17401_v3 }
 0x174   :  { %16362 = vmatpush3.bf16.msra.mxu0 %v18923_v7  ;;  %v18967_v7 = vpack.c.bf16 %v288_v57, %v287_v18  ;;  %v305_v57 = vld [vmem:[%s21702_s2 + $0x3f0] sm:$0xff]  ;;  %v306_v18 = vld [vmem:[%s21702_s2 + $0x3f8] sm:$0xff] }
 0x175   :  { %16386 = vmatpush3.bf16.msra.mxu1 %v18927_v17  ;;  %16363 = vmatprep.subr.bf16.mxu0 %v17401_v3 }
 0x176   :  { %v18955_v62 = vpop.f32.mrb[8].mxu0  ;;  %16387 = vmatprep.subr.bf16.mxu1 %v17401_v3 }
 0x177   :  { %21774 = vst [vmem:[#allocation26_spill] sm:$0xff] %v18955_v62  ;;  %v13942_v44 = vpop.f32.mrb[9].mxu0  ;;  %v18964_v38 = vpop.f32.mrb[8].mxu1  ;;  %v18971_v62 = vpack.c.bf16 %v304_v47, %v303_v20  ;;  %v18991_v20 = vpack.c.bf16 %v306_v18, %v305_v57  ;;  %v332_v47 = vld [vmem:[%s21703_s3 + $0xc8] sm:$0xff]  ;;  %v317_v18 = vld [vmem:[%s21703_s3 + $0x50] sm:$0xff] }
 0x178   :  { %21775 = vst [vmem:[#allocation27_spill] sm:$0xff] %v18964_v38  ;;  %16365 = vmatpush3.bf16.msra.mxu0 %v18943_v25  ;;  %v13977_v17 = vpop.f32.mrb[9].mxu1  ;;  %v290_v44 = vld [vmem:[%s21702_s2 + $0x378] sm:$0xff] }
 0x179   :  { %16389 = vmatpush3.bf16.msra.mxu1 %v18947_v31  ;;  %16366 = vmatprep.subr.bf16.mxu0 %v17401_v3  ;;  %v18987_v17 = vpack.c.bf16 %v290_v44, %v289_v48 }
 0x17a   :  { %16390 = vmatprep.subr.bf16.mxu1 %v17401_v3 }
 0x17c   :  { %16368 = vmatpush3.bf16.msra.mxu0 %v18967_v7 }
 0x17d   :  { %16392 = vmatpush3.bf16.msra.mxu1 %v18971_v62  ;;  %16369 = vmatprep.subr.bf16.mxu0 %v17401_v3 }
 0x17e   :  { %16393 = vmatprep.subr.bf16.mxu1 %v17401_v3 }
 0x180   :  { %16371 = vmatpush3.bf16.msra.mxu0 %v18987_v17 }
 0x181   :  { %16395 = vmatpush3.bf16.msra.mxu1 %v18991_v20  ;;  %16396 = vmatprep.subr.bf16.mxu0 %v17401_v3 }
 0x182   :  { %16420 = vmatprep.subr.bf16.mxu1 %v17401_v3 }
 0x183   :  { %14431 = vmatmul.mubr.f32.vlgmr.msra.gmra.mrb[22].mxu0 %v18684_v46 }
 0x184   :  { %14466 = vmatmul.mubr.f32.vlgmr.msra.gmra.mrb[22].mxu1 %v18684_v46  ;;  %16398 = vmatpush3.bf16.msra.mxu0 %v18322_v49 }
 0x185   :  { %16422 = vmatpush3.bf16.msra.mxu1 %v18326_v55  ;;  %16399 = vmatprep.subr.bf16.mxu0 %v17401_v3 }
 0x186   :  { %16423 = vmatprep.subr.bf16.mxu1 %v17401_v3  ;;  %14500 = vmatprep.mubr.msk.f32.mxu0 %vm17402_vm0, %v21749_v29 }
 0x187   :  { %14535 = vmatprep.mubr.msk.f32.mxu1 %vm17402_vm0, %v21749_v29 }
 0x188   :  { %16401 = vmatpush3.bf16.msra.mxu0 %v18344_v6 }
 0x189   :  { %16425 = vmatpush3.bf16.msra.mxu1 %v18348_v15  ;;  %16402 = vmatprep.subr.bf16.mxu0 %v17401_v3 }
 0x18a   :  { %16426 = vmatprep.subr.bf16.mxu1 %v17401_v3 }
 0x18c   :  { %16404 = vmatpush3.bf16.msra.mxu0 %v18368_v34 }
 0x18d   :  { %16428 = vmatpush3.bf16.msra.mxu1 %v18372_v41  ;;  %16405 = vmatprep.subr.bf16.mxu0 %v17401_v3 }
 0x18e   :  { %16429 = vmatprep.subr.bf16.mxu1 %v17401_v3 }
 0x190   :  { %16407 = vmatpush3.bf16.msra.mxu0 %v18388_v63 }
 0x191   :  { %16431 = vmatpush3.bf16.msra.mxu1 %v18392_v9  ;;  %16408 = vmatprep.subr.bf16.mxu0 %v17401_v3  ;;  %v19085_v9 = vld [vmem:[%s21700_s0 + $0x8] sm:$0xff] }
 0x192   :  { %16432 = vmatprep.subr.bf16.mxu1 %v17401_v3 }
 0x194   :  { %16410 = vmatpush3.bf16.msra.mxu0 %v18408_v39 }
 0x195   :  { %16434 = vmatpush3.bf16.msra.mxu1 %v18412_v50  ;;  %16411 = vmatprep.subr.bf16.mxu0 %v17401_v3 }
 0x196   :  { %v19023_v49 = vpop.f32.mrb[10].mxu0  ;;  %16435 = vmatprep.subr.bf16.mxu1 %v17401_v3 }
 0x197   :  { %21776 = vst [vmem:[#allocation28_spill] sm:$0xff] %v19023_v49  ;;  %v14012_v55 = vpop.f32.mrb[11].mxu0  ;;  %v19026_v6 = vpop.f32.mrb[10].mxu1 }
 0x198   :  { %21777 = vst [vmem:[#allocation29_spill] sm:$0xff] %v19026_v6  ;;  %16413 = vmatpush3.bf16.msra.mxu0 %v18428_v28  ;;  %v14047_v15 = vpop.f32.mrb[11].mxu1  ;;  %v334_v55 = vld [vmem:[%s21703_s3 + $0xd8] sm:$0xff] }
 0x199   :  { %16437 = vmatpush3.bf16.msra.mxu1 %v18432_v45  ;;  %16414 = vmatprep.subr.bf16.mxu0 %v17401_v3 }
 0x19a   :  { %16438 = vmatprep.subr.bf16.mxu1 %v17401_v3 }
 0x19c   :  { %16416 = vmatpush3.bf16.msra.mxu0 %v18452_v11  ;;  %v21782_v11 = vld [vmem:[#allocation16_spill] sm:$0xff] }
 0x19d   :  { %16440 = vmatpush3.bf16.msra.mxu1 %v18456_v58  ;;  %16417 = vmatprep.subr.bf16.mxu0 %v17401_v3  ;;  %v21783_v58 = vld [vmem:[#allocation17_spill] sm:$0xff] }
 0x19e   :  { %16441 = vmatprep.subr.bf16.mxu1 %v17401_v3 }
 0x1a0   :  { %16419 = vmatpush3.bf16.msra.mxu0 %v18472_v8  ;;  %v21784_v8 = vld [vmem:[#allocation18_spill] sm:$0xff] }
 0x1a1   :  { %16443 = vmatpush3.bf16.msra.mxu1 %v18476_v12  ;;  %16444 = vmatprep.subr.bf16.mxu0 %v17401_v3  ;;  %v21785_v12 = vld [vmem:[#allocation19_spill] sm:$0xff] }
 0x1a2   :  { %16468 = vmatprep.subr.bf16.mxu1 %v17401_v3 }
 0x1a3   :  { %14501 = vmatmul.mubr.f32.vlgmr.msra.gmra.mrb[24].mxu0 %v18190_v4 }
 0x1a4   :  { %14536 = vmatmul.mubr.f32.vlgmr.msra.gmra.mrb[24].mxu1 %v18190_v4  ;;  %16446 = vmatpush3.bf16.msra.mxu0 %v18492_v30  ;;  %v21786_v30 = vld [vmem:[#allocation20_spill] sm:$0xff] }
 0x1a5   :  { %16470 = vmatpush3.bf16.msra.mxu1 %v18496_v36  ;;  %16447 = vmatprep.subr.bf16.mxu0 %v17401_v3  ;;  %v21787_v36 = vld [vmem:[#allocation21_spill] sm:$0xff] }
 0x1a6   :  { %16471 = vmatprep.subr.bf16.mxu1 %v17401_v3  ;;  %14570 = vmatprep.mubr.msk.f32.mxu0 %vm17402_vm0, %v21749_v29 }
 0x1a7   :  { %14605 = vmatprep.mubr.msk.f32.mxu1 %vm17402_vm0, %v21749_v29 }
 0x1a8   :  { %16449 = vmatpush3.bf16.msra.mxu0 %v18514_v56  ;;  %v21788_v56 = vld [vmem:[#allocation22_spill] sm:$0xff] }
 0x1a9   :  { %16473 = vmatpush3.bf16.msra.mxu1 %v18518_v61  ;;  %16450 = vmatprep.subr.bf16.mxu0 %v17401_v3  ;;  %v21789_v61 = vld [vmem:[#allocation23_spill] sm:$0xff] }
 0x1aa   :  { %16474 = vmatprep.subr.bf16.mxu1 %v17401_v3 }
 0x1ac   :  { %16452 = vmatpush3.bf16.msra.mxu0 %v18538_v23  ;;  %v21790_v23 = vld [vmem:[#allocation24_spill] sm:$0xff] }
 0x1ad   :  { %16476 = vmatpush3.bf16.msra.mxu1 %v18542_v26  ;;  %16453 = vmatprep.subr.bf16.mxu0 %v17401_v3  ;;  %v21791_v26 = vld [vmem:[#allocation25_spill] sm:$0xff] }
 0x1ae   :  { %16477 = vmatprep.subr.bf16.mxu1 %v17401_v3 }
 0x1b0   :  { %16455 = vmatpush3.bf16.msra.mxu0 %v18558_v60 }
 0x1b1   :  { %16479 = vmatpush3.bf16.msra.mxu1 %v18562_v10  ;;  %16456 = vmatprep.subr.bf16.mxu0 %v17401_v3 }
 0x1b2   :  { %16480 = vmatprep.subr.bf16.mxu1 %v17401_v3 }
 0x1b4   :  { %16458 = vmatpush3.bf16.msra.mxu0 %v18578_v1 }
 0x1b5   :  { %16482 = vmatpush3.bf16.msra.mxu1 %v18582_v2  ;;  %16459 = vmatprep.subr.bf16.mxu0 %v17401_v3 }
 0x1b6   :  { %v19065_v4 = vpop.f32.mrb[12].mxu0  ;;  %16483 = vmatprep.subr.bf16.mxu1 %v17401_v3 }
 0x1b7   :  { %21778 = vst [vmem:[#allocation30_spill] sm:$0xff] %v19065_v4  ;;  %v14082_v34 = vpop.f32.mrb[13].mxu0  ;;  %v19068_v41 = vpop.f32.mrb[12].mxu1 }
 0x1b8   :  { %21779 = vst [vmem:[#allocation31_spill] sm:$0xff] %v19068_v41  ;;  %16461 = vmatpush3.bf16.msra.mxu0 %v18598_v35  ;;  %v14117_v63 = vpop.f32.mrb[13].mxu1  ;;  %v307_v35 = vld [vmem:[%s21703_s3] sm:$0xff]  ;;  %v384_v41 = vld [vmem:[%s21703_s3 + $0x268] sm:$0xff] }
 0x1b9   :  { %16485 = vmatpush3.bf16.msra.mxu1 %v18602_v40  ;;  %16462 = vmatprep.subr.bf16.mxu0 %v17401_v3  ;;  %v308_v40 = vld [vmem:[%s21703_s3 + $0x8] sm:$0xff]  ;;  %v319_v63 = vld [vmem:[%s21703_s3 + $0x60] sm:$0xff] }
 0x1ba   :  { %16486 = vmatprep.subr.bf16.mxu1 %v17401_v3 }
 0x1bc   :  { %16464 = vmatpush3.bf16.msra.mxu0 %v18622_v24  ;;  %v323_v24 = vld [vmem:[%s21703_s3 + $0x80] sm:$0xff] }
 0x1bd   :  { %16488 = vmatpush3.bf16.msra.mxu1 %v18626_v37  ;;  %16465 = vmatprep.subr.bf16.mxu0 %v17401_v3  ;;  %v324_v37 = vld [vmem:[%s21703_s3 + $0x88] sm:$0xff] }
 0x1be   :  { %16489 = vmatprep.subr.bf16.mxu1 %v17401_v3 }
 0x1c0   :  { %16467 = vmatpush3.bf16.msra.mxu0 %v18642_v5  ;;  %v19180_v5 = vpack.c.bf16 %v308_v40, %v307_v35  ;;  %v339_v40 = vld [vmem:[%s21703_s3 + $0x100] sm:$0xff] }
 0x1c1   :  { %16491 = vmatpush3.bf16.msra.mxu1 %v18646_v54  ;;  %16492 = vmatprep.subr.bf16.mxu0 %v17401_v3  ;;  %v19184_v54 = vpack.c.bf16 %v324_v37, %v323_v24  ;;  %v340_v24 = vld [vmem:[%s21703_s3 + $0x108] sm:$0xff]  ;;  %v355_v37 = vld [vmem:[%s21703_s3 + $0x180] sm:$0xff] }
 0x1c2   :  { %16516 = vmatprep.subr.bf16.mxu1 %v17401_v3 }
 0x1c3   :  { %14571 = vmatmul.mubr.f32.vlgmr.msra.gmra.mrb[26].mxu0 %v19085_v9 }
 0x1c4   :  { %14606 = vmatmul.mubr.f32.vlgmr.msra.gmra.mrb[26].mxu1 %v19085_v9  ;;  %16494 = vmatpush3.bf16.msra.mxu0 %v18662_v52  ;;  %v309_v52 = vld [vmem:[%s21703_s3 + $0x10] sm:$0xff] }
 0x1c5   :  { %16518 = vmatpush3.bf16.msra.mxu1 %v18666_v22  ;;  %16495 = vmatprep.subr.bf16.mxu0 %v17401_v3  ;;  %v310_v22 = vld [vmem:[%s21703_s3 + $0x18] sm:$0xff] }
 0x1c6   :  { %16519 = vmatprep.subr.bf16.mxu1 %v17401_v3  ;;  %14640 = vmatprep.mubr.msk.f32.mxu0 %vm17402_vm0, %v21749_v29 }
 0x1c7   :  { %14675 = vmatprep.mubr.msk.f32.mxu1 %vm17402_vm0, %v21749_v29 }
 0x1c8   :  { %16497 = vmatpush3.bf16.msra.mxu0 %v18689_v0  ;;  %v325_v0 = vld [vmem:[%s21703_s3 + $0x90] sm:$0xff] }
 0x1c9   :  { %16521 = vmatpush3.bf16.msra.mxu1 %v18693_v32  ;;  %16498 = vmatprep.subr.bf16.mxu0 %v17401_v3  ;;  %v326_v32 = vld [vmem:[%s21703_s3 + $0x98] sm:$0xff] }
 0x1ca   :  { %16522 = vmatprep.subr.bf16.mxu1 %v17401_v3 }
 0x1cc   :  { %16500 = vmatpush3.bf16.msra.mxu0 %v18713_v13  ;;  %v19202_v13 = vpack.c.bf16 %v310_v22, %v309_v52  ;;  %v356_v52 = vld [vmem:[%s21703_s3 + $0x188] sm:$0xff]  ;;  %v19350_v22 = vpack.c.bf16 %v340_v24, %v339_v40 }
 0x1cd   :  { %16524 = vmatpush3.bf16.msra.mxu1 %v18717_v19  ;;  %16501 = vmatprep.subr.bf16.mxu0 %v17401_v3  ;;  %v19206_v19 = vpack.c.bf16 %v326_v32, %v325_v0  ;;  %v19354_v0 = vpack.c.bf16 %v356_v52, %v355_v37  ;;  %v341_v32 = vld [vmem:[%s21703_s3 + $0x110] sm:$0xff]  ;;  %v351_v37 = vld [vmem:[%s21703_s3 + $0x160] sm:$0xff]  ;;  %v352_v52 = vld [vmem:[%s21703_s3 + $0x168] sm:$0xff] }
 0x1ce   :  { %16525 = vmatprep.subr.bf16.mxu1 %v17401_v3 }
 0x1d0   :  { %16503 = vmatpush3.bf16.msra.mxu0 %v18733_v16  ;;  %v311_v16 = vld [vmem:[%s21703_s3 + $0x20] sm:$0xff] }
 0x1d1   :  { %16527 = vmatpush3.bf16.msra.mxu1 %v18737_v33  ;;  %16504 = vmatprep.subr.bf16.mxu0 %v17401_v3  ;;  %v312_v33 = vld [vmem:[%s21703_s3 + $0x28] sm:$0xff] }
 0x1d2   :  { %16528 = vmatprep.subr.bf16.mxu1 %v17401_v3 }
 0x1d4   :  { %16506 = vmatpush3.bf16.msra.mxu0 %v18753_v53  ;;  %v327_v53 = vld [vmem:[%s21703_s3 + $0xa0] sm:$0xff] }
 0x1d5   :  { %16530 = vmatpush3.bf16.msra.mxu1 %v18757_v21  ;;  %16507 = vmatprep.subr.bf16.mxu0 %v17401_v3  ;;  %v328_v21 = vld [vmem:[%s21703_s3 + $0xa8] sm:$0xff] }
 0x1d6   :  { %v19112_v39 = vpop.f32.mrb[14].mxu0  ;;  %16531 = vmatprep.subr.bf16.mxu1 %v17401_v3 }
 0x1d7   :  { %21780 = vst [vmem:[#allocation32_spill] sm:$0xff] %v19112_v39  ;;  %v14152_v50 = vpop.f32.mrb[15].mxu0  ;;  %v19115_v28 = vpop.f32.mrb[14].mxu1  ;;  %v383_v39 = vld [vmem:[%s21703_s3 + $0x260] sm:$0xff] }
 0x1d8   :  { %21781 = vst [vmem:[#allocation33_spill] sm:$0xff] %v19115_v28  ;;  %16509 = vmatpush3.bf16.msra.mxu0 %v18773_v42  ;;  %v14187_v45 = vpop.f32.mrb[15].mxu1  ;;  %v19226_v42 = vpack.c.bf16 %v312_v33, %v311_v16  ;;  %v320_v50 = vld [vmem:[%s21703_s3 + $0x68] sm:$0xff]  ;;  %v342_v16 = vld [vmem:[%s21703_s3 + $0x118] sm:$0xff]  ;;  %v357_v33 = vld [vmem:[%s21703_s3 + $0x190] sm:$0xff]  ;;  %v19655_v49 = vpack.c.bf16 %v384_v41, %v383_v39 }
 0x1d9   :  { %16533 = vmatpush3.bf16.msra.mxu1 %v18777_v43  ;;  %16510 = vmatprep.subr.bf16.mxu0 %v17401_v3  ;;  %v19230_v43 = vpack.c.bf16 %v328_v21, %v327_v53  ;;  %v358_v53 = vld [vmem:[%s21703_s3 + $0x198] sm:$0xff]  ;;  %v19372_v21 = vpack.c.bf16 %v342_v16, %v341_v32  ;;  %v367_v16 = vld [vmem:[%s21703_s3 + $0x1e0] sm:$0xff] }
 0x1da   :  { %16534 = vmatprep.subr.bf16.mxu1 %v17401_v3  ;;  %v382_v28 = vld [vmem:[%s21703_s3 + $0x258] sm:$0xff] }
 0x1db   :  { %v402_v41 = vld [vmem:[%s21703_s3 + $0x2f8] sm:$0xff] }
 0x1dc   :  { %16512 = vmatpush3.bf16.msra.mxu0 %v18797_v59  ;;  %v313_v59 = vld [vmem:[%s21703_s3 + $0x30] sm:$0xff] }
 0x1dd   :  { %16536 = vmatpush3.bf16.msra.mxu1 %v18801_v14  ;;  %16513 = vmatprep.subr.bf16.mxu0 %v17401_v3  ;;  %v314_v14 = vld [vmem:[%s21703_s3 + $0x38] sm:$0xff] }
 0x1de   :  { %16537 = vmatprep.subr.bf16.mxu1 %v17401_v3  ;;  %v19246_v48 = vpack.c.bf16 %v314_v14, %v313_v59  ;;  %v19376_v59 = vpack.c.bf16 %v358_v53, %v357_v33  ;;  %v343_v14 = vld [vmem:[%s21703_s3 + $0x120] sm:$0xff]  ;;  %v368_v33 = vld [vmem:[%s21703_s3 + $0x1e8] sm:$0xff] }
 0x1e0   :  { %16515 = vmatpush3.bf16.msra.mxu0 %v18817_v51  ;;  %v329_v51 = vld [vmem:[%s21703_s3 + $0xb0] sm:$0xff] }
 0x1e1   :  { %16539 = vmatpush3.bf16.msra.mxu1 %v18821_v27  ;;  %16540 = vmatprep.subr.bf16.mxu0 %v17401_v3  ;;  %v330_v27 = vld [vmem:[%s21703_s3 + $0xb8] sm:$0xff] }
 0x1e2   :  { %16564 = vmatprep.subr.bf16.mxu1 %v17401_v3 }
 0x1e3   :  { %14641 = vmatmul.mubr.f32.vlgmr.msra.gmra.mrb[28].mxu0 %v19085_v9 }
 0x1e4   :  { %14676 = vmatmul.mubr.f32.vlgmr.msra.gmra.mrb[28].mxu1 %v19085_v9  ;;  %16542 = vmatpush3.bf16.msra.mxu0 %v21782_v11  ;;  %v335_v11 = vld [vmem:[%s21703_s3 + $0xe0] sm:$0xff] }
 0x1e5   :  { %16566 = vmatpush3.bf16.msra.mxu1 %v21783_v58  ;;  %16543 = vmatprep.subr.bf16.mxu0 %v17401_v3  ;;  %v336_v58 = vld [vmem:[%s21703_s3 + $0xe8] sm:$0xff] }
 0x1e6   :  { %16567 = vmatprep.subr.bf16.mxu1 %v17401_v3  ;;  %14710 = vmatprep.mubr.msk.f32.mxu0 %vm17402_vm0, %v21749_v29 }
 0x1e7   :  { %14745 = vmatprep.mubr.msk.f32.mxu1 %vm17402_vm0, %v21749_v29 }
 0x1e8   :  { %16545 = vmatpush3.bf16.msra.mxu0 %v21784_v8 }
 0x1e9   :  { %16569 = vmatpush3.bf16.msra.mxu1 %v21785_v12  ;;  %16546 = vmatprep.subr.bf16.mxu0 %v17401_v3 }
 0x1ea   :  { %16570 = vmatprep.subr.bf16.mxu1 %v17401_v3 }
 0x1ec   :  { %16548 = vmatpush3.bf16.msra.mxu0 %v21786_v30 }
 0x1ed   :  { %16572 = vmatpush3.bf16.msra.mxu1 %v21787_v36  ;;  %16549 = vmatprep.subr.bf16.mxu0 %v17401_v3  ;;  %v19310_v36 = vpack.c.bf16 %v320_v50, %v319_v63  ;;  %v347_v63 = vld [vmem:[%s21703_s3 + $0x140] sm:$0xff]  ;;  %v348_v50 = vld [vmem:[%s21703_s3 + $0x148] sm:$0xff] }
 0x1ee   :  { %16573 = vmatprep.subr.bf16.mxu1 %v17401_v3 }
 0x1f0   :  { %16551 = vmatpush3.bf16.msra.mxu0 %v21788_v56  ;;  %v19314_v56 = vpack.c.bf16 %v336_v58, %v335_v11  ;;  %v363_v11 = vld [vmem:[%s21703_s3 + $0x1c0] sm:$0xff]  ;;  %v364_v58 = vld [vmem:[%s21703_s3 + $0x1c8] sm:$0xff] }
 0x1f1   :  { %16575 = vmatpush3.bf16.msra.mxu1 %v21789_v61  ;;  %16552 = vmatprep.subr.bf16.mxu0 %v17401_v3  ;;  %v321_v61 = vld [vmem:[%s21703_s3 + $0x70] sm:$0xff] }
 0x1f2   :  { %16576 = vmatprep.subr.bf16.mxu1 %v17401_v3 }
 0x1f4   :  { %16554 = vmatpush3.bf16.msra.mxu0 %v21790_v23  ;;  %v322_v23 = vld [vmem:[%s21703_s3 + $0x78] sm:$0xff] }
 0x1f5   :  { %16578 = vmatpush3.bf16.msra.mxu1 %v21791_v26  ;;  %16555 = vmatprep.subr.bf16.mxu0 %v17401_v3  ;;  %v337_v26 = vld [vmem:[%s21703_s3 + $0xf0] sm:$0xff] }
 0x1f6   :  { %v19154_v60 = vpop.f32.mrb[16].mxu0  ;;  %16579 = vmatprep.subr.bf16.mxu1 %v17401_v3 }
 0x1f7   :  { %21792 = vst [vmem:[#allocation16_spill] sm:$0xff] %v19154_v60  ;;  %v14222_v10 = vpop.f32.mrb[17].mxu0  ;;  %v19157_v1 = vpop.f32.mrb[16].mxu1  ;;  %v410_v60 = vld [vmem:[%s21703_s3 + $0x338] sm:$0xff] }
 0x1f8   :  { %21793 = vst [vmem:[#allocation17_spill] sm:$0xff] %v19157_v1  ;;  %16557 = vmatpush3.bf16.msra.mxu0 %v18943_v25  ;;  %v14257_v2 = vpop.f32.mrb[17].mxu1  ;;  %v316_v25 = vld [vmem:[%s21703_s3 + $0x48] sm:$0xff]  ;;  %v338_v10 = vld [vmem:[%s21703_s3 + $0xf8] sm:$0xff]  ;;  %v409_v1 = vld [vmem:[%s21703_s3 + $0x330] sm:$0xff] }
 0x1f9   :  { %16581 = vmatpush3.bf16.msra.mxu1 %v18947_v31  ;;  %16558 = vmatprep.subr.bf16.mxu0 %v17401_v3  ;;  %v331_v31 = vld [vmem:[%s21703_s3 + $0xc0] sm:$0xff]  ;;  %v19330_v2 = vpack.c.bf16 %v322_v23, %v321_v61  ;;  %v19334_v35 = vpack.c.bf16 %v338_v10, %v337_v26  ;;  %v349_v61 = vld [vmem:[%s21703_s3 + $0x150] sm:$0xff]  ;;  %v350_v23 = vld [vmem:[%s21703_s3 + $0x158] sm:$0xff] }
 0x1fa   :  { %16582 = vmatprep.subr.bf16.mxu1 %v17401_v3  ;;  %v19270_v57 = vpack.c.bf16 %v332_v47, %v331_v31  ;;  %v345_v31 = vld [vmem:[%s21703_s3 + $0x130] sm:$0xff]  ;;  %v346_v47 = vld [vmem:[%s21703_s3 + $0x138] sm:$0xff]  ;;  %v19456_v40 = vpack.c.bf16 %v350_v23, %v349_v61  ;;  %v387_v61 = vld [vmem:[%s21703_s3 + $0x280] sm:$0xff] }
 0x1fb   :  { %v365_v26 = vld [vmem:[%s21703_s3 + $0x1d0] sm:$0xff]  ;;  %v366_v10 = vld [vmem:[%s21703_s3 + $0x1d8] sm:$0xff]  ;;  %v388_v23 = vld [vmem:[%s21703_s3 + $0x288] sm:$0xff] }
 0x1fc   :  { %16560 = vmatpush3.bf16.msra.mxu0 %v18967_v7  ;;  %v315_v7 = vld [vmem:[%s21703_s3 + $0x40] sm:$0xff]  ;;  %v19460_v24 = vpack.c.bf16 %v366_v10, %v365_v26  ;;  %v19524_v10 = vpack.c.bf16 %v388_v23, %v387_v61  ;;  %v377_v23 = vld [vmem:[%s21703_s3 + $0x230] sm:$0xff] }
 0x1fd   :  { %16584 = vmatpush3.bf16.msra.mxu1 %v18971_v62  ;;  %16561 = vmatprep.subr.bf16.mxu0 %v17401_v3  ;;  %v19250_v62 = vpack.c.bf16 %v330_v27, %v329_v51  ;;  %v19266_v44 = vpack.c.bf16 %v316_v25, %v315_v7  ;;  %v344_v51 = vld [vmem:[%s21703_s3 + $0x128] sm:$0xff] }
 0x1fe   :  { %16585 = vmatprep.subr.bf16.mxu1 %v17401_v3  ;;  %v360_v27 = vld [vmem:[%s21703_s3 + $0x1a8] sm:$0xff]  ;;  %v19396_v7 = vpack.c.bf16 %v344_v51, %v343_v14 }
 0x200   :  { %16563 = vmatpush3.bf16.msra.mxu0 %v18987_v17  ;;  %v318_v17 = vld [vmem:[%s21703_s3 + $0x58] sm:$0xff] }
 0x201   :  { %16587 = vmatpush3.bf16.msra.mxu1 %v18991_v20  ;;  %16588 = vmatprep.subr.bf16.mxu0 %v17401_v3  ;;  %v333_v20 = vld [vmem:[%s21703_s3 + $0xd0] sm:$0xff]  ;;  %v19286_v15 = vpack.c.bf16 %v318_v17, %v317_v18  ;;  %v362_v17 = vld [vmem:[%s21703_s3 + $0x1b8] sm:$0xff] }
 0x202   :  { %16612 = vmatprep.subr.bf16.mxu1 %v17401_v3  ;;  %v19290_v34 = vpack.c.bf16 %v334_v55, %v333_v20  ;;  %v361_v18 = vld [vmem:[%s21703_s3 + $0x1b0] sm:$0xff]  ;;  %v19416_v20 = vpack.c.bf16 %v346_v47, %v345_v31  ;;  %v354_v47 = vld [vmem:[%s21703_s3 + $0x178] sm:$0xff] }
 0x203   :  { %14711 = vmatmul.mubr.f32.vlgmr.msra.gmra.mrb[30].mxu0 %v19085_v9  ;;  %v19420_v55 = vpack.c.bf16 %v362_v17, %v361_v18  ;;  %v353_v31 = vld [vmem:[%s21703_s3 + $0x170] sm:$0xff]  ;;  %v370_v17 = vld [vmem:[%s21703_s3 + $0x1f8] sm:$0xff] }
 0x204   :  { %14746 = vmatmul.mubr.f32.vlgmr.msra.gmra.mrb[30].mxu1 %v19085_v9  ;;  %16590 = vmatpush3.bf16.msra.mxu0 %v19180_v5  ;;  %v369_v18 = vld [vmem:[%s21703_s3 + $0x1f0] sm:$0xff] }
 0x205   :  { %16614 = vmatpush3.bf16.msra.mxu1 %v19184_v54  ;;  %16591 = vmatprep.subr.bf16.mxu0 %v17401_v3 }
 0x206   :  { %16615 = vmatprep.subr.bf16.mxu1 %v17401_v3  ;;  %14780 = vmatprep.mubr.msk.f32.mxu0 %vm17402_vm0, %v21749_v29 }
 0x207   :  { %14815 = vmatprep.mubr.msk.f32.mxu1 %vm17402_vm0, %v21749_v29 }
 0x208   :  { %16593 = vmatpush3.bf16.msra.mxu0 %v19202_v13 }
 0x209   :  { %16617 = vmatpush3.bf16.msra.mxu1 %v19206_v19  ;;  %16594 = vmatprep.subr.bf16.mxu0 %v17401_v3 }
 0x20a   :  { %16618 = vmatprep.subr.bf16.mxu1 %v17401_v3 }
 0x20c   :  { %16596 = vmatpush3.bf16.msra.mxu0 %v19226_v42 }
 0x20d   :  { %16620 = vmatpush3.bf16.msra.mxu1 %v19230_v43  ;;  %16597 = vmatprep.subr.bf16.mxu0 %v17401_v3 }
 0x20e   :  { %16621 = vmatprep.subr.bf16.mxu1 %v17401_v3 }
 0x210   :  { %16599 = vmatpush3.bf16.msra.mxu0 %v19246_v48 }
 0x211   :  { %16623 = vmatpush3.bf16.msra.mxu1 %v19250_v62  ;;  %16600 = vmatprep.subr.bf16.mxu0 %v17401_v3 }
 0x212   :  { %16624 = vmatprep.subr.bf16.mxu1 %v17401_v3 }
 0x214   :  { %16602 = vmatpush3.bf16.msra.mxu0 %v19266_v44 }
 0x215   :  { %16626 = vmatpush3.bf16.msra.mxu1 %v19270_v57  ;;  %16603 = vmatprep.subr.bf16.mxu0 %v17401_v3 }
 0x216   :  { %v19298_v45 = vpop.f32.mrb[18].mxu0  ;;  %16627 = vmatprep.subr.bf16.mxu1 %v17401_v3 }
 0x217   :  { %21794 = vst [vmem:[#allocation18_spill] sm:$0xff] %v19298_v45  ;;  %v14292_v8 = vpop.f32.mrb[19].mxu0  ;;  %v19307_v12 = vpop.f32.mrb[18].mxu1  ;;  %v408_v45 = vld [vmem:[%s21703_s3 + $0x328] sm:$0xff] }
 0x218   :  { %21795 = vst [vmem:[#allocation19_spill] sm:$0xff] %v19307_v12  ;;  %16605 = vmatpush3.bf16.msra.mxu0 %v19286_v15  ;;  %v14327_v30 = vpop.f32.mrb[19].mxu1  ;;  %v19436_v8 = vpack.c.bf16 %v348_v50, %v347_v63  ;;  %v19500_v63 = vpack.c.bf16 %v354_v47, %v353_v31  ;;  %v19504_v50 = vpack.c.bf16 %v370_v17, %v369_v18  ;;  %v375_v47 = vld [vmem:[%s21703_s3 + $0x220] sm:$0xff]  ;;  %v376_v18 = vld [vmem:[%s21703_s3 + $0x228] sm:$0xff] }
 0x219   :  { %16629 = vmatpush3.bf16.msra.mxu1 %v19290_v34  ;;  %16606 = vmatprep.subr.bf16.mxu0 %v17401_v3  ;;  %v19440_v30 = vpack.c.bf16 %v364_v58, %v363_v11  ;;  %v371_v11 = vld [vmem:[%s21703_s3 + $0x200] sm:$0xff]  ;;  %v372_v58 = vld [vmem:[%s21703_s3 + $0x208] sm:$0xff] }
 0x21a   :  { %16630 = vmatprep.subr.bf16.mxu1 %v17401_v3  ;;  %v19520_v26 = vpack.c.bf16 %v372_v58, %v371_v11  ;;  %v391_v17 = vld [vmem:[%s21703_s3 + $0x2a0] sm:$0xff]  ;;  %v392_v11 = vld [vmem:[%s21703_s3 + $0x2a8] sm:$0xff]  ;;  %v19571_v58 = vpack.c.bf16 %v376_v18, %v375_v47 }
 0x21b   :  { %v19575_v61 = vpack.c.bf16 %v392_v11, %v391_v17  ;;  %v379_v18 = vld [vmem:[%s21703_s3 + $0x240] sm:$0xff]  ;;  %v380_v17 = vld [vmem:[%s21703_s3 + $0x248] sm:$0xff] }
 0x21c   :  { %16608 = vmatpush3.bf16.msra.mxu0 %v19310_v36  ;;  %v395_v11 = vld [vmem:[%s21703_s3 + $0x2c0] sm:$0xff] }
 0x21d   :  { %16632 = vmatpush3.bf16.msra.mxu1 %v19314_v56  ;;  %16609 = vmatprep.subr.bf16.mxu0 %v17401_v3  ;;  %v407_v12 = vld [vmem:[%s21703_s3 + $0x320] sm:$0xff] }
 0x21e   :  { %16633 = vmatprep.subr.bf16.mxu1 %v17401_v3 }
 0x220   :  { %16611 = vmatpush3.bf16.msra.mxu0 %v19330_v2 }
 0x221   :  { %16635 = vmatpush3.bf16.msra.mxu1 %v19334_v35  ;;  %16636 = vmatprep.subr.bf16.mxu0 %v17401_v3 }
 0x222   :  { %16660 = vmatprep.subr.bf16.mxu1 %v17401_v3 }
 0x223   :  { %14781 = vmatmul.mubr.f32.vlgmr.msra.gmra.mrb[32].mxu0 %v18684_v46 }
 0x224   :  { %14816 = vmatmul.mubr.f32.vlgmr.msra.gmra.mrb[32].mxu1 %v18684_v46  ;;  %16638 = vmatpush3.bf16.msra.mxu0 %v19350_v22  ;;  %v359_v46 = vld [vmem:[%s21703_s3 + $0x1a0] sm:$0xff] }
 0x225   :  { %16662 = vmatpush3.bf16.msra.mxu1 %v19354_v0  ;;  %16639 = vmatprep.subr.bf16.mxu0 %v17401_v3  ;;  %v19400_v25 = vpack.c.bf16 %v360_v27, %v359_v46  ;;  %v19480_v46 = vpack.c.bf16 %v352_v52, %v351_v37  ;;  %v19484_v27 = vpack.c.bf16 %v368_v33, %v367_v16  ;;  %v373_v37 = vld [vmem:[%s21703_s3 + $0x210] sm:$0xff]  ;;  %v374_v52 = vld [vmem:[%s21703_s3 + $0x218] sm:$0xff] }
 0x226   :  { %16663 = vmatprep.subr.bf16.mxu1 %v17401_v3  ;;  %14850 = vmatprep.mubr.msk.f32.mxu0 %vm17402_vm0, %v21749_v29  ;;  %v389_v16 = vld [vmem:[%s21703_s3 + $0x290] sm:$0xff]  ;;  %v390_v33 = vld [vmem:[%s21703_s3 + $0x298] sm:$0xff] }
 0x227   :  { %14885 = vmatprep.mubr.msk.f32.mxu1 %vm17402_vm0, %v21749_v29  ;;  %v19551_v31 = vpack.c.bf16 %v390_v33, %v389_v16  ;;  %v394_v16 = vld [vmem:[%s21703_s3 + $0x2b8] sm:$0xff] }
 0x228   :  { %16641 = vmatpush3.bf16.msra.mxu0 %v19372_v21 }
 0x229   :  { %16665 = vmatpush3.bf16.msra.mxu1 %v19376_v59  ;;  %16642 = vmatprep.subr.bf16.mxu0 %v17401_v3 }
 0x22a   :  { %16666 = vmatprep.subr.bf16.mxu1 %v17401_v3 }
 0x22c   :  { %16644 = vmatpush3.bf16.msra.mxu0 %v19396_v7 }
 0x22d   :  { %16668 = vmatpush3.bf16.msra.mxu1 %v19400_v25  ;;  %16645 = vmatprep.subr.bf16.mxu0 %v17401_v3 }
 0x22e   :  { %16669 = vmatprep.subr.bf16.mxu1 %v17401_v3 }
 0x230   :  { %16647 = vmatpush3.bf16.msra.mxu0 %v19416_v20 }
 0x231   :  { %16671 = vmatpush3.bf16.msra.mxu1 %v19420_v55  ;;  %16648 = vmatprep.subr.bf16.mxu0 %v17401_v3 }
 0x232   :  { %16672 = vmatprep.subr.bf16.mxu1 %v17401_v3 }
 0x234   :  { %16650 = vmatpush3.bf16.msra.mxu0 %v19436_v8 }
 0x235   :  { %16674 = vmatpush3.bf16.msra.mxu1 %v19440_v30  ;;  %16651 = vmatprep.subr.bf16.mxu0 %v17401_v3 }
 0x236   :  { %v19468_v32 = vpop.f32.mrb[20].mxu0  ;;  %16675 = vmatprep.subr.bf16.mxu1 %v17401_v3 }
 0x237   :  { %21796 = vst [vmem:[#allocation20_spill] sm:$0xff] %v19468_v32  ;;  %v14362_v53 = vpop.f32.mrb[21].mxu0  ;;  %v19477_v14 = vpop.f32.mrb[20].mxu1  ;;  %v406_v32 = vld [vmem:[%s21703_s3 + $0x318] sm:$0xff] }
 0x238   :  { %21797 = vst [vmem:[#allocation21_spill] sm:$0xff] %v19477_v14  ;;  %16653 = vmatpush3.bf16.msra.mxu0 %v19456_v40  ;;  %v14397_v51 = vpop.f32.mrb[21].mxu1  ;;  %v19542_v53 = vld [vmem:[%s21700_s0] sm:$0xff]  ;;  %v405_v14 = vld [vmem:[%s21703_s3 + $0x310] sm:$0xff] }
 0x239   :  { %16677 = vmatpush3.bf16.msra.mxu1 %v19460_v24  ;;  %16654 = vmatprep.subr.bf16.mxu0 %v17401_v3  ;;  %v19547_v51 = vpack.c.bf16 %v374_v52, %v373_v37  ;;  %v378_v37 = vld [vmem:[%s21703_s3 + $0x238] sm:$0xff]  ;;  %v393_v52 = vld [vmem:[%s21703_s3 + $0x2b0] sm:$0xff] }
 0x23a   :  { %16678 = vmatprep.subr.bf16.mxu1 %v17401_v3  ;;  %v19591_v33 = vpack.c.bf16 %v378_v37, %v377_v23  ;;  %v19595_v47 = vpack.c.bf16 %v394_v16, %v393_v52  ;;  %v396_v23 = vld [vmem:[%s21703_s3 + $0x2c8] sm:$0xff]  ;;  %v19611_v37 = vpack.c.bf16 %v380_v17, %v379_v18  ;;  %v381_v16 = vld [vmem:[%s21703_s3 + $0x250] sm:$0xff]  ;;  %v398_v17 = vld [vmem:[%s21703_s3 + $0x2d8] sm:$0xff] }
 0x23b   :  { %v19615_v52 = vpack.c.bf16 %v396_v23, %v395_v11  ;;  %v397_v18 = vld [vmem:[%s21703_s3 + $0x2d0] sm:$0xff]  ;;  %v19631_v11 = vpack.c.bf16 %v382_v28, %v381_v16  ;;  %v399_v28 = vld [vmem:[%s21703_s3 + $0x2e0] sm:$0xff]  ;;  %v400_v16 = vld [vmem:[%s21703_s3 + $0x2e8] sm:$0xff] }
 0x23c   :  { %16656 = vmatpush3.bf16.msra.mxu0 %v19480_v46  ;;  %v19635_v23 = vpack.c.bf16 %v398_v17, %v397_v18  ;;  %v19659_v38 = vpack.c.bf16 %v400_v16, %v399_v28  ;;  %v403_v16 = vld [vmem:[%s21703_s3 + $0x300] sm:$0xff] }
 0x23d   :  { %16680 = vmatpush3.bf16.msra.mxu1 %v19484_v27  ;;  %16657 = vmatprep.subr.bf16.mxu0 %v17401_v3 }
 0x23e   :  { %16681 = vmatprep.subr.bf16.mxu1 %v17401_v3 }
 0x240   :  { %16659 = vmatpush3.bf16.msra.mxu0 %v19500_v63 }
 0x241   :  { %16683 = vmatpush3.bf16.msra.mxu1 %v19504_v50  ;;  %16684 = vmatprep.subr.bf16.mxu0 %v17401_v3 }
 0x242   :  { %16708 = vmatprep.subr.bf16.mxu1 %v17401_v3 }
 0x243   :  { %14851 = vmatmul.mubr.f32.vlgmr.msra.gmra.mrb[34].mxu0 %v19542_v53 }
 0x244   :  { %14886 = vmatmul.mubr.f32.vlgmr.msra.gmra.mrb[34].mxu1 %v19542_v53  ;;  %16686 = vmatpush3.bf16.msra.mxu0 %v19520_v26 }
 0x245   :  { %16710 = vmatpush3.bf16.msra.mxu1 %v19524_v10  ;;  %16687 = vmatprep.subr.bf16.mxu0 %v17401_v3 }
 0x246   :  { %16711 = vmatprep.subr.bf16.mxu1 %v17401_v3  ;;  %14920 = vmatprep.mubr.msk.f32.mxu0 %vm17402_vm0, %v21749_v29 }
 0x247   :  { %14955 = vmatprep.mubr.msk.f32.mxu1 %vm17402_vm0, %v21749_v29 }
 0x248   :  { %16689 = vmatpush3.bf16.msra.mxu0 %v19547_v51 }
 0x249   :  { %16713 = vmatpush3.bf16.msra.mxu1 %v19551_v31  ;;  %16690 = vmatprep.subr.bf16.mxu0 %v17401_v3 }
 0x24a   :  { %16714 = vmatprep.subr.bf16.mxu1 %v17401_v3 }
 0x24c   :  { %16692 = vmatpush3.bf16.msra.mxu0 %v19571_v58 }
 0x24d   :  { %16716 = vmatpush3.bf16.msra.mxu1 %v19575_v61  ;;  %16693 = vmatprep.subr.bf16.mxu0 %v17401_v3 }
 0x24e   :  { %16717 = vmatprep.subr.bf16.mxu1 %v17401_v3 }
 0x250   :  { %16695 = vmatpush3.bf16.msra.mxu0 %v19591_v33 }
 0x251   :  { %16719 = vmatpush3.bf16.msra.mxu1 %v19595_v47  ;;  %16696 = vmatprep.subr.bf16.mxu0 %v17401_v3 }
 0x252   :  { %16720 = vmatprep.subr.bf16.mxu1 %v17401_v3 }
 0x254   :  { %16698 = vmatpush3.bf16.msra.mxu0 %v19611_v37 }
 0x255   :  { %16722 = vmatpush3.bf16.msra.mxu1 %v19615_v52  ;;  %16699 = vmatprep.subr.bf16.mxu0 %v17401_v3 }
 0x256   :  { %v19643_v4 = vpop.f32.mrb[22].mxu0  ;;  %16723 = vmatprep.subr.bf16.mxu1 %v17401_v3 }
 0x257   :  { %21798 = vst [vmem:[#allocation22_spill] sm:$0xff] %v19643_v4  ;;  %v14432_v18 = vpop.f32.mrb[23].mxu0  ;;  %v19652_v17 = vpop.f32.mrb[22].mxu1  ;;  %v385_v4 = vld [vmem:[%s21703_s3 + $0x270] sm:$0xff] }
 0x258   :  { %21799 = vst [vmem:[#allocation23_spill] sm:$0xff] %v19652_v17  ;;  %16701 = vmatpush3.bf16.msra.mxu0 %v19631_v11  ;;  %v14467_v6 = vpop.f32.mrb[23].mxu1  ;;  %v386_v18 = vld [vmem:[%s21703_s3 + $0x278] sm:$0xff]  ;;  %v404_v17 = vld [vmem:[%s21703_s3 + $0x308] sm:$0xff] }
 0x259   :  { %16725 = vmatpush3.bf16.msra.mxu1 %v19635_v23  ;;  %16702 = vmatprep.subr.bf16.mxu0 %v17401_v3  ;;  %v401_v6 = vld [vmem:[%s21703_s3 + $0x2f0] sm:$0xff]  ;;  %v19675_v39 = vpack.c.bf16 %v386_v18, %v385_v4  ;;  %v419_v4 = vld [vmem:[%s21703_s3 + $0x380] sm:$0xff]  ;;  %v420_v18 = vld [vmem:[%s21703_s3 + $0x388] sm:$0xff] }
 0x25a   :  { %16726 = vmatprep.subr.bf16.mxu1 %v17401_v3  ;;  %v19679_v28 = vpack.c.bf16 %v402_v41, %v401_v6  ;;  %v19695_v6 = vpack.c.bf16 %v404_v17, %v403_v16  ;;  %v19699_v41 = vpack.c.bf16 %v420_v18, %v419_v4  ;;  %v421_v17 = vld [vmem:[%s21703_s3 + $0x390] sm:$0xff]  ;;  %v422_v16 = vld [vmem:[%s21703_s3 + $0x398] sm:$0xff]  ;;  %v19717_v4 = vpack.c.bf16 %v406_v32, %v405_v14  ;;  %v423_v32 = vld [vmem:[%s21703_s3 + $0x3a0] sm:$0xff] }
 0x25b   :  { %v19721_v18 = vpack.c.bf16 %v422_v16, %v421_v17  ;;  %v424_v14 = vld [vmem:[%s21703_s3 + $0x3a8] sm:$0xff]  ;;  %v19741_v17 = vpack.c.bf16 %v408_v45, %v407_v12  ;;  %v425_v45 = vld [vmem:[%s21703_s3 + $0x3b0] sm:$0xff]  ;;  %v426_v12 = vld [vmem:[%s21703_s3 + $0x3b8] sm:$0xff] }
 0x25c   :  { %16704 = vmatpush3.bf16.msra.mxu0 %v19655_v49  ;;  %21800 = vst [vmem:[#allocation24_spill] sm:$0xff] %v19695_v6  ;;  %21801 = vst [vmem:[#allocation25_spill] sm:$0xff] %v19699_v41  ;;  %v19745_v16 = vpack.c.bf16 %v424_v14, %v423_v32  ;;  %v19761_v32 = vpack.c.bf16 %v410_v60, %v409_v1  ;;  %v19765_v14 = vpack.c.bf16 %v426_v12, %v425_v45  ;;  %v427_v60 = vld [vmem:[%s21703_s3 + $0x3c0] sm:$0xff]  ;;  %v428_v1 = vld [vmem:[%s21703_s3 + $0x3c8] sm:$0xff] }
 0x25d   :  { %16728 = vmatpush3.bf16.msra.mxu1 %v19659_v38  ;;  %16705 = vmatprep.subr.bf16.mxu0 %v17401_v3  ;;  %21802 = vst [vmem:[#allocation34_spill] sm:$0xff] %v19717_v4  ;;  %21803 = vst [vmem:[#allocation35_spill] sm:$0xff] %v19721_v18  ;;  %v19785_v12 = vpack.c.bf16 %v428_v1, %v427_v60 }
 0x25e   :  { %16729 = vmatprep.subr.bf16.mxu1 %v17401_v3  ;;  %21804 = vst [vmem:[#allocation36_spill] sm:$0xff] %v19741_v17  ;;  %21805 = vst [vmem:[#allocation37_spill] sm:$0xff] %v19745_v16 }
 0x25f   :  { %21806 = vst [vmem:[#allocation38_spill] sm:$0xff] %v19761_v32  ;;  %21807 = vst [vmem:[#allocation39_spill] sm:$0xff] %v19765_v14 }
 0x260   :  { %16707 = vmatpush3.bf16.msra.mxu0 %v19675_v39  ;;  %21809 = vst [vmem:[#allocation41_spill] sm:$0xff] %v19785_v12 }
 0x261   :  { %16731 = vmatpush3.bf16.msra.mxu1 %v19679_v28  ;;  %16732 = vmatprep.subr.bf16.mxu0 %v17401_v3 }
 0x262   :  { %16756 = vmatprep.subr.bf16.mxu1 %v17401_v3 }
 0x263   :  { %14921 = vmatmul.mubr.f32.vlgmr.msra.gmra.mrb[36].mxu0 %v19542_v53 }
 0x264   :  { %14956 = vmatmul.mubr.f32.vlgmr.msra.gmra.mrb[36].mxu1 %v19542_v53  ;;  %16734 = vmatpush3.bf16.msra.mxu0 %v19695_v6  ;;  %v417_v6 = vld [vmem:[%s21703_s3 + $0x370] sm:$0xff] }
 0x265   :  { %16758 = vmatpush3.bf16.msra.mxu1 %v19699_v41  ;;  %16735 = vmatprep.subr.bf16.mxu0 %v17401_v3 }
 0x266   :  { %16759 = vmatprep.subr.bf16.mxu1 %v17401_v3  ;;  %14990 = vmatprep.mubr.msk.f32.mxu0 %vm17402_vm0, %v21749_v29 }
 0x267   :  { %15025 = vmatprep.mubr.msk.f32.mxu1 %vm17402_vm0, %v21749_v29 }
 0x268   :  { %16737 = vmatpush3.bf16.msra.mxu0 %v19717_v4  ;;  %v412_v4 = vld [vmem:[%s21703_s3 + $0x348] sm:$0xff] }
 0x269   :  { %16761 = vmatpush3.bf16.msra.mxu1 %v19721_v18  ;;  %16738 = vmatprep.subr.bf16.mxu0 %v17401_v3  ;;  %v411_v18 = vld [vmem:[%s21703_s3 + $0x340] sm:$0xff] }
 0x26a   :  { %16762 = vmatprep.subr.bf16.mxu1 %v17401_v3  ;;  %v19781_v45 = vpack.c.bf16 %v412_v4, %v411_v18  ;;  %v429_v4 = vld [vmem:[%s21703_s3 + $0x3d0] sm:$0xff]  ;;  %v430_v18 = vld [vmem:[%s21703_s3 + $0x3d8] sm:$0xff] }
 0x26b   :  { %v19805_v1 = vpack.c.bf16 %v430_v18, %v429_v4 }
 0x26c   :  { %16740 = vmatpush3.bf16.msra.mxu0 %v19741_v17  ;;  %21808 = vst [vmem:[#allocation40_spill] sm:$0xff] %v19781_v45  ;;  %v414_v17 = vld [vmem:[%s21703_s3 + $0x358] sm:$0xff] }
 0x26d   :  { %16764 = vmatpush3.bf16.msra.mxu1 %v19745_v16  ;;  %16741 = vmatprep.subr.bf16.mxu0 %v17401_v3  ;;  %v413_v16 = vld [vmem:[%s21703_s3 + $0x350] sm:$0xff] }
 0x26e   :  { %16765 = vmatprep.subr.bf16.mxu1 %v17401_v3  ;;  %v19801_v60 = vpack.c.bf16 %v414_v17, %v413_v16  ;;  %v431_v17 = vld [vmem:[%s21703_s3 + $0x3e0] sm:$0xff]  ;;  %v432_v16 = vld [vmem:[%s21703_s3 + $0x3e8] sm:$0xff] }
 0x270   :  { %16743 = vmatpush3.bf16.msra.mxu0 %v19761_v32  ;;  %v416_v32 = vld [vmem:[%s21703_s3 + $0x368] sm:$0xff] }
 0x271   :  { %16767 = vmatpush3.bf16.msra.mxu1 %v19765_v14  ;;  %16744 = vmatprep.subr.bf16.mxu0 %v17401_v3  ;;  %v415_v14 = vld [vmem:[%s21703_s3 + $0x360] sm:$0xff] }
 0x272   :  { %16768 = vmatprep.subr.bf16.mxu1 %v17401_v3 }
 0x274   :  { %16746 = vmatpush3.bf16.msra.mxu0 %v19781_v45  ;;  %v19825_v45 = vpack.c.bf16 %v416_v32, %v415_v14  ;;  %v433_v32 = vld [vmem:[%s21703_s3 + $0x3f0] sm:$0xff]  ;;  %v434_v14 = vld [vmem:[%s21703_s3 + $0x3f8] sm:$0xff] }
 0x275   :  { %16770 = vmatpush3.bf16.msra.mxu1 %v19785_v12  ;;  %16747 = vmatprep.subr.bf16.mxu0 %v17401_v3 }
 0x276   :  { %v19813_v41 = vpop.f32.mrb[24].mxu0  ;;  %16771 = vmatprep.subr.bf16.mxu1 %v17401_v3 }
 0x277   :  { %21810 = vst [vmem:[#allocation42_spill] sm:$0xff] %v19813_v41  ;;  %v14502_v4 = vpop.f32.mrb[25].mxu0  ;;  %v19822_v18 = vpop.f32.mrb[24].mxu1  ;;  %v19829_v41 = vpack.c.bf16 %v432_v16, %v431_v17  ;;  %v19849_v17 = vpack.c.bf16 %v434_v14, %v433_v32  ;;  %v21845_v16 = vld [vmem:[#allocation33_spill] sm:$0xff] }
 0x278   :  { %16749 = vmatpush3.bf16.msra.mxu0 %v19801_v60  ;;  %v14537_v12 = vpop.f32.mrb[25].mxu1  ;;  %v418_v4 = vld [vmem:[%s21703_s3 + $0x378] sm:$0xff] }
 0x279   :  { %16773 = vmatpush3.bf16.msra.mxu1 %v19805_v1  ;;  %16750 = vmatprep.subr.bf16.mxu0 %v17401_v3  ;;  %v19845_v12 = vpack.c.bf16 %v418_v4, %v417_v6  ;;  %v21840_v6 = vld [vmem:[#allocation28_spill] sm:$0xff] }
 0x27a   :  { %16774 = vmatprep.subr.bf16.mxu1 %v17401_v3 }
 0x27c   :  { %16752 = vmatpush3.bf16.msra.mxu0 %v19825_v45 }
 0x27d   :  { %16776 = vmatpush3.bf16.msra.mxu1 %v19829_v41  ;;  %16753 = vmatprep.subr.bf16.mxu0 %v17401_v3 }
 0x27e   :  { %16777 = vmatprep.subr.bf16.mxu1 %v17401_v3 }
 0x280   :  { %16755 = vmatpush3.bf16.msra.mxu0 %v19845_v12 }
 0x281   :  { %16779 = vmatpush3.bf16.msra.mxu1 %v19849_v17  ;;  %16780 = vmatprep.subr.bf16.mxu0 %v17401_v3 }
 0x282   :  { %16804 = vmatprep.subr.bf16.mxu1 %v17401_v3 }
 0x283   :  { %14991 = vmatmul.mubr.f32.vlgmr.msra.gmra.mrb[38].mxu0 %v19542_v53 }
 0x284   :  { %15026 = vmatmul.mubr.f32.vlgmr.msra.gmra.mrb[38].mxu1 %v19542_v53  ;;  %16782 = vmatpush3.bf16.msra.mxu0 %v19180_v5  ;;  %v21831_v53 = vld [vmem:[#allocation12_spill] sm:$0xff] }
 0x285   :  { %16806 = vmatpush3.bf16.msra.mxu1 %v19184_v54  ;;  %16783 = vmatprep.subr.bf16.mxu0 %v17401_v3 }
 0x286   :  { %16807 = vmatprep.subr.bf16.mxu1 %v17401_v3  ;;  %15060 = vmatprep.mubr.msk.f32.mxu0 %vm17402_vm0, %v21749_v29 }
 0x287   :  { %15095 = vmatprep.mubr.msk.f32.mxu1 %vm17402_vm0, %v21749_v29 }
 0x288   :  { %16785 = vmatpush3.bf16.msra.mxu0 %v19202_v13 }
 0x289   :  { %16809 = vmatpush3.bf16.msra.mxu1 %v19206_v19  ;;  %16786 = vmatprep.subr.bf16.mxu0 %v17401_v3 }
 0x28a   :  { %16810 = vmatprep.subr.bf16.mxu1 %v17401_v3 }
 0x28c   :  { %16788 = vmatpush3.bf16.msra.mxu0 %v19226_v42 }
 0x28d   :  { %16812 = vmatpush3.bf16.msra.mxu1 %v19230_v43  ;;  %16789 = vmatprep.subr.bf16.mxu0 %v17401_v3 }
 0x28e   :  { %16813 = vmatprep.subr.bf16.mxu1 %v17401_v3 }
 0x290   :  { %16791 = vmatpush3.bf16.msra.mxu0 %v19246_v48 }
 0x291   :  { %16815 = vmatpush3.bf16.msra.mxu1 %v19250_v62  ;;  %16792 = vmatprep.subr.bf16.mxu0 %v17401_v3  ;;  %v19943_v62 = vld [vmem:[%s21700_s0 + $0x8] sm:$0xff] }
 0x292   :  { %16816 = vmatprep.subr.bf16.mxu1 %v17401_v3 }
 0x294   :  { %16794 = vmatpush3.bf16.msra.mxu0 %v19266_v44 }
 0x295   :  { %16818 = vmatpush3.bf16.msra.mxu1 %v19270_v57  ;;  %16795 = vmatprep.subr.bf16.mxu0 %v17401_v3 }
 0x296   :  { %v19881_v5 = vpop.f32.mrb[26].mxu0  ;;  %16819 = vmatprep.subr.bf16.mxu1 %v17401_v3 }
 0x297   :  { %v14572_v54 = vpop.f32.mrb[27].mxu0  ;;  %v19884_v13 = vpop.f32.mrb[26].mxu1 }
 0x298   :  { %16797 = vmatpush3.bf16.msra.mxu0 %v19286_v15  ;;  %v14607_v19 = vpop.f32.mrb[27].mxu1 }
 0x299   :  { %16821 = vmatpush3.bf16.msra.mxu1 %v19290_v34  ;;  %16798 = vmatprep.subr.bf16.mxu0 %v17401_v3 }
 0x29a   :  { %16822 = vmatprep.subr.bf16.mxu1 %v17401_v3 }
 0x29c   :  { %16800 = vmatpush3.bf16.msra.mxu0 %v19310_v36  ;;  %v21811_v36 = vld [vmem:[#allocation24_spill] sm:$0xff] }
 0x29d   :  { %16824 = vmatpush3.bf16.msra.mxu1 %v19314_v56  ;;  %16801 = vmatprep.subr.bf16.mxu0 %v17401_v3  ;;  %v21814_v56 = vld [vmem:[#allocation35_spill] sm:$0xff] }
 0x29e   :  { %16825 = vmatprep.subr.bf16.mxu1 %v17401_v3 }
 0x2a0   :  { %16803 = vmatpush3.bf16.msra.mxu0 %v19330_v2  ;;  %v21815_v2 = vld [vmem:[#allocation36_spill] sm:$0xff] }
 0x2a1   :  { %16827 = vmatpush3.bf16.msra.mxu1 %v19334_v35  ;;  %16828 = vmatprep.subr.bf16.mxu0 %v17401_v3  ;;  %v21816_v35 = vld [vmem:[#allocation37_spill] sm:$0xff] }
 0x2a2   :  { %16852 = vmatprep.subr.bf16.mxu1 %v17401_v3 }
 0x2a3   :  { %15061 = vmatmul.mubr.f32.vlgmr.msra.gmra.mrb[40].mxu0 %v19085_v9 }
 0x2a4   :  { %15096 = vmatmul.mubr.f32.vlgmr.msra.gmra.mrb[40].mxu1 %v19085_v9  ;;  %16830 = vmatpush3.bf16.msra.mxu0 %v19350_v22  ;;  %v21817_v22 = vld [vmem:[#allocation38_spill] sm:$0xff] }
 0x2a5   :  { %16854 = vmatpush3.bf16.msra.mxu1 %v19354_v0  ;;  %16831 = vmatprep.subr.bf16.mxu0 %v17401_v3  ;;  %v21818_v0 = vld [vmem:[#allocation39_spill] sm:$0xff] }
 0x2a6   :  { %16855 = vmatprep.subr.bf16.mxu1 %v17401_v3  ;;  %15130 = vmatprep.mubr.msk.f32.mxu0 %vm17402_vm0, %v21749_v29 }
 0x2a7   :  { %15165 = vmatprep.mubr.msk.f32.mxu1 %vm17402_vm0, %v21749_v29 }
 0x2a8   :  { %16833 = vmatpush3.bf16.msra.mxu0 %v19372_v21  ;;  %v21819_v21 = vld [vmem:[#allocation40_spill] sm:$0xff] }
 0x2a9   :  { %16857 = vmatpush3.bf16.msra.mxu1 %v19376_v59  ;;  %16834 = vmatprep.subr.bf16.mxu0 %v17401_v3  ;;  %v21820_v59 = vld [vmem:[#allocation41_spill] sm:$0xff] }
 0x2aa   :  { %16858 = vmatprep.subr.bf16.mxu1 %v17401_v3 }
 0x2ac   :  { %16836 = vmatpush3.bf16.msra.mxu0 %v19396_v7 }
 0x2ad   :  { %16860 = vmatpush3.bf16.msra.mxu1 %v19400_v25  ;;  %16837 = vmatprep.subr.bf16.mxu0 %v17401_v3 }
 0x2ae   :  { %16861 = vmatprep.subr.bf16.mxu1 %v17401_v3 }
 0x2b0   :  { %16839 = vmatpush3.bf16.msra.mxu0 %v19416_v20 }
 0x2b1   :  { %16863 = vmatpush3.bf16.msra.mxu1 %v19420_v55  ;;  %16840 = vmatprep.subr.bf16.mxu0 %v17401_v3 }
 0x2b2   :  { %16864 = vmatprep.subr.bf16.mxu1 %v17401_v3 }
 0x2b4   :  { %16842 = vmatpush3.bf16.msra.mxu0 %v19436_v8  ;;  %v21821_v8 = vld [vmem:[#allocation16_spill] sm:$0xff] }
 0x2b5   :  { %16866 = vmatpush3.bf16.msra.mxu1 %v19440_v30  ;;  %16843 = vmatprep.subr.bf16.mxu0 %v17401_v3  ;;  %v21822_v30 = vld [vmem:[#allocation17_spill] sm:$0xff] }
 0x2b6   :  { %v19923_v9 = vpop.f32.mrb[28].mxu0  ;;  %16867 = vmatprep.subr.bf16.mxu1 %v17401_v3 }
 0x2b7   :  { %v14642_v42 = vpop.f32.mrb[29].mxu0  ;;  %v19926_v43 = vpop.f32.mrb[28].mxu1 }
 0x2b8   :  { %16845 = vmatpush3.bf16.msra.mxu0 %v19456_v40  ;;  %v14677_v48 = vpop.f32.mrb[29].mxu1  ;;  %v21823_v40 = vld [vmem:[#allocation8_spill] sm:$0xff] }
 0x2b9   :  { %16869 = vmatpush3.bf16.msra.mxu1 %v19460_v24  ;;  %16846 = vmatprep.subr.bf16.mxu0 %v17401_v3  ;;  %v21824_v24 = vld [vmem:[#allocation9_spill] sm:$0xff] }
 0x2ba   :  { %16870 = vmatprep.subr.bf16.mxu1 %v17401_v3 }
 0x2bc   :  { %16848 = vmatpush3.bf16.msra.mxu0 %v19480_v46  ;;  %v21825_v46 = vld [vmem:[#allocation18_spill] sm:$0xff] }
 0x2bd   :  { %16872 = vmatpush3.bf16.msra.mxu1 %v19484_v27  ;;  %16849 = vmatprep.subr.bf16.mxu0 %v17401_v3  ;;  %v21826_v27 = vld [vmem:[#allocation19_spill] sm:$0xff] }
 0x2be   :  { %16873 = vmatprep.subr.bf16.mxu1 %v17401_v3 }
 0x2c0   :  { %16851 = vmatpush3.bf16.msra.mxu0 %v19500_v63  ;;  %v21827_v63 = vld [vmem:[#allocation10_spill] sm:$0xff] }
 0x2c1   :  { %16875 = vmatpush3.bf16.msra.mxu1 %v19504_v50  ;;  %16876 = vmatprep.subr.bf16.mxu0 %v17401_v3  ;;  %v21828_v50 = vld [vmem:[#allocation11_spill] sm:$0xff] }
 0x2c2   :  { %16900 = vmatprep.subr.bf16.mxu1 %v17401_v3 }
 0x2c3   :  { %15131 = vmatmul.mubr.f32.vlgmr.msra.gmra.mrb[42].mxu0 %v19943_v62 }
 0x2c4   :  { %15166 = vmatmul.mubr.f32.vlgmr.msra.gmra.mrb[42].mxu1 %v19943_v62  ;;  %16878 = vmatpush3.bf16.msra.mxu0 %v19520_v26  ;;  %v21829_v26 = vld [vmem:[#allocation20_spill] sm:$0xff] }
 0x2c5   :  { %16902 = vmatpush3.bf16.msra.mxu1 %v19524_v10  ;;  %16879 = vmatprep.subr.bf16.mxu0 %v17401_v3  ;;  %v21830_v10 = vld [vmem:[#allocation21_spill] sm:$0xff] }
 0x2c6   :  { %16903 = vmatprep.subr.bf16.mxu1 %v17401_v3  ;;  %15200 = vmatprep.mubr.msk.f32.mxu0 %vm17402_vm0, %v21749_v29 }
 0x2c7   :  { %15235 = vmatprep.mubr.msk.f32.mxu1 %vm17402_vm0, %v21749_v29 }
 0x2c8   :  { %16881 = vmatpush3.bf16.msra.mxu0 %v19547_v51  ;;  %v21832_v51 = vld [vmem:[#allocation13_spill] sm:$0xff] }
 0x2c9   :  { %16905 = vmatpush3.bf16.msra.mxu1 %v19551_v31  ;;  %16882 = vmatprep.subr.bf16.mxu0 %v17401_v3  ;;  %v21833_v31 = vld [vmem:[#allocation22_spill] sm:$0xff] }
 0x2ca   :  { %16906 = vmatprep.subr.bf16.mxu1 %v17401_v3 }
 0x2cc   :  { %16884 = vmatpush3.bf16.msra.mxu0 %v19571_v58  ;;  %v21834_v58 = vld [vmem:[#allocation23_spill] sm:$0xff] }
 0x2cd   :  { %16908 = vmatpush3.bf16.msra.mxu1 %v19575_v61  ;;  %16885 = vmatprep.subr.bf16.mxu0 %v17401_v3 }
 0x2ce   :  { %16909 = vmatprep.subr.bf16.mxu1 %v17401_v3 }
 0x2d0   :  { %16887 = vmatpush3.bf16.msra.mxu0 %v19591_v33 }
 0x2d1   :  { %16911 = vmatpush3.bf16.msra.mxu1 %v19595_v47  ;;  %16888 = vmatprep.subr.bf16.mxu0 %v17401_v3 }
 0x2d2   :  { %16912 = vmatprep.subr.bf16.mxu1 %v17401_v3 }
 0x2d4   :  { %16890 = vmatpush3.bf16.msra.mxu0 %v19611_v37  ;;  %v21835_v37 = vld [vmem:[#allocation14_spill] sm:$0xff] }
 0x2d5   :  { %16914 = vmatpush3.bf16.msra.mxu1 %v19615_v52  ;;  %16891 = vmatprep.subr.bf16.mxu0 %v17401_v3 }
 0x2d6   :  { %v19970_v44 = vpop.f32.mrb[30].mxu0  ;;  %16915 = vmatprep.subr.bf16.mxu1 %v17401_v3 }
 0x2d7   :  { %v14712_v57 = vpop.f32.mrb[31].mxu0  ;;  %v19973_v15 = vpop.f32.mrb[30].mxu1 }
 0x2d8   :  { %16893 = vmatpush3.bf16.msra.mxu0 %v19631_v11  ;;  %v14747_v34 = vpop.f32.mrb[31].mxu1  ;;  %v21836_v11 = vld [vmem:[#allocation15_spill] sm:$0xff] }
 0x2d9   :  { %16917 = vmatpush3.bf16.msra.mxu1 %v19635_v23  ;;  %16894 = vmatprep.subr.bf16.mxu0 %v17401_v3  ;;  %v21837_v23 = vld [vmem:[#allocation42_spill] sm:$0xff] }
 0x2da   :  { %16918 = vmatprep.subr.bf16.mxu1 %v17401_v3 }
 0x2dc   :  { %16896 = vmatpush3.bf16.msra.mxu0 %v19655_v49  ;;  %v21812_v49 = vld [vmem:[#allocation25_spill] sm:$0xff] }
 0x2dd   :  { %16920 = vmatpush3.bf16.msra.mxu1 %v19659_v38  ;;  %16897 = vmatprep.subr.bf16.mxu0 %v17401_v3  ;;  %v21813_v38 = vld [vmem:[#allocation34_spill] sm:$0xff] }
 0x2de   :  { %16921 = vmatprep.subr.bf16.mxu1 %v17401_v3 }
 0x2e0   :  { %16899 = vmatpush3.bf16.msra.mxu0 %v19675_v39  ;;  %v21838_v39 = vld [vmem:[#allocation26_spill] sm:$0xff] }
 0x2e1   :  { %16923 = vmatpush3.bf16.msra.mxu1 %v19679_v28  ;;  %16924 = vmatprep.subr.bf16.mxu0 %v17401_v3  ;;  %v21839_v28 = vld [vmem:[#allocation27_spill] sm:$0xff] }
 0x2e2   :  { %16948 = vmatprep.subr.bf16.mxu1 %v17401_v3 }
 0x2e3   :  { %15201 = vmatmul.mubr.f32.vlgmr.msra.gmra.mrb[44].mxu0 %v19943_v62 }
 0x2e4   :  { %15236 = vmatmul.mubr.f32.vlgmr.msra.gmra.mrb[44].mxu1 %v19943_v62  ;;  %16926 = vmatpush3.bf16.msra.mxu0 %v21811_v36 }
 0x2e5   :  { %16950 = vmatpush3.bf16.msra.mxu1 %v21812_v49  ;;  %16927 = vmatprep.subr.bf16.mxu0 %v17401_v3 }
 0x2e6   :  { %16951 = vmatprep.subr.bf16.mxu1 %v17401_v3  ;;  %15270 = vmatprep.mubr.msk.f32.mxu0 %vm17402_vm0, %v21749_v29 }
 0x2e7   :  { %15305 = vmatprep.mubr.msk.f32.mxu1 %vm17402_vm0, %v21749_v29 }
 0x2e8   :  { %16929 = vmatpush3.bf16.msra.mxu0 %v21813_v38 }
 0x2e9   :  { %16953 = vmatpush3.bf16.msra.mxu1 %v21814_v56  ;;  %16930 = vmatprep.subr.bf16.mxu0 %v17401_v3 }
 0x2ea   :  { %16954 = vmatprep.subr.bf16.mxu1 %v17401_v3 }
 0x2ec   :  { %16932 = vmatpush3.bf16.msra.mxu0 %v21815_v2 }
 0x2ed   :  { %16956 = vmatpush3.bf16.msra.mxu1 %v21816_v35  ;;  %16933 = vmatprep.subr.bf16.mxu0 %v17401_v3 }
 0x2ee   :  { %16957 = vmatprep.subr.bf16.mxu1 %v17401_v3 }
 0x2f0   :  { %16935 = vmatpush3.bf16.msra.mxu0 %v21817_v22 }
 0x2f1   :  { %16959 = vmatpush3.bf16.msra.mxu1 %v21818_v0  ;;  %16936 = vmatprep.subr.bf16.mxu0 %v17401_v3 }
 0x2f2   :  { %16960 = vmatprep.subr.bf16.mxu1 %v17401_v3 }
 0x2f4   :  { %16938 = vmatpush3.bf16.msra.mxu0 %v21819_v21 }
 0x2f5   :  { %16962 = vmatpush3.bf16.msra.mxu1 %v21820_v59  ;;  %16939 = vmatprep.subr.bf16.mxu0 %v17401_v3 }
 0x2f6   :  { %v20012_v7 = vpop.f32.mrb[32].mxu0  ;;  %16963 = vmatprep.subr.bf16.mxu1 %v17401_v3 }
 0x2f7   :  { %v14782_v25 = vpop.f32.mrb[33].mxu0  ;;  %v20015_v20 = vpop.f32.mrb[32].mxu1 }
 0x2f8   :  { %16941 = vmatpush3.bf16.msra.mxu0 %v19801_v60  ;;  %v14817_v55 = vpop.f32.mrb[33].mxu1  ;;  %v21843_v60 = vld [vmem:[#allocation31_spill] sm:$0xff] }
 0x2f9   :  { %16965 = vmatpush3.bf16.msra.mxu1 %v19805_v1  ;;  %16942 = vmatprep.subr.bf16.mxu0 %v17401_v3  ;;  %v21844_v1 = vld [vmem:[#allocation32_spill] sm:$0xff] }
 0x2fa   :  { %16966 = vmatprep.subr.bf16.mxu1 %v17401_v3 }
 0x2fc   :  { %16944 = vmatpush3.bf16.msra.mxu0 %v19825_v45  ;;  %v21842_v45 = vld [vmem:[#allocation30_spill] sm:$0xff] }
 0x2fd   :  { %16968 = vmatpush3.bf16.msra.mxu1 %v19829_v41  ;;  %16945 = vmatprep.subr.bf16.mxu0 %v17401_v3  ;;  %v21841_v41 = vld [vmem:[#allocation29_spill] sm:$0xff] }
 0x2fe   :  { %16969 = vmatprep.subr.bf16.mxu1 %v17401_v3 }
 0x300   :  { %16947 = vmatpush3.bf16.msra.mxu0 %v19845_v12 }
 0x301   :  { %16971 = vmatpush3.bf16.msra.mxu1 %v19849_v17  ;;  %15308 = vmatprep.subr.mxu0 %v21749_v29 }
 0x302   :  { %15313 = vmatprep.subr.mxu1 %v21749_v29 }
 0x303   :  { %15271 = vmatmul.mubr.f32.vlgmr.msra.gmra.mrb[46].mxu0 %v19943_v62 }
 0x304   :  { %15306 = vmatmul.mubr.f32.vlgmr.msra.gmra.mrb[46].mxu1 %v19943_v62  ;;  %15310 = vmatprep.mubr.msk.f32.mxu0 %vm17402_vm0, %v21749_v29 }
 0x305   :  { %15315 = vmatprep.mubr.msk.f32.mxu1 %vm17402_vm0, %v21749_v29 }
 0x309   :  { %15309 = vmatpush3.xpose.msk.msra.mxu0 %vm3811_vm1, %v21821_v8 }
 0x30a   :  { %15314 = vmatpush3.xpose.msk.msra.mxu1 %vm3811_vm1, %v21822_v30  ;;  %15318 = vmatprep.subr.mxu0 %v21749_v29 }
 0x30b   :  { %15323 = vmatprep.subr.mxu1 %v21749_v29 }
 0x30c   :  { %15311 = vmatmul.mubr.msk.f32.vlgmr.msra.gmra.mrb[48].mxu0 %vm3811_vm1, %v21823_v40 }
 0x30d   :  { %15316 = vmatmul.mubr.msk.f32.vlgmr.msra.gmra.mrb[48].mxu1 %vm3811_vm1, %v21824_v24  ;;  %15319 = vmatpush3.xpose.msk.msra.mxu0 %vm3811_vm1, %v21825_v46 }
 0x30e   :  { %15324 = vmatpush3.xpose.msk.msra.mxu1 %vm3811_vm1, %v21826_v27  ;;  %15320 = vmatprep.mubr.msk.f32.mxu0 %vm17402_vm0, %v21749_v29 }
 0x30f   :  { %15325 = vmatprep.mubr.msk.f32.mxu1 %vm17402_vm0, %v21749_v29  ;;  %15328 = vmatprep.subr.mxu0 %v21749_v29 }
 0x310   :  { %15321 = vmatmul.mubr.msk.f32.vlgmr.msra.gmra.mrb[50].mxu0 %vm3811_vm1, %v21827_v63  ;;  %15333 = vmatprep.subr.mxu1 %v21749_v29 }
 0x311   :  { %15326 = vmatmul.mubr.msk.f32.vlgmr.msra.gmra.mrb[50].mxu1 %vm3811_vm1, %v21828_v50  ;;  %15329 = vmatpush3.xpose.msk.msra.mxu0 %vm3811_vm1, %v21829_v26 }
 0x312   :  { %15334 = vmatpush3.xpose.msk.msra.mxu1 %vm3811_vm1, %v21830_v10  ;;  %15330 = vmatprep.mubr.msk.f32.mxu0 %vm17402_vm0, %v21749_v29 }
 0x313   :  { %15335 = vmatprep.mubr.msk.f32.mxu1 %vm17402_vm0, %v21749_v29  ;;  %15338 = vmatprep.subr.mxu0 %v21749_v29 }
 0x314   :  { %15331 = vmatmul.mubr.msk.f32.vlgmr.msra.gmra.mrb[52].mxu0 %vm3811_vm1, %v21831_v53  ;;  %15343 = vmatprep.subr.mxu1 %v21749_v29 }
 0x315   :  { %15336 = vmatmul.mubr.msk.f32.vlgmr.msra.gmra.mrb[52].mxu1 %vm3811_vm1, %v21832_v51  ;;  %15339 = vmatpush3.xpose.msk.msra.mxu0 %vm3811_vm1, %v21833_v31 }
 0x316   :  { %15344 = vmatpush3.xpose.msk.msra.mxu1 %vm3811_vm1, %v21834_v58  ;;  %v20077_v61 = vpop.f32.mrb[34].mxu0  ;;  %15340 = vmatprep.mubr.msk.f32.mxu0 %vm17402_vm0, %v21749_v29 }
 0x317   :  { %v14852_v33 = vpop.f32.mrb[35].mxu0  ;;  %15345 = vmatprep.mubr.msk.f32.mxu1 %vm17402_vm0, %v21749_v29  ;;  %15348 = vmatprep.subr.mxu0 %v21749_v29  ;;  %v20084_v47 = vpop.f32.mrb[34].mxu1 }
 0x318   :  { %15341 = vmatmul.mubr.msk.f32.vlgmr.msra.gmra.mrb[54].mxu0 %vm3811_vm1, %v21835_v37  ;;  %15353 = vmatprep.subr.mxu1 %v21749_v29  ;;  %v14887_v52 = vpop.f32.mrb[35].mxu1 }
 0x319   :  { %15346 = vmatmul.mubr.msk.f32.vlgmr.msra.gmra.mrb[54].mxu1 %vm3811_vm1, %v21836_v11  ;;  %15349 = vmatpush3.xpose.msk.msra.mxu0 %vm3811_vm1, %v21837_v23 }
 0x31a   :  { %15354 = vmatpush3.xpose.msk.msra.mxu1 %vm3811_vm1, %v19822_v18  ;;  %15350 = vmatprep.mubr.msk.f32.mxu0 %vm17402_vm0, %v21749_v29 }
 0x31b   :  { %15355 = vmatprep.mubr.msk.f32.mxu1 %vm17402_vm0, %v21749_v29  ;;  %15358 = vmatprep.subr.mxu0 %v21749_v29 }
 0x31c   :  { %15351 = vmatmul.mubr.msk.f32.vlgmr.msra.gmra.mrb[56].mxu0 %vm3811_vm1, %v21838_v39  ;;  %15363 = vmatprep.subr.mxu1 %v21749_v29 }
 0x31d   :  { %15356 = vmatmul.mubr.msk.f32.vlgmr.msra.gmra.mrb[56].mxu1 %vm3811_vm1, %v21839_v28  ;;  %15359 = vmatpush3.xpose.msk.msra.mxu0 %vm3811_vm1, %v19881_v5 }
 0x31e   :  { %15364 = vmatpush3.xpose.msk.msra.mxu1 %vm3811_vm1, %v19884_v13  ;;  %15360 = vmatprep.mubr.msk.f32.mxu0 %vm17402_vm0, %v21749_v29 }
 0x31f   :  { %15365 = vmatprep.mubr.msk.f32.mxu1 %vm17402_vm0, %v21749_v29  ;;  %15368 = vmatprep.subr.mxu0 %v21749_v29 }
 0x320   :  { %15361 = vmatmul.mubr.msk.f32.vlgmr.msra.gmra.mrb[58].mxu0 %vm3811_vm1, %v21840_v6  ;;  %15373 = vmatprep.subr.mxu1 %v21749_v29 }
 0x321   :  { %15366 = vmatmul.mubr.msk.f32.vlgmr.msra.gmra.mrb[58].mxu1 %vm3811_vm1, %v21841_v41  ;;  %15369 = vmatpush3.xpose.msk.msra.mxu0 %vm3811_vm1, %v19923_v9 }
 0x322   :  { %15374 = vmatpush3.xpose.msk.msra.mxu1 %vm3811_vm1, %v19926_v43  ;;  %15370 = vmatprep.mubr.msk.f32.mxu0 %vm17402_vm0, %v21749_v29 }
 0x323   :  { %15375 = vmatprep.mubr.msk.f32.mxu1 %vm17402_vm0, %v21749_v29  ;;  %15378 = vmatprep.subr.mxu0 %v21749_v29 }
 0x324   :  { %15371 = vmatmul.mubr.msk.f32.vlgmr.msra.gmra.mrb[60].mxu0 %vm3811_vm1, %v21842_v45  ;;  %15383 = vmatprep.subr.mxu1 %v21749_v29 }
 0x325   :  { %15376 = vmatmul.mubr.msk.f32.vlgmr.msra.gmra.mrb[60].mxu1 %vm3811_vm1, %v21843_v60  ;;  %15379 = vmatpush3.xpose.msk.msra.mxu0 %vm3811_vm1, %v19970_v44 }
 0x326   :  { %15384 = vmatpush3.xpose.msk.msra.mxu1 %vm3811_vm1, %v19973_v15  ;;  %15380 = vmatprep.mubr.msk.f32.mxu0 %vm17402_vm0, %v21749_v29 }
 0x327   :  { %15385 = vmatprep.mubr.msk.f32.mxu1 %vm17402_vm0, %v21749_v29  ;;  %15388 = vmatprep.subr.mxu0 %v21749_v29 }
 0x328   :  { %15381 = vmatmul.mubr.msk.f32.vlgmr.msra.gmra.mrb[62].mxu0 %vm3811_vm1, %v21844_v1  ;;  %15393 = vmatprep.subr.mxu1 %v21749_v29 }
 0x329   :  { %15386 = vmatmul.mubr.msk.f32.vlgmr.msra.gmra.mrb[62].mxu1 %vm3811_vm1, %v21845_v16  ;;  %15389 = vmatpush3.msra.mxu0 %v20012_v7 }
 0x32a   :  { %15394 = vmatpush3.msra.mxu1 %v20015_v20  ;;  %15390 = vmatprep.mubr.msk.f32.mxu0 %vm17402_vm0, %v21749_v29 }
 0x32b   :  { %15398 = vmatprep.subr.mxu0 %v21749_v29  ;;  %15395 = vmatprep.mubr.msk.f32.mxu1 %vm17402_vm0, %v21749_v29 }
 0x32c   :  { %15403 = vmatprep.subr.mxu1 %v21749_v29 }
 0x336   :  { %v20155_v18 = vpop.f32.mrb[36].mxu0 }
 0x337   :  { %v14922_v4 = vpop.f32.mrb[37].mxu0  ;;  %v20157_v32 = vpop.f32.mrb[36].mxu1 }
 0x338   :  { %v14957_v14 = vpop.f32.mrb[37].mxu1 }
 0x356   :  { %v20159_v12 = vpop.f32.mrb[38].mxu0 }
 0x357   :  { %v14992_v17 = vpop.f32.mrb[39].mxu0  ;;  %v20161_v5 = vpop.f32.mrb[38].mxu1 }
 0x358   :  { %v15027_v54 = vpop.f32.mrb[39].mxu1 }
 0x376   :  { %v20163_v13 = vpop.f32.mrb[40].mxu0 }
 0x377   :  { %v15062_v19 = vpop.f32.mrb[41].mxu0  ;;  %v20165_v9 = vpop.f32.mrb[40].mxu1 }
 0x378   :  { %v15097_v42 = vpop.f32.mrb[41].mxu1 }
 0x396   :  { %v20167_v43 = vpop.f32.mrb[42].mxu0 }
 0x397   :  { %v15132_v48 = vpop.f32.mrb[43].mxu0  ;;  %v20169_v62 = vpop.f32.mrb[42].mxu1 }
 0x398   :  { %v15167_v44 = vpop.f32.mrb[43].mxu1 }
 0x3b6   :  { %v20171_v57 = vpop.f32.mrb[44].mxu0 }
 0x3b7   :  { %v15202_v15 = vpop.f32.mrb[45].mxu0  ;;  %v20173_v34 = vpop.f32.mrb[44].mxu1 }
 0x3b8   :  { %v15237_v36 = vpop.f32.mrb[45].mxu1 }
 0x3d6   :  { %v20175_v49 = vpop.f32.mrb[46].mxu0 }
 0x3d7   :  { %v15272_v38 = vpop.f32.mrb[47].mxu0  ;;  %v20177_v56 = vpop.f32.mrb[46].mxu1 }
 0x3d8   :  { %v15307_v2 = vpop.f32.mrb[47].mxu1 }
 0x3df   :  { %v3884_v35 = vpop.f32.mrb[48].mxu0 }
 0x3e0   :  { %v20179_v22 = vmul.f32 0.25, %v3884_v35  ;;  %v3960_v0 = vpop.f32.mrb[48].mxu1  ;;  %v15312_v21 = vpop.f32.mrb[49].mxu0 }
 0x3e1   :  { %v15317_v59 = vpop.f32.mrb[49].mxu1  ;;  %v20181_v25 = vmul.f32 0.25, %v3960_v0 }
 0x3e2   :  { %v5045_v55 = vsel %vm5044_vm2, %v20179_v22, -inf }
 0x3e3   :  { %5046 = vmax.xlane.f32.xlu0 %v5045_v55  ;;  %v4036_v8 = vpop.f32.mrb[50].mxu0  ;;  %v5048_v63 = vsel %vm5044_vm2, %v20181_v25, -inf }
 0x3e4   :  { %v4112_v30 = vpop.f32.mrb[50].mxu1  ;;  %v20185_v40 = vmul.f32 0.25, %v4036_v8  ;;  %v15322_v24 = vpop.f32.mrb[51].mxu0 }
 0x3e5   :  { %v15327_v46 = vpop.f32.mrb[51].mxu1  ;;  %v20187_v27 = vmul.f32 0.25, %v4112_v30 }
 0x3e6   :  { %v5051_v50 = vsel %vm5044_vm2, %v20185_v40, -inf }
 0x3e7   :  { %5049 = vmax.xlane.f32.xlu0 %v5048_v63  ;;  %5052 = vmax.xlane.f32.xlu1 %v5051_v50  ;;  %v4188_v26 = vpop.f32.mrb[52].mxu0  ;;  %v5054_v33 = vsel %vm5044_vm2, %v20187_v27, -inf }
 0x3e8   :  { %v4264_v10 = vpop.f32.mrb[52].mxu1  ;;  %v20193_v53 = vmul.f32 0.25, %v4188_v26  ;;  %v15332_v51 = vpop.f32.mrb[53].mxu0 }
 0x3e9   :  { %v15337_v31 = vpop.f32.mrb[53].mxu1  ;;  %v20195_v58 = vmul.f32 0.25, %v4264_v10 }
 0x3ea   :  { %v5057_v37 = vsel %vm5044_vm2, %v20193_v53, -inf }
 0x3eb   :  { %5055 = vmax.xlane.f32.xlu1 %v5054_v33  ;;  %5058 = vmax.xlane.f32.xlu0 %v5057_v37  ;;  %v4340_v52 = vpop.f32.mrb[54].mxu0  ;;  %v5060_v41 = vsel %vm5044_vm2, %v20195_v58, -inf }
 0x3ec   :  { %v4416_v11 = vpop.f32.mrb[54].mxu1  ;;  %v20201_v23 = vmul.f32 0.25, %v4340_v52  ;;  %v15342_v39 = vpop.f32.mrb[55].mxu0 }
 0x3ed   :  { %v15347_v28 = vpop.f32.mrb[55].mxu1  ;;  %v20203_v6 = vmul.f32 0.25, %v4416_v11 }
 0x3ee   :  { %v5063_v45 = vsel %vm5044_vm2, %v20201_v23, -inf }
 0x3ef   :  { %5061 = vmax.xlane.f32.xlu1 %v5060_v41  ;;  %5064 = vmax.xlane.f32.xlu0 %v5063_v45  ;;  %v4492_v60 = vpop.f32.mrb[56].mxu0  ;;  %v5066_v54 = vsel %vm5044_vm2, %v20203_v6, -inf }
 0x3f0   :  { %v4568_v1 = vpop.f32.mrb[56].mxu1  ;;  %v20209_v16 = vmul.f32 0.25, %v4492_v60  ;;  %v15352_v4 = vpop.f32.mrb[57].mxu0 }
 0x3f1   :  { %v15357_v14 = vpop.f32.mrb[57].mxu1  ;;  %v20211_v17 = vmul.f32 0.25, %v4568_v1 }
 0x3f2   :  { %v5069_v19 = vsel %vm5044_vm2, %v20209_v16, -inf }
 0x3f3   :  { %5067 = vmax.xlane.f32.xlu1 %v5066_v54  ;;  %5070 = vmax.xlane.f32.xlu0 %v5069_v19  ;;  %v4644_v42 = vpop.f32.mrb[58].mxu0  ;;  %v5072_v2 = vsel %vm5044_vm2, %v20211_v17, -inf }
 0x3f4   :  { %v4720_v48 = vpop.f32.mrb[58].mxu1  ;;  %v20217_v44 = vmul.f32 0.25, %v4644_v42  ;;  %v15362_v15 = vpop.f32.mrb[59].mxu0 }
 0x3f5   :  { %v15367_v36 = vpop.f32.mrb[59].mxu1  ;;  %v20219_v38 = vmul.f32 0.25, %v4720_v48 }
 0x3f6   :  { %v5075_v35 = vsel %vm5044_vm2, %v20217_v44, -inf }
 0x3f7   :  { %5073 = vmax.xlane.f32.xlu1 %v5072_v2  ;;  %5076 = vmax.xlane.f32.xlu0 %v5075_v35  ;;  %v4796_v0 = vpop.f32.mrb[60].mxu0  ;;  %v5078_v24 = vsel %vm5044_vm2, %v20219_v38, -inf }
 0x3f8   :  { %v4872_v21 = vpop.f32.mrb[60].mxu1  ;;  %v20225_v59 = vmul.f32 0.25, %v4796_v0  ;;  %v15372_v55 = vpop.f32.mrb[61].mxu0 }
 0x3f9   :  { %v15377_v8 = vpop.f32.mrb[61].mxu1  ;;  %v20227_v30 = vmul.f32 0.25, %v4872_v21 }
 0x3fa   :  { %v5081_v46 = vsel %vm5044_vm2, %v20225_v59, -inf }
 0x3fb   :  { %5079 = vmax.xlane.f32.xlu1 %v5078_v24  ;;  %5082 = vmax.xlane.f32.xlu0 %v5081_v46  ;;  %v4948_v63 = vpop.f32.mrb[62].mxu0  ;;  %v5084_v33 = vsel %vm5044_vm2, %v20227_v30, -inf }
 0x3fc   :  { %v5024_v50 = vpop.f32.mrb[62].mxu1  ;;  %v20233_v26 = vmul.f32 0.25, %v4948_v63  ;;  %v15382_v10 = vpop.f32.mrb[63].mxu0 }
 0x3fd   :  { %v15387_v51 = vpop.f32.mrb[63].mxu1  ;;  %v20235_v31 = vmul.f32 0.25, %v5024_v50 }
 0x3fe   :  { %v5087_v37 = vsel %vm5044_vm2, %v20233_v26, -inf }
 0x3ff   :  { %5085 = vmax.xlane.f32.xlu1 %v5084_v33  ;;  %5088 = vmax.xlane.f32.xlu0 %v5087_v37  ;;  %v5090_v52 = vsel %vm5044_vm2, %v20235_v31, -inf }
 0x403   :  { %5091 = vmax.xlane.f32.xlu1 %v5090_v52 }
 0x470   :  { %v5047_v11 = vpop.xlane.xlu0 %5046 }
 0x471   :  { %v5093_v39 = vsub.f32 %v20179_v22, %v5047_v11 }
 0x473   :  { %v5109_v28 = vmul.f32 1.442695, %v5093_v39 }
 0x474   :  { %v5050_v41 = vpop.xlane.xlu0 %5049  ;;  %v5053_v45 = vpop.xlane.xlu1 %5052 }
 0x475   :  { %17167 = vpow2.f32 %v5109_v28  ;;  %v5094_v60 = vsub.f32 %v20181_v25, %v5050_v41  ;;  %v5095_v1 = vsub.f32 %v20185_v40, %v5053_v45 }
 0x477   :  { %v5111_v4 = vmul.f32 1.442695, %v5094_v60  ;;  %v5113_v14 = vmul.f32 1.442695, %v5095_v1 }
 0x478   :  { %v5056_v54 = vpop.xlane.xlu1 %5055  ;;  %v5059_v19 = vpop.xlane.xlu0 %5058 }
 0x479   :  { %17169 = vpow2.f32 %v5111_v4  ;;  %v5096_v42 = vsub.f32 %v20187_v27, %v5056_v54  ;;  %v5097_v48 = vsub.f32 %v20193_v53, %v5059_v19 }
 0x47a   :  { %17171 = vpow2.f32 %v5113_v14 }
 0x47b   :  { %v5115_v15 = vmul.f32 1.442695, %v5096_v42  ;;  %v5117_v22 = vmul.f32 1.442695, %v5097_v48 }
 0x47c   :  { %v5062_v36 = vpop.xlane.xlu1 %5061  ;;  %v5065_v2 = vpop.xlane.xlu0 %5064 }
 0x47d   :  { %17173 = vpow2.f32 %v5115_v15  ;;  %v5098_v35 = vsub.f32 %v20195_v58, %v5062_v36  ;;  %v5099_v25 = vsub.f32 %v20201_v23, %v5065_v2 }
 0x47e   :  { %17175 = vpow2.f32 %v5117_v22 }
 0x47f   :  { %v20250_v40 = vpop.eup %17167  ;;  %v5119_v0 = vmul.f32 1.442695, %v5098_v35  ;;  %v5121_v21 = vmul.f32 1.442695, %v5099_v25 }
 0x480   :  { %v5068_v55 = vpop.xlane.xlu1 %5067  ;;  %v5071_v8 = vpop.xlane.xlu0 %5070  ;;  %v5141_v27 = vsel %vm5044_vm2, %v20250_v40, 0.0 }
 0x481   :  { %17177 = vpow2.f32 %v5119_v0  ;;  %v5100_v53 = vsub.f32 %v20203_v6, %v5068_v55  ;;  %v5101_v24 = vsub.f32 %v20209_v16, %v5071_v8  ;;  %5142 = vadd.xlane.f32.xlu0 %v5141_v27 }
 0x482   :  { %17179 = vpow2.f32 %v5121_v21 }
 0x483   :  { %v20256_v58 = vpop.eup %17169  ;;  %v5123_v23 = vmul.f32 1.442695, %v5100_v53  ;;  %v5125_v46 = vmul.f32 1.442695, %v5101_v24 }
 0x484   :  { %v20258_v63 = vpop.eup %17171  ;;  %v5074_v50 = vpop.xlane.xlu1 %5073  ;;  %v5144_v51 = vsel %vm5044_vm2, %v20256_v58, 0.0 }
 0x485   :  { %v5077_v10 = vpop.xlane.xlu0 %5076  ;;  %17181 = vpow2.f32 %v5123_v23  ;;  %v5102_v33 = vsub.f32 %v20211_v17, %v5074_v50  ;;  %5145 = vadd.xlane.f32.xlu1 %v5144_v51  ;;  %v5147_v16 = vsel %vm5044_vm2, %v20258_v63, 0.0 }
 0x486   :  { %v5103_v6 = vsub.f32 %v20217_v44, %v5077_v10  ;;  %17183 = vpow2.f32 %v5125_v46  ;;  %5148 = vadd.xlane.f32.xlu0 %v5147_v16 }
 0x487   :  { %v20266_v37 = vpop.eup %17173  ;;  %v5127_v52 = vmul.f32 1.442695, %v5102_v33 }
 0x488   :  { %v5129_v11 = vmul.f32 1.442695, %v5103_v6  ;;  %v20268_v39 = vpop.eup %17175  ;;  %v5080_v28 = vpop.xlane.xlu1 %5079  ;;  %v5150_v45 = vsel %vm5044_vm2, %v20266_v37, 0.0 }
 0x489   :  { %v5083_v41 = vpop.xlane.xlu0 %5082  ;;  %17185 = vpow2.f32 %v5127_v52  ;;  %v5104_v17 = vsub.f32 %v20219_v38, %v5080_v28  ;;  %5151 = vadd.xlane.f32.xlu1 %v5150_v45  ;;  %v5153_v60 = vsel %vm5044_vm2, %v20268_v39, 0.0 }
 0x48a   :  { %v5105_v44 = vsub.f32 %v20225_v59, %v5083_v41  ;;  %17187 = vpow2.f32 %v5129_v11  ;;  %5154 = vadd.xlane.f32.xlu0 %v5153_v60 }
 0x48b   :  { %v20276_v1 = vpop.eup %17177  ;;  %v5131_v4 = vmul.f32 1.442695, %v5104_v17 }
 0x48c   :  { %v5133_v14 = vmul.f32 1.442695, %v5105_v44  ;;  %v20278_v54 = vpop.eup %17179  ;;  %v5086_v19 = vpop.xlane.xlu1 %5085  ;;  %v5156_v48 = vsel %vm5044_vm2, %v20276_v1, 0.0 }
 0x48d   :  { %v5089_v42 = vpop.xlane.xlu0 %5088  ;;  %17189 = vpow2.f32 %v5131_v4  ;;  %v5106_v38 = vsub.f32 %v20227_v30, %v5086_v19  ;;  %5157 = vadd.xlane.f32.xlu1 %v5156_v48  ;;  %v5159_v15 = vsel %vm5044_vm2, %v20278_v54, 0.0 }
 0x48e   :  { %v5107_v59 = vsub.f32 %v20233_v26, %v5089_v42  ;;  %17191 = vpow2.f32 %v5133_v14  ;;  %5160 = vadd.xlane.f32.xlu0 %v5159_v15 }
 0x48f   :  { %v20286_v22 = vpop.eup %17181  ;;  %v5135_v36 = vmul.f32 1.442695, %v5106_v38 }
 0x490   :  { %v5137_v2 = vmul.f32 1.442695, %v5107_v59  ;;  %v20288_v35 = vpop.eup %17183  ;;  %v5092_v25 = vpop.xlane.xlu1 %5091  ;;  %v5162_v0 = vsel %vm5044_vm2, %v20286_v22, 0.0 }
 0x491   :  { %17193 = vpow2.f32 %v5135_v36  ;;  %v5108_v30 = vsub.f32 %v20235_v31, %v5092_v25  ;;  %5163 = vadd.xlane.f32.xlu1 %v5162_v0  ;;  %v5165_v26 = vsel %vm5044_vm2, %v20288_v35, 0.0 }
 0x492   :  { %17195 = vpow2.f32 %v5137_v2  ;;  %5166 = vadd.xlane.f32.xlu0 %v5165_v26 }
 0x493   :  { %v20295_v21 = vpop.eup %17185  ;;  %v5139_v55 = vmul.f32 1.442695, %v5108_v30 }
 0x494   :  { %v20297_v8 = vpop.eup %17187  ;;  %v5168_v27 = vsel %vm5044_vm2, %v20295_v21, 0.0 }
 0x495   :  { %17197 = vpow2.f32 %v5139_v55  ;;  %5169 = vadd.xlane.f32.xlu1 %v5168_v27  ;;  %v5171_v53 = vsel %vm5044_vm2, %v20297_v8, 0.0 }
 0x496   :  { %5172 = vadd.xlane.f32.xlu0 %v5171_v53 }
 0x497   :  { %v20303_v31 = vpop.eup %17189 }
 0x498   :  { %v20305_v24 = vpop.eup %17191  ;;  %v5174_v23 = vsel %vm5044_vm2, %v20303_v31, 0.0 }
 0x499   :  { %5175 = vadd.xlane.f32.xlu1 %v5174_v23  ;;  %v5177_v46 = vsel %vm5044_vm2, %v20305_v24, 0.0 }
 0x49a   :  { %5178 = vadd.xlane.f32.xlu0 %v5177_v46 }
 0x49b   :  { %v20311_v50 = vpop.eup %17193 }
 0x49c   :  { %v20313_v10 = vpop.eup %17195  ;;  %v5180_v51 = vsel %vm5044_vm2, %v20311_v50, 0.0 }
 0x49d   :  { %5181 = vadd.xlane.f32.xlu1 %v5180_v51  ;;  %v5183_v33 = vsel %vm5044_vm2, %v20313_v10, 0.0 }
 0x49e   :  { %5184 = vadd.xlane.f32.xlu0 %v5183_v33 }
 0x49f   :  { %v20319_v6 = vpop.eup %17197 }
 0x4a0   :  { %v5186_v16 = vsel %vm5044_vm2, %v20319_v6, 0.0 }
 0x4a1   :  { %5187 = vadd.xlane.f32.xlu1 %v5186_v16 }
 0x50e   :  { %v5143_v52 = vpop.xlane.xlu0 %5142 }
 0x50f   :  { %17199 = vrcp.f32 %v5143_v52 }
 0x512   :  { %v5146_v11 = vpop.xlane.xlu1 %5145 }
 0x513   :  { %17201 = vrcp.f32 %v5146_v11  ;;  %v5149_v28 = vpop.xlane.xlu0 %5148  ;;  %v435_v11 = vld [vmem:[%s21704_s4] sm:$0xff] }
 0x514   :  { %17203 = vrcp.f32 %v5149_v28 }
 0x516   :  { %v5152_v41 = vpop.xlane.xlu1 %5151 }
 0x517   :  { %17205 = vrcp.f32 %v5152_v41  ;;  %v5155_v45 = vpop.xlane.xlu0 %5154 }
 0x518   :  { %17207 = vrcp.f32 %v5155_v45 }
 0x519   :  { %v17200_v17 = vpop.eup %17199 }
 0x51a   :  { %v20324_v44 = vmul.f32 %v17200_v17, %v20250_v40  ;;  %v5158_v60 = vpop.xlane.xlu1 %5157 }
 0x51b   :  { %17209 = vrcp.f32 %v5158_v60  ;;  %v5161_v4 = vpop.xlane.xlu0 %5160 }
 0x51c   :  { %17211 = vrcp.f32 %v5161_v4  ;;  %15391 = vmatmul.mubr.msk.f32.vlgmr.msra.gmra.mrb[64].mxu0 %vm5044_vm2, %v20324_v44 }
 0x51d   :  { %v17202_v14 = vpop.eup %17201  ;;  %15399 = vmatpush3.msra.mxu0 %v20077_v61  ;;  %15400 = vmatprep.mubr.msk.f32.mxu0 %vm17402_vm0, %v21749_v29 }
 0x51e   :  { %v17204_v19 = vpop.eup %17203  ;;  %v20332_v42 = vmul.f32 %v17202_v14, %v20256_v58  ;;  %v5164_v48 = vpop.xlane.xlu1 %5163  ;;  %15408 = vmatprep.subr.mxu0 %v21749_v29  ;;  %v439_v14 = vld [vmem:[%s21704_s4 + $0x20] sm:$0xff] }
 0x51f   :  { %v20336_v40 = vmul.f32 %v17204_v19, %v20258_v63  ;;  %17213 = vrcp.f32 %v5164_v48  ;;  %v5167_v38 = vpop.xlane.xlu0 %5166  ;;  %v440_v19 = vld [vmem:[%s21704_s4 + $0x28] sm:$0xff] }
 0x520   :  { %17215 = vrcp.f32 %v5167_v38  ;;  %15396 = vmatmul.mubr.msk.f32.vlgmr.msra.gmra.mrb[64].mxu1 %vm5044_vm2, %v20332_v42  ;;  %v20489_v48 = vpack.c.bf16 %v440_v19, %v439_v14  ;;  %v441_v38 = vld [vmem:[%s21704_s4 + $0x30] sm:$0xff] }
 0x521   :  { %v17206_v59 = vpop.eup %17205  ;;  %15401 = vmatmul.mubr.msk.f32.vlgmr.msra.gmra.mrb[66].mxu0 %vm5044_vm2, %v20336_v40  ;;  %15404 = vmatpush3.msra.mxu1 %v20084_v47 }
 0x522   :  { %v17208_v58 = vpop.eup %17207  ;;  %v20344_v15 = vmul.f32 %v17206_v59, %v20266_v37  ;;  %15409 = vmatpush3.msra.mxu0 %v20155_v18  ;;  %v5170_v63 = vpop.xlane.xlu1 %5169  ;;  %15405 = vmatprep.mubr.msk.f32.mxu1 %vm17402_vm0, %v21749_v29  ;;  %v442_v59 = vld [vmem:[%s21704_s4 + $0x38] sm:$0xff] }
 0x523   :  { %v20350_v36 = vmul.f32 %v17208_v58, %v20268_v39  ;;  %17217 = vrcp.f32 %v5170_v63  ;;  %v5173_v2 = vpop.xlane.xlu0 %5172  ;;  %15410 = vmatprep.mubr.msk.f32.mxu0 %vm17402_vm0, %v21749_v29  ;;  %15413 = vmatprep.subr.mxu1 %v21749_v29  ;;  %v443_v63 = vld [vmem:[%s21704_s4 + $0x40] sm:$0xff] }
 0x524   :  { %17219 = vrcp.f32 %v5173_v2  ;;  %15418 = vmatprep.subr.mxu0 %v21749_v29  ;;  %15406 = vmatmul.mubr.msk.f32.vlgmr.msra.gmra.mrb[66].mxu1 %vm5044_vm2, %v20344_v15  ;;  %v444_v2 = vld [vmem:[%s21704_s4 + $0x48] sm:$0xff] }
 0x525   :  { %v17210_v37 = vpop.eup %17209  ;;  %15411 = vmatmul.mubr.msk.f32.vlgmr.msra.gmra.mrb[68].mxu0 %vm5044_vm2, %v20350_v36  ;;  %15414 = vmatpush3.msra.mxu1 %v20157_v32 }
 0x526   :  { %v17212_v39 = vpop.eup %17211  ;;  %v20362_v25 = vmul.f32 %v17210_v37, %v20276_v1  ;;  %15419 = vmatpush3.msra.mxu0 %v20159_v12  ;;  %v5176_v0 = vpop.xlane.xlu1 %5175  ;;  %15415 = vmatprep.mubr.msk.f32.mxu1 %vm17402_vm0, %v21749_v29 }
 0x527   :  { %v20368_v30 = vmul.f32 %v17212_v39, %v20278_v54  ;;  %17221 = vrcp.f32 %v5176_v0  ;;  %v5179_v26 = vpop.xlane.xlu0 %5178  ;;  %15420 = vmatprep.mubr.msk.f32.mxu0 %vm17402_vm0, %v21749_v29  ;;  %15423 = vmatprep.subr.mxu1 %v21749_v29  ;;  %v20512_v0 = vpack.c.bf16 %v442_v59, %v441_v38  ;;  %v449_v59 = vld [vmem:[%s21704_s4 + $0x70] sm:$0xff] }
 0x528   :  { %17223 = vrcp.f32 %v5179_v26  ;;  %15428 = vmatprep.subr.mxu0 %v21749_v29  ;;  %15416 = vmatmul.mubr.msk.f32.vlgmr.msra.gmra.mrb[68].mxu1 %vm5044_vm2, %v20362_v25 }
 0x529   :  { %v17214_v1 = vpop.eup %17213  ;;  %15421 = vmatmul.mubr.msk.f32.vlgmr.msra.gmra.mrb[70].mxu0 %vm5044_vm2, %v20368_v30  ;;  %15424 = vmatpush3.msra.mxu1 %v20161_v5 }
 0x52a   :  { %v17216_v54 = vpop.eup %17215  ;;  %v20380_v55 = vmul.f32 %v17214_v1, %v20286_v22  ;;  %15429 = vmatpush3.msra.mxu0 %v20163_v13  ;;  %v5182_v27 = vpop.xlane.xlu1 %5181  ;;  %15425 = vmatprep.mubr.msk.f32.mxu1 %vm17402_vm0, %v21749_v29  ;;  %v20516_v1 = vpack.c.bf16 %v444_v2, %v443_v63  ;;  %v450_v63 = vld [vmem:[%s21704_s4 + $0x78] sm:$0xff] }
 0x52b   :  { %v20386_v53 = vmul.f32 %v17216_v54, %v20288_v35  ;;  %17225 = vrcp.f32 %v5182_v27  ;;  %v5185_v23 = vpop.xlane.xlu0 %5184  ;;  %15430 = vmatprep.mubr.msk.f32.mxu0 %vm17402_vm0, %v21749_v29  ;;  %15433 = vmatprep.subr.mxu1 %v21749_v29  ;;  %v445_v27 = vld [vmem:[%s21704_s4 + $0x50] sm:$0xff] }
 0x52c   :  { %17227 = vrcp.f32 %v5185_v23  ;;  %15438 = vmatprep.subr.mxu0 %v21749_v29  ;;  %15426 = vmatmul.mubr.msk.f32.vlgmr.msra.gmra.mrb[70].mxu1 %vm5044_vm2, %v20380_v55  ;;  %v446_v23 = vld [vmem:[%s21704_s4 + $0x58] sm:$0xff] }
 0x52d   :  { %v17218_v22 = vpop.eup %17217  ;;  %15431 = vmatmul.mubr.msk.f32.vlgmr.msra.gmra.mrb[72].mxu0 %vm5044_vm2, %v20386_v53  ;;  %15434 = vmatpush3.msra.mxu1 %v20165_v9 }
 0x52e   :  { %v17220_v35 = vpop.eup %17219  ;;  %v20398_v46 = vmul.f32 %v17218_v22, %v20295_v21  ;;  %15439 = vmatpush3.msra.mxu0 %v20167_v43  ;;  %v5188_v51 = vpop.xlane.xlu1 %5187  ;;  %15435 = vmatprep.mubr.msk.f32.mxu1 %vm17402_vm0, %v21749_v29 }
 0x52f   :  { %v20404_v33 = vmul.f32 %v17220_v35, %v20297_v8  ;;  %17229 = vrcp.f32 %v5188_v51  ;;  %15440 = vmatprep.mubr.msk.f32.mxu0 %vm17402_vm0, %v21749_v29  ;;  %15443 = vmatprep.subr.mxu1 %v21749_v29 }
 0x530   :  { %15448 = vmatprep.subr.mxu0 %v21749_v29  ;;  %15436 = vmatmul.mubr.msk.f32.vlgmr.msra.gmra.mrb[72].mxu1 %vm5044_vm2, %v20398_v46 }
 0x531   :  { %v17222_v21 = vpop.eup %17221  ;;  %15441 = vmatmul.mubr.msk.f32.vlgmr.msra.gmra.mrb[74].mxu0 %vm5044_vm2, %v20404_v33  ;;  %15444 = vmatpush3.msra.mxu1 %v20169_v62 }
 0x532   :  { %v17224_v16 = vpop.eup %17223  ;;  %v20416_v8 = vmul.f32 %v17222_v21, %v20303_v31  ;;  %15449 = vmatpush3.msra.mxu0 %v20171_v57  ;;  %15445 = vmatprep.mubr.msk.f32.mxu1 %vm17402_vm0, %v21749_v29  ;;  %v436_v31 = vld [vmem:[%s21704_s4 + $0x8] sm:$0xff]  ;;  %v447_v21 = vld [vmem:[%s21704_s4 + $0x60] sm:$0xff] }
 0x533   :  { %v20422_v52 = vmul.f32 %v17224_v16, %v20305_v24  ;;  %15450 = vmatprep.mubr.msk.f32.mxu0 %vm17402_vm0, %v21749_v29  ;;  %15453 = vmatprep.subr.mxu1 %v21749_v29  ;;  %v20445_v45 = vpack.c.bf16 %v436_v31, %v435_v11  ;;  %v448_v16 = vld [vmem:[%s21704_s4 + $0x68] sm:$0xff] }
 0x534   :  { %15458 = vmatprep.subr.mxu0 %v21749_v29  ;;  %15446 = vmatmul.mubr.msk.f32.vlgmr.msra.gmra.mrb[74].mxu1 %vm5044_vm2, %v20416_v8 }
 0x535   :  { %v17226_v24 = vpop.eup %17225  ;;  %15451 = vmatmul.mubr.msk.f32.vlgmr.msra.gmra.mrb[76].mxu0 %vm5044_vm2, %v20422_v52  ;;  %15454 = vmatpush3.msra.mxu1 %v20173_v34 }
 0x536   :  { %v17228_v28 = vpop.eup %17227  ;;  %v20440_v41 = vmul.f32 %v17226_v24, %v20311_v50  ;;  %15459 = vmatpush3.msra.mxu0 %v20175_v49  ;;  %15455 = vmatprep.mubr.msk.f32.mxu1 %vm17402_vm0, %v21749_v29 }
 0x537   :  { %v20448_v17 = vmul.f32 %v17228_v28, %v20313_v10  ;;  %15460 = vmatprep.mubr.msk.f32.mxu0 %vm17402_vm0, %v21749_v29  ;;  %15463 = vmatprep.subr.mxu1 %v21749_v29  ;;  %v437_v10 = vld [vmem:[%s21704_s4 + $0x10] sm:$0xff]  ;;  %v20547_v28 = vpack.c.bf16 %v446_v23, %v445_v27  ;;  %v20580_v23 = vpack.c.bf16 %v450_v63, %v449_v59 }
 0x538   :  { %15456 = vmatmul.mubr.msk.f32.vlgmr.msra.gmra.mrb[76].mxu1 %vm5044_vm2, %v20440_v41  ;;  %16972 = vmatprep.subr.bf16.mxu0 %v17401_v3 }
 0x539   :  { %v17230_v50 = vpop.eup %17229  ;;  %15461 = vmatmul.mubr.msk.f32.vlgmr.msra.gmra.mrb[78].mxu0 %vm5044_vm2, %v20448_v17  ;;  %15464 = vmatpush3.msra.mxu1 %v20177_v56 }
 0x53a   :  { %v20460_v60 = vmul.f32 %v17230_v50, %v20319_v6  ;;  %15465 = vmatprep.mubr.msk.f32.mxu1 %vm17402_vm0, %v21749_v29  ;;  %16974 = vmatpush3.bf16.msra.mxu0 %v20445_v45  ;;  %v438_v6 = vld [vmem:[%s21704_s4 + $0x18] sm:$0xff] }
 0x53b   :  { %15472 = vmatprep.mubr.msk.f32.mxu0 %vm17402_vm0, %v21749_v29  ;;  %16975 = vmatprep.subr.bf16.mxu1 %v17401_v3  ;;  %v20479_v4 = vpack.c.bf16 %v438_v6, %v437_v10  ;;  %v20554_v6 = vpack.c.bf16 %v448_v16, %v447_v21 }
 0x53c   :  { %15466 = vmatmul.mubr.msk.f32.vlgmr.msra.gmra.mrb[78].mxu1 %vm5044_vm2, %v20460_v60  ;;  %16978 = vmatprep.subr.bf16.mxu0 %v17401_v3 }
 0x53d   :  { %15479 = vmatprep.mubr.msk.f32.mxu1 %vm17402_vm0, %v21749_v29  ;;  %16977 = vmatpush3.bf16.msra.mxu1 %v20479_v4 }
 0x53e   :  { %16981 = vmatprep.subr.bf16.mxu1 %v17401_v3 }
 0x5ef   :  { %v20497_v58 = vpop.f32.mrb[64].mxu0 }
 0x5f0   :  { %v15392_v37 = vpop.f32.mrb[65].mxu0  ;;  %15473 = vmatmul.mubr.msk.f32.vlgmr.msra.gmra.mrb[80].mxu0 %vm3811_vm1, %v20497_v58  ;;  %v7573_v39 = vmul.f32 %v20497_v58, %v20497_v58 }
 0x5f1   :  { %16980 = vmatpush3.bf16.msra.mxu0 %v20489_v48  ;;  %15486 = vmatprep.mubr.msk.f32.mxu0 %vm17402_vm0, %v21749_v29 }
 0x5f2   :  { %v7589_v26 = vsel %vm3811_vm1, %v7573_v39, 0.0  ;;  %16984 = vmatprep.subr.bf16.mxu0 %v17401_v3 }
 0x5f3   :  { %v20518_v54 = vpop.f32.mrb[64].mxu1  ;;  %7590 = vadd.xlane.f32.xlu0 %v7589_v26 }
 0x5f4   :  { %v20526_v22 = vpop.f32.mrb[66].mxu0  ;;  %v15397_v35 = vpop.f32.mrb[65].mxu1  ;;  %15480 = vmatmul.mubr.msk.f32.vlgmr.msra.gmra.mrb[80].mxu1 %vm3811_vm1, %v20518_v54  ;;  %v7574_v51 = vmul.f32 %v20518_v54, %v20518_v54 }
 0x5f5   :  { %v15402_v11 = vpop.f32.mrb[67].mxu0  ;;  %15487 = vmatmul.mubr.msk.f32.vlgmr.msra.gmra.mrb[82].mxu0 %vm3811_vm1, %v20526_v22  ;;  %16983 = vmatpush3.bf16.msra.mxu1 %v20512_v0  ;;  %v7575_v31 = vmul.f32 %v20526_v22, %v20526_v22 }
 0x5f6   :  { %16986 = vmatpush3.bf16.msra.mxu0 %v20516_v1  ;;  %v7592_v24 = vsel %vm3811_vm1, %v7574_v51, 0.0  ;;  %15493 = vmatprep.mubr.msk.f32.mxu1 %vm17402_vm0, %v21749_v29 }
 0x5f7   :  { %7593 = vadd.xlane.f32.xlu1 %v7592_v24  ;;  %v20549_v50 = vpop.f32.mrb[66].mxu1  ;;  %v7595_v10 = vsel %vm3811_vm1, %v7575_v31, 0.0  ;;  %15500 = vmatprep.mubr.msk.f32.mxu0 %vm17402_vm0, %v21749_v29 }
 0x5f8   :  { %7596 = vadd.xlane.f32.xlu0 %v7595_v10  ;;  %v20556_v14 = vpop.f32.mrb[68].mxu0  ;;  %v15407_v19 = vpop.f32.mrb[67].mxu1  ;;  %15494 = vmatmul.mubr.msk.f32.vlgmr.msra.gmra.mrb[82].mxu1 %vm3811_vm1, %v20549_v50  ;;  %v7576_v38 = vmul.f32 %v20549_v50, %v20549_v50 }
 0x5f9   :  { %v15412_v2 = vpop.f32.mrb[69].mxu0  ;;  %15501 = vmatmul.mubr.msk.f32.vlgmr.msra.gmra.mrb[84].mxu0 %vm3811_vm1, %v20556_v14  ;;  %16987 = vmatprep.subr.bf16.mxu1 %v17401_v3  ;;  %v7577_v37 = vmul.f32 %v20556_v14, %v20556_v14 }
 0x5fa   :  { %16990 = vmatprep.subr.bf16.mxu0 %v17401_v3  ;;  %16989 = vmatpush3.bf16.msra.mxu1 %v20547_v28  ;;  %v7598_v39 = vsel %vm3811_vm1, %v7576_v38, 0.0 }
 0x5fb   :  { %16992 = vmatpush3.bf16.msra.mxu0 %v20554_v6  ;;  %7599 = vadd.xlane.f32.xlu1 %v7598_v39  ;;  %v20577_v26 = vpop.f32.mrb[68].mxu1  ;;  %v7601_v27 = vsel %vm3811_vm1, %v7577_v37, 0.0 }
 0x5fc   :  { %15507 = vmatprep.mubr.msk.f32.mxu1 %vm17402_vm0, %v21749_v29  ;;  %7602 = vadd.xlane.f32.xlu0 %v7601_v27  ;;  %v20584_v35 = vpop.f32.mrb[70].mxu0  ;;  %v15417_v51 = vpop.f32.mrb[69].mxu1  ;;  %v7578_v21 = vmul.f32 %v20577_v26, %v20577_v26 }
 0x5fd   :  { %15514 = vmatprep.mubr.msk.f32.mxu0 %vm17402_vm0, %v21749_v29  ;;  %v15422_v16 = vpop.f32.mrb[71].mxu0  ;;  %15508 = vmatmul.mubr.msk.f32.vlgmr.msra.gmra.mrb[84].mxu1 %vm3811_vm1, %v20577_v26  ;;  %v7579_v11 = vmul.f32 %v20584_v35, %v20584_v35 }
 0x5fe   :  { %15515 = vmatmul.mubr.msk.f32.vlgmr.msra.gmra.mrb[86].mxu0 %vm3811_vm1, %v20584_v35  ;;  %16993 = vmatprep.subr.bf16.mxu1 %v17401_v3  ;;  %v7604_v31 = vsel %vm3811_vm1, %v7578_v21, 0.0 }
 0x5ff   :  { %16996 = vmatprep.subr.bf16.mxu0 %v17401_v3  ;;  %16995 = vmatpush3.bf16.msra.mxu1 %v20580_v23  ;;  %v20600_v24 = vpop.f32.mrb[70].mxu1  ;;  %v7607_v10 = vsel %vm3811_vm1, %v7579_v11, 0.0 }
 0x600   :  { %16998 = vmatpush3.bf16.msra.mxu0 %v20445_v45  ;;  %7605 = vadd.xlane.f32.xlu1 %v7604_v31  ;;  %v20604_v19 = vpop.f32.mrb[72].mxu0  ;;  %v15427_v38 = vpop.f32.mrb[71].mxu1  ;;  %v7580_v59 = vmul.f32 %v20600_v24, %v20600_v24 }
 0x601   :  { %15521 = vmatprep.mubr.msk.f32.mxu1 %vm17402_vm0, %v21749_v29  ;;  %7608 = vadd.xlane.f32.xlu0 %v7607_v10  ;;  %v15432_v63 = vpop.f32.mrb[73].mxu0  ;;  %v7581_v2 = vmul.f32 %v20604_v19, %v20604_v19 }
 0x602   :  { %15528 = vmatprep.mubr.msk.f32.mxu0 %vm17402_vm0, %v21749_v29  ;;  %15522 = vmatmul.mubr.msk.f32.vlgmr.msra.gmra.mrb[86].mxu1 %vm3811_vm1, %v20600_v24  ;;  %v7610_v45 = vsel %vm3811_vm1, %v7580_v59, 0.0 }
 0x603   :  { %15529 = vmatmul.mubr.msk.f32.vlgmr.msra.gmra.mrb[88].mxu0 %vm3811_vm1, %v20604_v19  ;;  %16999 = vmatprep.subr.bf16.mxu1 %v17401_v3  ;;  %v20620_v37 = vpop.f32.mrb[72].mxu1  ;;  %v7613_v39 = vsel %vm3811_vm1, %v7581_v2, 0.0 }
 0x604   :  { %17002 = vmatprep.subr.bf16.mxu0 %v17401_v3  ;;  %17001 = vmatpush3.bf16.msra.mxu1 %v20479_v4  ;;  %v20625_v27 = vpop.f32.mrb[74].mxu0  ;;  %v15437_v51 = vpop.f32.mrb[73].mxu1  ;;  %v7582_v21 = vmul.f32 %v20620_v37, %v20620_v37 }
 0x605   :  { %17004 = vmatpush3.bf16.msra.mxu0 %v20489_v48  ;;  %7611 = vadd.xlane.f32.xlu1 %v7610_v45  ;;  %v15442_v16 = vpop.f32.mrb[75].mxu0  ;;  %v7583_v11 = vmul.f32 %v20625_v27, %v20625_v27 }
 0x606   :  { %15535 = vmatprep.mubr.msk.f32.mxu1 %vm17402_vm0, %v21749_v29  ;;  %7614 = vadd.xlane.f32.xlu0 %v7613_v39  ;;  %v7616_v4 = vsel %vm3811_vm1, %v7582_v21, 0.0 }
 0x607   :  { %15542 = vmatprep.mubr.msk.f32.mxu0 %vm17402_vm0, %v21749_v29  ;;  %15536 = vmatmul.mubr.msk.f32.vlgmr.msra.gmra.mrb[88].mxu1 %vm3811_vm1, %v20620_v37  ;;  %v20639_v31 = vpop.f32.mrb[74].mxu1  ;;  %v7619_v48 = vsel %vm3811_vm1, %v7583_v11, 0.0 }
 0x608   :  { %15543 = vmatmul.mubr.msk.f32.vlgmr.msra.gmra.mrb[90].mxu0 %vm3811_vm1, %v20625_v27  ;;  %17005 = vmatprep.subr.bf16.mxu1 %v17401_v3  ;;  %v20645_v10 = vpop.f32.mrb[76].mxu0  ;;  %v15447_v38 = vpop.f32.mrb[75].mxu1  ;;  %v7584_v59 = vmul.f32 %v20639_v31, %v20639_v31 }
 0x609   :  { %17008 = vmatprep.subr.bf16.mxu0 %v17401_v3  ;;  %17007 = vmatpush3.bf16.msra.mxu1 %v20512_v0  ;;  %v15452_v63 = vpop.f32.mrb[77].mxu0  ;;  %v7585_v2 = vmul.f32 %v20645_v10, %v20645_v10 }
 0x60a   :  { %17010 = vmatpush3.bf16.msra.mxu0 %v20516_v1  ;;  %7617 = vadd.xlane.f32.xlu1 %v7616_v4  ;;  %v7622_v0 = vsel %vm3811_vm1, %v7584_v59, 0.0 }
 0x60b   :  { %15549 = vmatprep.mubr.msk.f32.mxu1 %vm17402_vm0, %v21749_v29  ;;  %7620 = vadd.xlane.f32.xlu0 %v7619_v48  ;;  %v20656_v45 = vpop.f32.mrb[76].mxu1  ;;  %v7625_v21 = vsel %vm3811_vm1, %v7585_v2, 0.0  ;;  %v8952_v2 = vmul.f32 %v20336_v40, %v20336_v40 }
 0x60c   :  { %15556 = vmatprep.mubr.msk.f32.mxu0 %vm17402_vm0, %v21749_v29  ;;  %15550 = vmatmul.mubr.msk.f32.vlgmr.msra.gmra.mrb[90].mxu1 %vm3811_vm1, %v20639_v31  ;;  %v20663_v39 = vpop.f32.mrb[78].mxu0  ;;  %v15457_v51 = vpop.f32.mrb[77].mxu1  ;;  %v7586_v1 = vmul.f32 %v20656_v45, %v20656_v45 }
 0x60d   :  { %15557 = vmatmul.mubr.msk.f32.vlgmr.msra.gmra.mrb[92].mxu0 %vm3811_vm1, %v20645_v10  ;;  %17011 = vmatprep.subr.bf16.mxu1 %v17401_v3  ;;  %v15462_v16 = vpop.f32.mrb[79].mxu0  ;;  %v7587_v11 = vmul.f32 %v20663_v39, %v20663_v39  ;;  %v8953_v51 = vmul.f32 %v20344_v15, %v20344_v15 }
 0x60e   :  { %17014 = vmatprep.subr.bf16.mxu0 %v17401_v3  ;;  %17013 = vmatpush3.bf16.msra.mxu1 %v20547_v28  ;;  %v7628_v48 = vsel %vm3811_vm1, %v7586_v1, 0.0  ;;  %v8972_v1 = vsel %vm5044_vm2, %v8952_v2, 0.0 }
 0x60f   :  { %17016 = vmatpush3.bf16.msra.mxu0 %v20554_v6  ;;  %7623 = vadd.xlane.f32.xlu1 %v7622_v0  ;;  %v20676_v4 = vpop.f32.mrb[78].mxu1  ;;  %v7631_v28 = vsel %vm3811_vm1, %v7587_v11, 0.0  ;;  %v8950_v6 = vmul.f32 %v20324_v44, %v20324_v44  ;;  %v8975_v16 = vsel %vm5044_vm2, %v8953_v51, 0.0  ;;  %v8955_v11 = vmul.f32 %v20362_v25, %v20362_v25 }
 0x610   :  { %15563 = vmatprep.mubr.msk.f32.mxu1 %vm17402_vm0, %v21749_v29  ;;  %7626 = vadd.xlane.f32.xlu0 %v7625_v21  ;;  %v15467_v38 = vpop.f32.mrb[79].mxu1  ;;  %v7588_v59 = vmul.f32 %v20676_v4, %v20676_v4  ;;  %v8954_v21 = vmul.f32 %v20350_v36, %v20350_v36 }
 0x611   :  { %15570 = vmatprep.mubr.msk.f32.mxu0 %vm17402_vm0, %v21749_v29  ;;  %15564 = vmatmul.mubr.msk.f32.vlgmr.msra.gmra.mrb[92].mxu1 %vm3811_vm1, %v20656_v45  ;;  %v8956_v38 = vmul.f32 %v20368_v30, %v20368_v30 }
 0x612   :  { %15571 = vmatmul.mubr.msk.f32.vlgmr.msra.gmra.mrb[94].mxu0 %vm3811_vm1, %v20663_v39  ;;  %17017 = vmatprep.subr.bf16.mxu1 %v17401_v3  ;;  %v7634_v63 = vsel %vm3811_vm1, %v7588_v59, 0.0  ;;  %v8951_v3 = vmul.f32 %v20332_v42, %v20332_v42  ;;  %v8981_v59 = vsel %vm5044_vm2, %v8955_v11, 0.0 }
 0x613   :  { %17019 = vmatpush3.bf16.msra.mxu1 %v20580_v23  ;;  %7629 = vadd.xlane.f32.xlu1 %v7628_v48  ;;  %v8966_v23 = vsel %vm5044_vm2, %v8950_v6, 0.0  ;;  %v8978_v48 = vsel %vm5044_vm2, %v8954_v21, 0.0  ;;  %v8984_v6 = vsel %vm5044_vm2, %v8956_v38, 0.0 }
 0x614   :  { %15577 = vmatprep.mubr.msk.f32.mxu1 %vm17402_vm0, %v21749_v29  ;;  %7632 = vadd.xlane.f32.xlu0 %v7631_v28  ;;  %v8969_v0 = vsel %vm5044_vm2, %v8951_v3, 0.0  ;;  %v8957_v28 = vmul.f32 %v20380_v55, %v20380_v55 }
 0x615   :  { %15580 = vmatprep.subr.mxu0 %v21749_v29  ;;  %15582 = vmatprep.mubr.msk.f32.mxu0 %vm17402_vm0, %v21749_v29 }
 0x616   :  { %15578 = vmatmul.mubr.msk.f32.vlgmr.msra.gmra.mrb[94].mxu1 %vm3811_vm1, %v20676_v4  ;;  %15585 = vmatprep.subr.mxu1 %v21749_v29  ;;  %v8987_v3 = vsel %vm5044_vm2, %v8957_v28, 0.0 }
 0x617   :  { %7635 = vadd.xlane.f32.xlu1 %v7634_v63  ;;  %15587 = vmatprep.mubr.msk.f32.mxu1 %vm17402_vm0, %v21749_v29  ;;  %v8958_v63 = vmul.f32 %v20386_v53, %v20386_v53 }
 0x618   :  { %8967 = vadd.xlane.f32.xlu0 %v8966_v23  ;;  %v8959_v23 = vmul.f32 %v20398_v46, %v20398_v46 }
 0x619   :  { %v8990_v2 = vsel %vm5044_vm2, %v8958_v63, 0.0 }
 0x61a   :  { %v8993_v51 = vsel %vm5044_vm2, %v8959_v23, 0.0 }
 0x61b   :  { %8970 = vadd.xlane.f32.xlu1 %v8969_v0  ;;  %v8960_v0 = vmul.f32 %v20404_v33, %v20404_v33 }
 0x61c   :  { %8973 = vadd.xlane.f32.xlu0 %v8972_v1  ;;  %v8961_v1 = vmul.f32 %v20416_v8, %v20416_v8 }
 0x61d   :  { %v8996_v21 = vsel %vm5044_vm2, %v8960_v0, 0.0 }
 0x61e   :  { %v8999_v11 = vsel %vm5044_vm2, %v8961_v1, 0.0 }
 0x61f   :  { %8976 = vadd.xlane.f32.xlu1 %v8975_v16  ;;  %v8962_v16 = vmul.f32 %v20422_v52, %v20422_v52 }
 0x620   :  { %8979 = vadd.xlane.f32.xlu0 %v8978_v48  ;;  %v8963_v48 = vmul.f32 %v20440_v41, %v20440_v41 }
 0x621   :  { %v9002_v38 = vsel %vm5044_vm2, %v8962_v16, 0.0 }
 0x622   :  { %v9005_v28 = vsel %vm5044_vm2, %v8963_v48, 0.0 }
 0x623   :  { %8982 = vadd.xlane.f32.xlu1 %v8981_v59  ;;  %v8964_v59 = vmul.f32 %v20448_v17, %v20448_v17 }
 0x624   :  { %8985 = vadd.xlane.f32.xlu0 %v8984_v6  ;;  %v8965_v6 = vmul.f32 %v20460_v60, %v20460_v60 }
 0x625   :  { %v9008_v63 = vsel %vm5044_vm2, %v8964_v59, 0.0 }
 0x626   :  { %v9011_v23 = vsel %vm5044_vm2, %v8965_v6, 0.0 }
 0x627   :  { %8988 = vadd.xlane.f32.xlu1 %v8987_v3  ;;  %v10328_v3 = vmul.f32 %v20012_v7, %v20012_v7 }
 0x628   :  { %8991 = vadd.xlane.f32.xlu0 %v8990_v2  ;;  %v10329_v2 = vmul.f32 %v20015_v20, %v20015_v20 }
 0x629   :  { %v10344_v0 = vsel %vm3811_vm1, %v10328_v3, 0.0 }
 0x62a   :  { %v10347_v1 = vsel %vm3811_vm1, %v10329_v2, 0.0 }
 0x62b   :  { %8994 = vadd.xlane.f32.xlu1 %v8993_v51  ;;  %v10330_v51 = vmul.f32 %v20077_v61, %v20077_v61 }
 0x62c   :  { %8997 = vadd.xlane.f32.xlu0 %v8996_v21  ;;  %v10331_v21 = vmul.f32 %v20084_v47, %v20084_v47 }
 0x62d   :  { %v10350_v16 = vsel %vm3811_vm1, %v10330_v51, 0.0 }
 0x62e   :  { %v10353_v48 = vsel %vm3811_vm1, %v10331_v21, 0.0 }
 0x62f   :  { %9000 = vadd.xlane.f32.xlu1 %v8999_v11  ;;  %v10332_v11 = vmul.f32 %v20155_v18, %v20155_v18 }
 0x630   :  { %9003 = vadd.xlane.f32.xlu0 %v9002_v38  ;;  %v10333_v38 = vmul.f32 %v20157_v32, %v20157_v32 }
 0x631   :  { %v10356_v59 = vsel %vm3811_vm1, %v10332_v11, 0.0 }
 0x632   :  { %v10359_v6 = vsel %vm3811_vm1, %v10333_v38, 0.0 }
 0x633   :  { %9006 = vadd.xlane.f32.xlu1 %v9005_v28  ;;  %v10334_v28 = vmul.f32 %v20159_v12, %v20159_v12 }
 0x634   :  { %9009 = vadd.xlane.f32.xlu0 %v9008_v63  ;;  %v10335_v63 = vmul.f32 %v20161_v5, %v20161_v5 }
 0x635   :  { %v10362_v3 = vsel %vm3811_vm1, %v10334_v28, 0.0 }
 0x636   :  { %v10365_v2 = vsel %vm3811_vm1, %v10335_v63, 0.0 }
 0x637   :  { %9012 = vadd.xlane.f32.xlu1 %v9011_v23  ;;  %v10336_v23 = vmul.f32 %v20163_v13, %v20163_v13 }
 0x638   :  { %10345 = vadd.xlane.f32.xlu0 %v10344_v0  ;;  %v10337_v0 = vmul.f32 %v20165_v9, %v20165_v9 }
 0x639   :  { %v10368_v51 = vsel %vm3811_vm1, %v10336_v23, 0.0 }
 0x63a   :  { %v10371_v21 = vsel %vm3811_vm1, %v10337_v0, 0.0 }
 0x63b   :  { %10348 = vadd.xlane.f32.xlu1 %v10347_v1  ;;  %v10338_v1 = vmul.f32 %v20167_v43, %v20167_v43 }
 0x63c   :  { %10351 = vadd.xlane.f32.xlu0 %v10350_v16  ;;  %v10339_v16 = vmul.f32 %v20169_v62, %v20169_v62 }
 0x63d   :  { %v10374_v11 = vsel %vm3811_vm1, %v10338_v1, 0.0 }
 0x63e   :  { %v10377_v38 = vsel %vm3811_vm1, %v10339_v16, 0.0 }
 0x63f   :  { %10354 = vadd.xlane.f32.xlu1 %v10353_v48  ;;  %v10340_v48 = vmul.f32 %v20171_v57, %v20171_v57 }
 0x640   :  { %10357 = vadd.xlane.f32.xlu0 %v10356_v59  ;;  %v10341_v59 = vmul.f32 %v20173_v34, %v20173_v34 }
 0x641   :  { %v10380_v28 = vsel %vm3811_vm1, %v10340_v48, 0.0 }
 0x642   :  { %v10383_v63 = vsel %vm3811_vm1, %v10341_v59, 0.0 }
 0x643   :  { %10360 = vadd.xlane.f32.xlu1 %v10359_v6  ;;  %v10342_v6 = vmul.f32 %v20175_v49, %v20175_v49 }
 0x644   :  { %10363 = vadd.xlane.f32.xlu0 %v10362_v3  ;;  %v10343_v3 = vmul.f32 %v20177_v56, %v20177_v56 }
 0x645   :  { %v10386_v23 = vsel %vm3811_vm1, %v10342_v6, 0.0 }
 0x647   :  { %10366 = vadd.xlane.f32.xlu1 %v10365_v2  ;;  %v10389_v2 = vsel %vm3811_vm1, %v10343_v3, 0.0 }
 0x648   :  { %10369 = vadd.xlane.f32.xlu0 %v10368_v51 }
 0x64b   :  { %10372 = vadd.xlane.f32.xlu1 %v10371_v21 }
 0x64c   :  { %10375 = vadd.xlane.f32.xlu0 %v10374_v11 }
 0x64f   :  { %10378 = vadd.xlane.f32.xlu1 %v10377_v38 }
 0x650   :  { %10381 = vadd.xlane.f32.xlu0 %v10380_v28 }
 0x653   :  { %10384 = vadd.xlane.f32.xlu1 %v10383_v63 }
 0x654   :  { %10387 = vadd.xlane.f32.xlu0 %v10386_v23 }
 0x657   :  { %10390 = vadd.xlane.f32.xlu1 %v10389_v2 }
 0x680   :  { %v7591_v0 = vpop.xlane.xlu0 %7590 }
 0x681   :  { %v7637_v51 = vmax.f32 %v7591_v0, 1e-24 }
 0x683   :  { %17231 = vrsqrt.f32 %v7637_v51 }
 0x684   :  { %v7594_v1 = vpop.xlane.xlu1 %7593 }
 0x685   :  { %v7638_v21 = vmax.f32 %v7594_v1, 1e-24  ;;  %v7597_v16 = vpop.xlane.xlu0 %7596 }
 0x686   :  { %v7639_v11 = vmax.f32 %v7597_v16, 1e-24 }
 0x687   :  { %17233 = vrsqrt.f32 %v7638_v21 }
 0x688   :  { %17235 = vrsqrt.f32 %v7639_v11  ;;  %v7600_v48 = vpop.xlane.xlu1 %7599 }
 0x689   :  { %v7640_v38 = vmax.f32 %v7600_v48, 1e-24  ;;  %v7603_v59 = vpop.xlane.xlu0 %7602 }
 0x68a   :  { %v7641_v28 = vmax.f32 %v7603_v59, 1e-24 }
 0x68b   :  { %17237 = vrsqrt.f32 %v7640_v38 }
 0x68c   :  { %17239 = vrsqrt.f32 %v7641_v28 }
 0x68d   :  { %v17232_v6 = vpop.eup %17231  ;;  %v7606_v63 = vpop.xlane.xlu1 %7605 }
 0x68e   :  { %v7642_v23 = vmax.f32 %v7606_v63, 1e-24  ;;  %v7609_v3 = vpop.xlane.xlu0 %7608  ;;  %v7669_v2 = vmul.f32 %v17232_v6, %v20497_v58 }
 0x68f   :  { %v7643_v0 = vmax.f32 %v7609_v3, 1e-24 }
 0x690   :  { %17241 = vrsqrt.f32 %v7642_v23  ;;  %15581 = vmatpush3.xpose.msk.msra.mxu0 %vm3811_vm1, %v7669_v2  ;;  %v8893_v16 = vmul.f32 %v7669_v2, %v7669_v2 }
 0x691   :  { %v17234_v51 = vpop.eup %17233  ;;  %17243 = vrsqrt.f32 %v7643_v0  ;;  %15590 = vmatprep.subr.mxu0 %v21749_v29 }
 0x692   :  { %v17236_v1 = vpop.eup %17235  ;;  %v7612_v21 = vpop.xlane.xlu1 %7611  ;;  %v7670_v11 = vmul.f32 %v17234_v51, %v20518_v54  ;;  %v8909_v23 = vsel %vm3811_vm1, %v8893_v16, 0.0 }
 0x693   :  { %v7644_v48 = vmax.f32 %v7612_v21, 1e-24  ;;  %v7615_v38 = vpop.xlane.xlu0 %7614  ;;  %15583 = vmatmul.mubr.msk.f32.vlgmr.msra.gmra.mrb[96].mxu0 %vm3811_vm1, %v7669_v2  ;;  %v7671_v59 = vmul.f32 %v17236_v1, %v20526_v22 }
 0x694   :  { %v7645_v58 = vmax.f32 %v7615_v38, 1e-24  ;;  %15586 = vmatpush3.xpose.msk.msra.mxu1 %vm3811_vm1, %v7670_v11  ;;  %v8894_v28 = vmul.f32 %v7670_v11, %v7670_v11  ;;  %15592 = vmatprep.mubr.msk.f32.mxu0 %vm17402_vm0, %v21749_v29 }
 0x695   :  { %v17238_v6 = vpop.eup %17237  ;;  %17245 = vrsqrt.f32 %v7644_v48  ;;  %15591 = vmatpush3.xpose.msk.msra.mxu0 %vm3811_vm1, %v7671_v59  ;;  %v8895_v63 = vmul.f32 %v7671_v59, %v7671_v59  ;;  %15595 = vmatprep.subr.mxu1 %v21749_v29 }
 0x696   :  { %v17240_v54 = vpop.eup %17239  ;;  %17247 = vrsqrt.f32 %v7645_v58  ;;  %v8910_v22 = vsel %vm3811_vm1, %v8894_v28, 0.0  ;;  %15600 = vmatprep.subr.mxu0 %v21749_v29  ;;  %v7672_v3 = vmul.f32 %v17238_v6, %v20549_v50 }
 0x697   :  { %v8911_v2 = vadd.f32 %v8910_v22, %v8909_v23  ;;  %v7618_v0 = vpop.xlane.xlu1 %7617  ;;  %15588 = vmatmul.mubr.msk.f32.vlgmr.msra.gmra.mrb[96].mxu1 %vm3811_vm1, %v7670_v11  ;;  %v7673_v51 = vmul.f32 %v17240_v54, %v20556_v14  ;;  %v8912_v48 = vsel %vm3811_vm1, %v8895_v63, 0.0 }
 0x698   :  { %v7646_v1 = vmax.f32 %v7618_v0, 1e-24  ;;  %v7621_v21 = vpop.xlane.xlu0 %7620  ;;  %15593 = vmatmul.mubr.msk.f32.vlgmr.msra.gmra.mrb[98].mxu0 %vm3811_vm1, %v7671_v59  ;;  %15596 = vmatpush3.xpose.msk.msra.mxu1 %vm3811_vm1, %v7672_v3  ;;  %v8896_v16 = vmul.f32 %v7672_v3, %v7672_v3 }
 0x699   :  { %v7647_v38 = vmax.f32 %v7621_v21, 1e-24  ;;  %v8913_v58 = vadd.f32 %v8912_v48, %v8911_v2  ;;  %15601 = vmatpush3.xpose.msk.msra.mxu0 %vm3811_vm1, %v7673_v51  ;;  %v8897_v50 = vmul.f32 %v7673_v51, %v7673_v51  ;;  %15597 = vmatprep.mubr.msk.f32.mxu1 %vm17402_vm0, %v21749_v29 }
 0x69a   :  { %v17242_v11 = vpop.eup %17241  ;;  %17249 = vrsqrt.f32 %v7646_v1  ;;  %v8914_v14 = vsel %vm3811_vm1, %v8896_v16, 0.0  ;;  %15602 = vmatprep.mubr.msk.f32.mxu0 %vm17402_vm0, %v21749_v29  ;;  %15605 = vmatprep.subr.mxu1 %v21749_v29 }
 0x69b   :  { %v17244_v59 = vpop.eup %17243  ;;  %17251 = vrsqrt.f32 %v7647_v38  ;;  %v8915_v28 = vadd.f32 %v8914_v14, %v8913_v58  ;;  %15598 = vmatmul.mubr.msk.f32.vlgmr.msra.gmra.mrb[98].mxu1 %vm3811_vm1, %v7672_v3  ;;  %15610 = vmatprep.subr.mxu0 %v21749_v29  ;;  %v7674_v6 = vmul.f32 %v17242_v11, %v20577_v26  ;;  %v8916_v54 = vsel %vm3811_vm1, %v8897_v50, 0.0 }
 0x69c   :  { %v7624_v63 = vpop.xlane.xlu1 %7623  ;;  %15603 = vmatmul.mubr.msk.f32.vlgmr.msra.gmra.mrb[100].mxu0 %vm3811_vm1, %v7673_v51  ;;  %v7675_v23 = vmul.f32 %v17244_v59, %v20584_v35  ;;  %15607 = vmatprep.mubr.msk.f32.mxu1 %vm17402_vm0, %v21749_v29 }
 0x69d   :  { %v7648_v22 = vmax.f32 %v7624_v63, 1e-24  ;;  %v7627_v2 = vpop.xlane.xlu0 %7626  ;;  %v8917_v0 = vadd.f32 %v8916_v54, %v8915_v28  ;;  %15606 = vmatpush3.xpose.msk.msra.mxu1 %vm3811_vm1, %v7674_v6  ;;  %v8898_v3 = vmul.f32 %v7674_v6, %v7674_v6  ;;  %15612 = vmatprep.mubr.msk.f32.mxu0 %vm17402_vm0, %v21749_v29 }
 0x69e   :  { %v7649_v26 = vmax.f32 %v7627_v2, 1e-24  ;;  %15611 = vmatpush3.xpose.msk.msra.mxu0 %vm3811_vm1, %v7675_v23  ;;  %v8899_v1 = vmul.f32 %v7675_v23, %v7675_v23  ;;  %15615 = vmatprep.subr.mxu1 %v21749_v29 }
 0x69f   :  { %v17246_v51 = vpop.eup %17245  ;;  %17253 = vrsqrt.f32 %v7648_v22  ;;  %v8918_v35 = vsel %vm3811_vm1, %v8898_v3, 0.0  ;;  %15620 = vmatprep.subr.mxu0 %v21749_v29 }
 0x6a0   :  { %v17248_v21 = vpop.eup %17247  ;;  %17255 = vrsqrt.f32 %v7649_v26  ;;  %v8919_v48 = vadd.f32 %v8918_v35, %v8917_v0  ;;  %v7630_v16 = vpop.xlane.xlu1 %7629  ;;  %15608 = vmatmul.mubr.msk.f32.vlgmr.msra.gmra.mrb[100].mxu1 %vm3811_vm1, %v7674_v6  ;;  %v7676_v38 = vmul.f32 %v17246_v51, %v20600_v24  ;;  %v8920_v11 = vsel %vm3811_vm1, %v8899_v1, 0.0 }
 0x6a1   :  { %v7650_v58 = vmax.f32 %v7630_v16, 1e-24  ;;  %v7633_v50 = vpop.xlane.xlu0 %7632  ;;  %15613 = vmatmul.mubr.msk.f32.vlgmr.msra.gmra.mrb[102].mxu0 %vm3811_vm1, %v7675_v23  ;;  %v7677_v14 = vmul.f32 %v17248_v21, %v20604_v19  ;;  %15617 = vmatprep.mubr.msk.f32.mxu1 %vm17402_vm0, %v21749_v29 }
 0x6a2   :  { %v7651_v59 = vmax.f32 %v7633_v50, 1e-24  ;;  %15616 = vmatpush3.xpose.msk.msra.mxu1 %vm3811_vm1, %v7676_v38  ;;  %v8900_v28 = vmul.f32 %v7676_v38, %v7676_v38  ;;  %15622 = vmatprep.mubr.msk.f32.mxu0 %vm17402_vm0, %v21749_v29  ;;  %v8921_v6 = vadd.f32 %v8920_v11, %v8919_v48 }
 0x6a3   :  { %17257 = vrsqrt.f32 %v7650_v58  ;;  %15621 = vmatpush3.xpose.msk.msra.mxu0 %vm3811_vm1, %v7677_v14  ;;  %v8901_v24 = vmul.f32 %v7677_v14, %v7677_v14  ;;  %15625 = vmatprep.subr.mxu1 %v21749_v29 }
 0x6a4   :  { %v17250_v63 = vpop.eup %17249  ;;  %17259 = vrsqrt.f32 %v7651_v59  ;;  %v7636_v19 = vpop.xlane.xlu1 %7635  ;;  %15630 = vmatprep.subr.mxu0 %v21749_v29  ;;  %v8922_v54 = vsel %vm3811_vm1, %v8900_v28, 0.0 }
 0x6a5   :  { %v17252_v23 = vpop.eup %17251  ;;  %v7652_v22 = vmax.f32 %v7636_v19, 1e-24  ;;  %v8968_v2 = vpop.xlane.xlu0 %8967  ;;  %15618 = vmatmul.mubr.msk.f32.vlgmr.msra.gmra.mrb[102].mxu1 %vm3811_vm1, %v7676_v38  ;;  %v7678_v0 = vmul.f32 %v17250_v63, %v20620_v37  ;;  %v8923_v3 = vadd.f32 %v8922_v54, %v8921_v6  ;;  %v8924_v51 = vsel %vm3811_vm1, %v8901_v24, 0.0 }
 0x6a6   :  { %v9014_v26 = vmax.f32 %v8968_v2, 1e-24  ;;  %15623 = vmatmul.mubr.msk.f32.vlgmr.msra.gmra.mrb[104].mxu0 %vm3811_vm1, %v7677_v14  ;;  %v7679_v1 = vmul.f32 %v17252_v23, %v20625_v27  ;;  %15627 = vmatprep.mubr.msk.f32.mxu1 %vm17402_vm0, %v21749_v29 }
 0x6a7   :  { %17261 = vrsqrt.f32 %v7652_v22  ;;  %15626 = vmatpush3.xpose.msk.msra.mxu1 %vm3811_vm1, %v7678_v0  ;;  %15632 = vmatprep.mubr.msk.f32.mxu0 %vm17402_vm0, %v21749_v29  ;;  %v8902_v35 = vmul.f32 %v7678_v0, %v7678_v0  ;;  %v8925_v21 = vadd.f32 %v8924_v51, %v8923_v3 }
 0x6a8   :  { %17263 = vrsqrt.f32 %v9014_v26  ;;  %v8971_v37 = vpop.xlane.xlu1 %8970  ;;  %15631 = vmatpush3.xpose.msk.msra.mxu0 %vm3811_vm1, %v7679_v1  ;;  %15635 = vmatprep.subr.mxu1 %v21749_v29  ;;  %v8903_v27 = vmul.f32 %v7679_v1, %v7679_v1 }
 0x6a9   :  { %v17254_v48 = vpop.eup %17253  ;;  %v9015_v16 = vmax.f32 %v8971_v37, 1e-24  ;;  %v8974_v38 = vpop.xlane.xlu0 %8973  ;;  %15640 = vmatprep.subr.mxu0 %v21749_v29  ;;  %v8926_v58 = vsel %vm3811_vm1, %v8902_v35, 0.0 }
 0x6aa   :  { %v17256_v50 = vpop.eup %17255  ;;  %v9016_v11 = vmax.f32 %v8974_v38, 1e-24  ;;  %15628 = vmatmul.mubr.msk.f32.vlgmr.msra.gmra.mrb[104].mxu1 %vm3811_vm1, %v7678_v0  ;;  %v7680_v14 = vmul.f32 %v17254_v48, %v20639_v31  ;;  %v8927_v59 = vadd.f32 %v8926_v58, %v8925_v21  ;;  %v8928_v6 = vsel %vm3811_vm1, %v8903_v27, 0.0 }
 0x6ab   :  { %17265 = vrsqrt.f32 %v9015_v16  ;;  %15633 = vmatmul.mubr.msk.f32.vlgmr.msra.gmra.mrb[106].mxu0 %vm3811_vm1, %v7679_v1  ;;  %v7681_v28 = vmul.f32 %v17256_v50, %v20645_v10  ;;  %15637 = vmatprep.mubr.msk.f32.mxu1 %vm17402_vm0, %v21749_v29 }
 0x6ac   :  { %17267 = vrsqrt.f32 %v9016_v11  ;;  %15636 = vmatpush3.xpose.msk.msra.mxu1 %vm3811_vm1, %v7680_v14  ;;  %v8977_v24 = vpop.xlane.xlu1 %8976  ;;  %15642 = vmatprep.mubr.msk.f32.mxu0 %vm17402_vm0, %v21749_v29  ;;  %v8904_v63 = vmul.f32 %v7680_v14, %v7680_v14  ;;  %v8929_v31 = vadd.f32 %v8928_v6, %v8927_v59 }
 0x6ad   :  { %v17258_v19 = vpop.eup %17257  ;;  %v9017_v54 = vmax.f32 %v8977_v24, 1e-24  ;;  %v8980_v23 = vpop.xlane.xlu0 %8979  ;;  %15641 = vmatpush3.xpose.msk.msra.mxu0 %vm3811_vm1, %v7681_v28  ;;  %15645 = vmatprep.subr.mxu1 %v21749_v29  ;;  %v8905_v10 = vmul.f32 %v7681_v28, %v7681_v28 }
 0x6ae   :  { %v17260_v22 = vpop.eup %17259  ;;  %v9018_v2 = vmax.f32 %v8980_v23, 1e-24  ;;  %15650 = vmatprep.subr.mxu0 %v21749_v29  ;;  %v7682_v0 = vmul.f32 %v17258_v19, %v20656_v45  ;;  %v8930_v3 = vsel %vm3811_vm1, %v8904_v63, 0.0 }
 0x6af   :  { %17269 = vrsqrt.f32 %v9017_v54  ;;  %15638 = vmatmul.mubr.msk.f32.vlgmr.msra.gmra.mrb[106].mxu1 %vm3811_vm1, %v7680_v14  ;;  %v7683_v26 = vmul.f32 %v17260_v22, %v20663_v39  ;;  %v8931_v1 = vadd.f32 %v8930_v3, %v8929_v31  ;;  %v8932_v21 = vsel %vm3811_vm1, %v8905_v10, 0.0 }
 0x6b0   :  { %17271 = vrsqrt.f32 %v9018_v2  ;;  %15643 = vmatmul.mubr.msk.f32.vlgmr.msra.gmra.mrb[108].mxu0 %vm3811_vm1, %v7681_v28  ;;  %15646 = vmatpush3.xpose.msk.msra.mxu1 %vm3811_vm1, %v7682_v0  ;;  %v8983_v51 = vpop.xlane.xlu1 %8982  ;;  %v8906_v35 = vmul.f32 %v7682_v0, %v7682_v0 }
 0x6b1   :  { %v17262_v37 = vpop.eup %17261  ;;  %v9019_v27 = vmax.f32 %v8983_v51, 1e-24  ;;  %v8986_v45 = vpop.xlane.xlu0 %8985  ;;  %15651 = vmatpush3.xpose.msk.msra.mxu0 %vm3811_vm1, %v7683_v26  ;;  %15647 = vmatprep.mubr.msk.f32.mxu1 %vm17402_vm0, %v21749_v29  ;;  %v8907_v48 = vmul.f32 %v7683_v26, %v7683_v26  ;;  %v8933_v39 = vadd.f32 %v8932_v21, %v8931_v1 }
 0x6b2   :  { %v17264_v16 = vpop.eup %17263  ;;  %v9020_v38 = vmax.f32 %v8986_v45, 1e-24  ;;  %15652 = vmatprep.mubr.msk.f32.mxu0 %vm17402_vm0, %v21749_v29  ;;  %15655 = vmatprep.subr.mxu1 %v21749_v29  ;;  %v7684_v58 = vmul.f32 %v17262_v37, %v20676_v4  ;;  %v8934_v50 = vsel %vm3811_vm1, %v8906_v35, 0.0 }
 0x6b3   :  { %17273 = vrsqrt.f32 %v9019_v27  ;;  %15648 = vmatmul.mubr.msk.f32.vlgmr.msra.gmra.mrb[108].mxu1 %vm3811_vm1, %v7682_v0  ;;  %15660 = vmatprep.subr.mxu0 %v21749_v29  ;;  %v9046_v11 = vmul.f32 %v17264_v16, %v20324_v44  ;;  %v8935_v14 = vadd.f32 %v8934_v50, %v8933_v39  ;;  %v8936_v6 = vsel %vm3811_vm1, %v8907_v48, 0.0 }
 0x6b4   :  { %17275 = vrsqrt.f32 %v9020_v38  ;;  %15653 = vmatmul.mubr.msk.f32.vlgmr.msra.gmra.mrb[110].mxu0 %vm3811_vm1, %v7683_v26  ;;  %15656 = vmatpush3.xpose.msk.msra.mxu1 %vm3811_vm1, %v7684_v58  ;;  %v8989_v59 = vpop.xlane.xlu1 %8988  ;;  %v8908_v28 = vmul.f32 %v7684_v58, %v7684_v58 }
 0x6b5   :  { %v17266_v4 = vpop.eup %17265  ;;  %v9021_v24 = vmax.f32 %v8989_v59, 1e-24  ;;  %v8992_v63 = vpop.xlane.xlu0 %8991  ;;  %15661 = vmatpush3.xpose.msk.msra.mxu0 %vm5044_vm2, %v9046_v11  ;;  %15657 = vmatprep.mubr.msk.f32.mxu1 %vm17402_vm0, %v21749_v29  ;;  %v8937_v31 = vadd.f32 %v8936_v6, %v8935_v14  ;;  %v10270_v54 = vmul.f32 %v9046_v11, %v9046_v11 }
 0x6b6   :  { %v17268_v44 = vpop.eup %17267  ;;  %v9022_v19 = vmax.f32 %v8992_v63, 1e-24  ;;  %15662 = vmatprep.mubr.msk.f32.mxu0 %vm17402_vm0, %v21749_v29  ;;  %15665 = vmatprep.subr.mxu1 %v21749_v29  ;;  %v9047_v23 = vmul.f32 %v17266_v4, %v20332_v42  ;;  %v8938_v10 = vsel %vm3811_vm1, %v8908_v28, 0.0 }
 0x6b7   :  { %17277 = vrsqrt.f32 %v9021_v24  ;;  %15658 = vmatmul.mubr.msk.f32.vlgmr.msra.gmra.mrb[110].mxu1 %vm3811_vm1, %v7684_v58  ;;  %15670 = vmatprep.subr.mxu0 %v21749_v29  ;;  %v9048_v22 = vmul.f32 %v17268_v44, %v20336_v40  ;;  %v20914_v2 = vadd.f32 %v8938_v10, %v8937_v31  ;;  %v10286_v40 = vsel %vm5044_vm2, %v10270_v54, 0.0 }
 0x6b8   :  { %17279 = vrsqrt.f32 %v9022_v19  ;;  %15663 = vmatmul.mubr.msk.f32.vlgmr.msra.gmra.mrb[112].mxu0 %vm5044_vm2, %v9046_v11  ;;  %15666 = vmatpush3.xpose.msk.msra.mxu1 %vm5044_vm2, %v9047_v23  ;;  %v10271_v0 = vmul.f32 %v9047_v23, %v9047_v23  ;;  %v8995_v3 = vpop.xlane.xlu1 %8994 }
 0x6b9   :  { %v17270_v26 = vpop.eup %17269  ;;  %v9023_v42 = vmax.f32 %v8995_v3, 1e-24  ;;  %v8998_v1 = vpop.xlane.xlu0 %8997  ;;  %15671 = vmatpush3.xpose.msk.msra.mxu0 %vm5044_vm2, %v9048_v22  ;;  %v10272_v51 = vmul.f32 %v9048_v22, %v9048_v22  ;;  %15667 = vmatprep.mubr.msk.f32.mxu1 %vm17402_vm0, %v21749_v29 }
 0x6ba   :  { %v17272_v35 = vpop.eup %17271  ;;  %v10287_v21 = vsel %vm5044_vm2, %v10271_v0, 0.0  ;;  %v9024_v37 = vmax.f32 %v8998_v1, 1e-24  ;;  %15672 = vmatprep.mubr.msk.f32.mxu0 %vm17402_vm0, %v21749_v29  ;;  %15675 = vmatprep.subr.mxu1 %v21749_v29  ;;  %v9049_v27 = vmul.f32 %v17270_v26, %v20344_v15 }
 0x6bb   :  { %v10288_v45 = vadd.f32 %v10287_v21, %v10286_v40  ;;  %17281 = vrsqrt.f32 %v9023_v42  ;;  %15668 = vmatmul.mubr.msk.f32.vlgmr.msra.gmra.mrb[112].mxu1 %vm5044_vm2, %v9047_v23  ;;  %15680 = vmatprep.subr.mxu0 %v21749_v29  ;;  %v9050_v48 = vmul.f32 %v17272_v35, %v20350_v36  ;;  %v10289_v39 = vsel %vm5044_vm2, %v10272_v51, 0.0 }
 0x6bc   :  { %17283 = vrsqrt.f32 %v9024_v37  ;;  %15673 = vmatmul.mubr.msk.f32.vlgmr.msra.gmra.mrb[114].mxu0 %vm5044_vm2, %v9048_v22  ;;  %15676 = vmatpush3.xpose.msk.msra.mxu1 %vm5044_vm2, %v9049_v27  ;;  %v10273_v16 = vmul.f32 %v9049_v27, %v9049_v27  ;;  %v9001_v38 = vpop.xlane.xlu1 %9000 }
 0x6bd   :  { %v17274_v58 = vpop.eup %17273  ;;  %v10290_v50 = vadd.f32 %v10289_v39, %v10288_v45  ;;  %v9025_v15 = vmax.f32 %v9001_v38, 1e-24  ;;  %v9004_v11 = vpop.xlane.xlu0 %9003  ;;  %15681 = vmatpush3.xpose.msk.msra.mxu0 %vm5044_vm2, %v9050_v48  ;;  %v10274_v14 = vmul.f32 %v9050_v48, %v9050_v48  ;;  %15677 = vmatprep.mubr.msk.f32.mxu1 %vm17402_vm0, %v21749_v29 }
 0x6be   :  { %v17276_v36 = vpop.eup %17275  ;;  %v10291_v59 = vsel %vm5044_vm2, %v10273_v16, 0.0  ;;  %v9026_v28 = vmax.f32 %v9004_v11, 1e-24  ;;  %15682 = vmatprep.mubr.msk.f32.mxu0 %vm17402_vm0, %v21749_v29  ;;  %15685 = vmatprep.subr.mxu1 %v21749_v29  ;;  %v9051_v6 = vmul.f32 %v17274_v58, %v20362_v25 }
 0x6bf   :  { %v10292_v4 = vadd.f32 %v10291_v59, %v10290_v50  ;;  %17285 = vrsqrt.f32 %v9025_v15  ;;  %15678 = vmatmul.mubr.msk.f32.vlgmr.msra.gmra.mrb[114].mxu1 %vm5044_vm2, %v9049_v27  ;;  %15690 = vmatprep.subr.mxu0 %v21749_v29  ;;  %v9052_v24 = vmul.f32 %v17276_v36, %v20368_v30  ;;  %v10293_v63 = vsel %vm5044_vm2, %v10274_v14, 0.0 }
 0x6c0   :  { %17287 = vrsqrt.f32 %v9026_v28  ;;  %15683 = vmatmul.mubr.msk.f32.vlgmr.msra.gmra.mrb[116].mxu0 %vm5044_vm2, %v9050_v48  ;;  %15686 = vmatpush3.xpose.msk.msra.mxu1 %vm5044_vm2, %v9051_v6  ;;  %v10275_v31 = vmul.f32 %v9051_v6, %v9051_v6  ;;  %v9007_v44 = vpop.xlane.xlu1 %9006 }
 0x6c1   :  { %v17278_v19 = vpop.eup %17277  ;;  %v10294_v54 = vadd.f32 %v10293_v63, %v10292_v4  ;;  %v9027_v25 = vmax.f32 %v9007_v44, 1e-24  ;;  %v9010_v23 = vpop.xlane.xlu0 %9009  ;;  %15691 = vmatpush3.xpose.msk.msra.mxu0 %vm5044_vm2, %v9052_v24  ;;  %v10276_v10 = vmul.f32 %v9052_v24, %v9052_v24  ;;  %15687 = vmatprep.mubr.msk.f32.mxu1 %vm17402_vm0, %v21749_v29 }
 0x6c2   :  { %v17280_v30 = vpop.eup %17279  ;;  %v10295_v22 = vsel %vm5044_vm2, %v10275_v31, 0.0  ;;  %v9028_v0 = vmax.f32 %v9010_v23, 1e-24  ;;  %15692 = vmatprep.mubr.msk.f32.mxu0 %vm17402_vm0, %v21749_v29  ;;  %15695 = vmatprep.subr.mxu1 %v21749_v29  ;;  %v9053_v3 = vmul.f32 %v17278_v19, %v20380_v55 }
 0x6c3   :  { %v10296_v26 = vadd.f32 %v10295_v22, %v10294_v54  ;;  %17289 = vrsqrt.f32 %v9027_v25  ;;  %15688 = vmatmul.mubr.msk.f32.vlgmr.msra.gmra.mrb[116].mxu1 %vm5044_vm2, %v9051_v6  ;;  %15700 = vmatprep.subr.mxu0 %v21749_v29  ;;  %v9054_v42 = vmul.f32 %v17280_v30, %v20386_v53  ;;  %v6458_v1 = vpop.f32.mrb[80].mxu0  ;;  %v10297_v51 = vsel %vm5044_vm2, %v10276_v10, 0.0 }
 0x6c4   :  { %17291 = vrsqrt.f32 %v9028_v0  ;;  %15693 = vmatmul.mubr.msk.f32.vlgmr.msra.gmra.mrb[118].mxu0 %vm5044_vm2, %v9052_v24  ;;  %15696 = vmatpush3.xpose.msk.msra.mxu1 %vm5044_vm2, %v9053_v3  ;;  %v10277_v35 = vmul.f32 %v9053_v3, %v9053_v3  ;;  %v9013_v40 = vpop.xlane.xlu1 %9012  ;;  %v15474_v21 = vpop.f32.mrb[81].mxu0 }
 0x6c5   :  { %v17282_v55 = vpop.eup %17281  ;;  %v9029_v37 = vmax.f32 %v9013_v40, 1e-24  ;;  %v10346_v27 = vpop.xlane.xlu0 %10345  ;;  %15701 = vmatpush3.xpose.msk.msra.mxu0 %vm5044_vm2, %v9054_v42  ;;  %v10278_v45 = vmul.f32 %v9054_v42, %v9054_v42  ;;  %15697 = vmatprep.mubr.msk.f32.mxu1 %vm17402_vm0, %v21749_v29  ;;  %v10298_v53 = vadd.f32 %v10297_v51, %v10296_v26 }
 0x6c6   :  { %v17284_v48 = vpop.eup %17283  ;;  %v10392_v39 = vmax.f32 %v10346_v27, 1e-24  ;;  %15702 = vmatprep.mubr.msk.f32.mxu0 %vm17402_vm0, %v21749_v29  ;;  %15705 = vmatprep.subr.mxu1 %v21749_v29  ;;  %v9055_v16 = vmul.f32 %v17282_v55, %v20398_v46  ;;  %v10299_v38 = vsel %vm5044_vm2, %v10277_v35, 0.0 }
 0x6c7   :  { %17293 = vrsqrt.f32 %v9029_v37  ;;  %15698 = vmatmul.mubr.msk.f32.vlgmr.msra.gmra.mrb[118].mxu1 %vm5044_vm2, %v9053_v3  ;;  %15710 = vmatprep.subr.mxu0 %v21749_v29  ;;  %v9056_v58 = vmul.f32 %v17284_v48, %v20404_v33  ;;  %v6531_v50 = vpop.f32.mrb[80].mxu1  ;;  %v10300_v15 = vadd.f32 %v10299_v38, %v10298_v53  ;;  %v10301_v59 = vsel %vm5044_vm2, %v10278_v45, 0.0 }
 0x6c8   :  { %17295 = vrsqrt.f32 %v10392_v39  ;;  %15703 = vmatmul.mubr.msk.f32.vlgmr.msra.gmra.mrb[120].mxu0 %vm5044_vm2, %v9054_v42  ;;  %15706 = vmatpush3.xpose.msk.msra.mxu1 %vm5044_vm2, %v9055_v16  ;;  %v10349_v11 = vpop.xlane.xlu1 %10348  ;;  %v7557_v14 = vadd.f32 %v6531_v50, %v6458_v1  ;;  %v6604_v36 = vpop.f32.mrb[82].mxu0  ;;  %v10279_v46 = vmul.f32 %v9055_v16, %v9055_v16 }
 0x6c9   :  { %v17286_v28 = vpop.eup %17285  ;;  %v10393_v6 = vmax.f32 %v10349_v11, 1e-24  ;;  %v10352_v4 = vpop.xlane.xlu0 %10351  ;;  %15711 = vmatpush3.xpose.msk.msra.mxu0 %vm5044_vm2, %v9056_v58  ;;  %15707 = vmatprep.mubr.msk.f32.mxu1 %vm17402_vm0, %v21749_v29  ;;  %v10280_v24 = vmul.f32 %v9056_v58, %v9056_v58  ;;  %v10302_v63 = vadd.f32 %v10301_v59, %v10300_v15 }
 0x6ca   :  { %v15481_v33 = vpop.f32.mrb[81].mxu1  ;;  %v17288_v31 = vpop.eup %17287  ;;  %v10394_v44 = vmax.f32 %v10352_v4, 1e-24  ;;  %15712 = vmatprep.mubr.msk.f32.mxu0 %vm17402_vm0, %v21749_v29  ;;  %v7558_v19 = vadd.f32 %v7557_v14, %v6604_v36  ;;  %15715 = vmatprep.subr.mxu1 %v21749_v29  ;;  %v9057_v54 = vmul.f32 %v17286_v28, %v20416_v8  ;;  %v10303_v23 = vsel %vm5044_vm2, %v10279_v46, 0.0 }
 0x6cb   :  { %v15488_v25 = vpop.f32.mrb[83].mxu0  ;;  %17297 = vrsqrt.f32 %v10393_v6  ;;  %15708 = vmatmul.mubr.msk.f32.vlgmr.msra.gmra.mrb[120].mxu1 %vm5044_vm2, %v9055_v16  ;;  %15720 = vmatprep.subr.mxu0 %v21749_v29  ;;  %v9058_v10 = vmul.f32 %v17288_v31, %v20422_v52  ;;  %v6677_v30 = vpop.f32.mrb[82].mxu1  ;;  %v10304_v22 = vadd.f32 %v10303_v23, %v10302_v63  ;;  %v10305_v42 = vsel %vm5044_vm2, %v10280_v24, 0.0 }
 0x6cc   :  { %17299 = vrsqrt.f32 %v10394_v44  ;;  %15713 = vmatmul.mubr.msk.f32.vlgmr.msra.gmra.mrb[122].mxu0 %vm5044_vm2, %v9056_v58  ;;  %15716 = vmatpush3.xpose.msk.msra.mxu1 %vm5044_vm2, %v9057_v54  ;;  %v10355_v0 = vpop.xlane.xlu1 %10354  ;;  %v7559_v3 = vadd.f32 %v7558_v19, %v6677_v30  ;;  %v6750_v8 = vpop.f32.mrb[84].mxu0  ;;  %v10281_v26 = vmul.f32 %v9057_v54, %v9057_v54 }
 0x6cd   :  { %v17290_v1 = vpop.eup %17289  ;;  %v10395_v51 = vmax.f32 %v10355_v0, 1e-24  ;;  %v10358_v35 = vpop.xlane.xlu0 %10357  ;;  %15721 = vmatpush3.xpose.msk.msra.mxu0 %vm5044_vm2, %v9058_v10  ;;  %15717 = vmatprep.mubr.msk.f32.mxu1 %vm17402_vm0, %v21749_v29  ;;  %v10282_v40 = vmul.f32 %v9058_v10, %v9058_v10  ;;  %v10306_v21 = vadd.f32 %v10305_v42, %v10304_v22 }
 0x6ce   :  { %v15495_v52 = vpop.f32.mrb[83].mxu1  ;;  %v17292_v55 = vpop.eup %17291  ;;  %v10396_v37 = vmax.f32 %v10358_v35, 1e-24  ;;  %15722 = vmatprep.mubr.msk.f32.mxu0 %vm17402_vm0, %v21749_v29  ;;  %v7560_v27 = vadd.f32 %v7559_v3, %v6750_v8  ;;  %15725 = vmatprep.subr.mxu1 %v21749_v29  ;;  %v9059_v45 = vmul.f32 %v17290_v1, %v20440_v41  ;;  %v10307_v48 = vsel %vm5044_vm2, %v10281_v26, 0.0 }
 0x6cf   :  { %v15502_v53 = vpop.f32.mrb[85].mxu0  ;;  %17301 = vrsqrt.f32 %v10395_v51  ;;  %15718 = vmatmul.mubr.msk.f32.vlgmr.msra.gmra.mrb[122].mxu1 %vm5044_vm2, %v9057_v54  ;;  %15730 = vmatprep.subr.mxu0 %v21749_v29  ;;  %v9060_v39 = vmul.f32 %v17292_v55, %v20448_v17  ;;  %v10308_v16 = vadd.f32 %v10307_v48, %v10306_v21  ;;  %v10309_v41 = vsel %vm5044_vm2, %v10282_v40, 0.0 }
 0x6d0   :  { %17303 = vrsqrt.f32 %v10396_v37  ;;  %15723 = vmatmul.mubr.msk.f32.vlgmr.msra.gmra.mrb[124].mxu0 %vm5044_vm2, %v9058_v10  ;;  %15726 = vmatpush3.xpose.msk.msra.mxu1 %vm5044_vm2, %v9059_v45  ;;  %v10361_v38 = vpop.xlane.xlu1 %10360  ;;  %v6823_v58 = vpop.f32.mrb[84].mxu1  ;;  %v10283_v50 = vmul.f32 %v9059_v45, %v9059_v45 }
 0x6d1   :  { %v17294_v15 = vpop.eup %17293  ;;  %v10397_v11 = vmax.f32 %v10361_v38, 1e-24  ;;  %v10364_v14 = vpop.xlane.xlu0 %10363  ;;  %15731 = vmatpush3.xpose.msk.msra.mxu0 %vm5044_vm2, %v9060_v39  ;;  %15727 = vmatprep.mubr.msk.f32.mxu1 %vm17402_vm0, %v21749_v29  ;;  %v7561_v17 = vadd.f32 %v7560_v27, %v6823_v58  ;;  %v10284_v46 = vmul.f32 %v9060_v39, %v9060_v39  ;;  %v10310_v59 = vadd.f32 %v10309_v41, %v10308_v16 }
 0x6d2   :  { %v6896_v36 = vpop.f32.mrb[86].mxu0  ;;  %v17296_v28 = vpop.eup %17295  ;;  %v10398_v6 = vmax.f32 %v10364_v14, 1e-24  ;;  %15732 = vmatprep.mubr.msk.f32.mxu0 %vm17402_vm0, %v21749_v29  ;;  %15735 = vmatprep.subr.mxu1 %v21749_v29  ;;  %v9061_v33 = vmul.f32 %v17294_v15, %v20460_v60  ;;  %v10311_v63 = vsel %vm5044_vm2, %v10283_v50, 0.0 }
 0x6d3   :  { %v15509_v4 = vpop.f32.mrb[85].mxu1  ;;  %v15516_v24 = vpop.f32.mrb[87].mxu0  ;;  %17305 = vrsqrt.f32 %v10397_v11  ;;  %v7562_v31 = vadd.f32 %v7561_v17, %v6896_v36  ;;  %15728 = vmatmul.mubr.msk.f32.vlgmr.msra.gmra.mrb[124].mxu1 %vm5044_vm2, %v9059_v45  ;;  %15740 = vmatprep.subr.mxu0 %v21749_v29  ;;  %v10424_v44 = vmul.f32 %v17296_v28, %v20012_v7  ;;  %v10312_v19 = vadd.f32 %v10311_v63, %v10310_v59 }
 0x6d4   :  { %17307 = vrsqrt.f32 %v10398_v6  ;;  %15733 = vmatmul.mubr.msk.f32.vlgmr.msra.gmra.mrb[126].mxu0 %vm5044_vm2, %v9060_v39  ;;  %15736 = vmatpush3.xpose.msk.msra.mxu1 %vm5044_vm2, %v9061_v33  ;;  %v10367_v54 = vpop.xlane.xlu1 %10366  ;;  %v10285_v25 = vmul.f32 %v9061_v33, %v9061_v33  ;;  %v10313_v60 = vsel %vm5044_vm2, %v10284_v46, 0.0 }
 0x6d5   :  { %v17298_v23 = vpop.eup %17297  ;;  %v10399_v10 = vmax.f32 %v10367_v54, 1e-24  ;;  %v10370_v30 = vpop.xlane.xlu0 %10369  ;;  %15741 = vmatpush3.xpose.msk.msra.mxu0 %vm3811_vm1, %v10424_v44  ;;  %v11648_v22 = vmul.f32 %v10424_v44, %v10424_v44  ;;  %15737 = vmatprep.mubr.msk.f32.mxu1 %vm17402_vm0, %v21749_v29  ;;  %v10314_v0 = vadd.f32 %v10313_v60, %v10312_v19 }
 0x6d6   :  { %v6969_v7 = vpop.f32.mrb[86].mxu1  ;;  %v17300_v3 = vpop.eup %17299  ;;  %v10400_v8 = vmax.f32 %v10370_v30, 1e-24  ;;  %15742 = vmatprep.mubr.msk.f32.mxu0 %vm17402_vm0, %v21749_v29  ;;  %15745 = vmatprep.subr.mxu1 %v21749_v29  ;;  %v10425_v51 = vmul.f32 %v17298_v23, %v20015_v20  ;;  %v10315_v35 = vsel %vm5044_vm2, %v10285_v25, 0.0 }
 0x6d7   :  { %v21022_v26 = vadd.f32 %v7562_v31, %v6969_v7  ;;  %v7042_v42 = vpop.f32.mrb[88].mxu0  ;;  %v15523_v1 = vpop.f32.mrb[87].mxu1  ;;  %17309 = vrsqrt.f32 %v10399_v10  ;;  %15738 = vmatmul.mubr.msk.f32.vlgmr.msra.gmra.mrb[126].mxu1 %vm5044_vm2, %v9061_v33  ;;  %15750 = vmatprep.subr.mxu0 %v21749_v29  ;;  %v10426_v40 = vmul.f32 %v17300_v3, %v20077_v61  ;;  %v10316_v21 = vadd.f32 %v10315_v35, %v10314_v0 }
 0x6d8   :  { %v15530_v52 = vpop.f32.mrb[89].mxu0  ;;  %17311 = vrsqrt.f32 %v10400_v8  ;;  %15743 = vmatmul.mubr.msk.f32.vlgmr.msra.gmra.mrb[128].mxu0 %vm3811_vm1, %v10424_v44  ;;  %15746 = vmatpush3.xpose.msk.msra.mxu1 %vm3811_vm1, %v10425_v51  ;;  %v11649_v55 = vmul.f32 %v10425_v51, %v10425_v51  ;;  %v10373_v37 = vpop.xlane.xlu1 %10372  ;;  %v11664_v39 = vsel %vm3811_vm1, %v11648_v22, 0.0 }
 0x6d9   :  { %v17302_v27 = vpop.eup %17301  ;;  %v10401_v20 = vmax.f32 %v10373_v37, 1e-24  ;;  %v10376_v45 = vpop.xlane.xlu0 %10375  ;;  %15751 = vmatpush3.xpose.msk.msra.mxu0 %vm3811_vm1, %v10426_v40  ;;  %v11650_v53 = vmul.f32 %v10426_v40, %v10426_v40  ;;  %10317 = vadd.xlane.f32.xlu1 %v10316_v21 }
 0x6da   :  { %v17304_v48 = vpop.eup %17303  ;;  %v11665_v61 = vsel %vm3811_vm1, %v11649_v55, 0.0  ;;  %v10402_v16 = vmax.f32 %v10376_v45, 1e-24  ;;  %15747 = vmatprep.mubr.msk.f32.mxu1 %vm17402_vm0, %v21749_v29  ;;  %15752 = vmatprep.mubr.msk.f32.mxu0 %vm17402_vm0, %v21749_v29  ;;  %v7115_v38 = vpop.f32.mrb[88].mxu1  ;;  %v10427_v58 = vmul.f32 %v17302_v27, %v20084_v47 }
 0x6db   :  { %v11666_v50 = vadd.f32 %v11665_v61, %v11664_v39  ;;  %17313 = vrsqrt.f32 %v10401_v20  ;;  %v7565_v41 = vadd.f32 %v7115_v38, %v7042_v42  ;;  %v7188_v15 = vpop.f32.mrb[90].mxu0  ;;  %15748 = vmatmul.mubr.msk.f32.vlgmr.msra.gmra.mrb[128].mxu1 %vm3811_vm1, %v10425_v51  ;;  %15755 = vmatprep.subr.mxu1 %v21749_v29  ;;  %v15537_v11 = vpop.f32.mrb[89].mxu1  ;;  %v11667_v14 = vsel %vm3811_vm1, %v11650_v53, 0.0 }
 0x6dc   :  { %17315 = vrsqrt.f32 %v10402_v16  ;;  %15753 = vmatmul.mubr.msk.f32.vlgmr.msra.gmra.mrb[130].mxu0 %vm3811_vm1, %v10426_v40  ;;  %15760 = vmatprep.subr.mxu0 %v21749_v29  ;;  %v11651_v17 = vmul.f32 %v10427_v58, %v10427_v58  ;;  %v10379_v36 = vpop.xlane.xlu1 %10378  ;;  %v15544_v46 = vpop.f32.mrb[91].mxu0  ;;  %v10428_v47 = vmul.f32 %v17304_v48, %v20155_v18 }
 0x6dd   :  { %v17306_v59 = vpop.eup %17305  ;;  %v11668_v28 = vadd.f32 %v11667_v14, %v11666_v50  ;;  %v7566_v6 = vadd.f32 %v7565_v41, %v7188_v15  ;;  %15756 = vmatpush3.xpose.msk.msra.mxu1 %vm3811_vm1, %v10427_v58  ;;  %v10403_v4 = vmax.f32 %v10379_v36, 1e-24  ;;  %v10382_v33 = vpop.xlane.xlu0 %10381  ;;  %8940 = vadd.xlane.f32.xlu1 %v20914_v2 }
 0x6de   :  { %v17308_v24 = vpop.eup %17307  ;;  %v11669_v63 = vsel %vm3811_vm1, %v11651_v17, 0.0  ;;  %v10404_v31 = vmax.f32 %v10382_v33, 1e-24  ;;  %15761 = vmatpush3.xpose.msk.msra.mxu0 %vm3811_vm1, %v10428_v47  ;;  %v11652_v44 = vmul.f32 %v10428_v47, %v10428_v47  ;;  %15757 = vmatprep.mubr.msk.f32.mxu1 %vm17402_vm0, %v21749_v29  ;;  %v10429_v18 = vmul.f32 %v17306_v59, %v20157_v32  ;;  %v17351_v33 = vld [vmem:[%s21700_s0] sm:$0xff] }
 0x6df   :  { %v11670_v19 = vadd.f32 %v11669_v63, %v11668_v28  ;;  %17317 = vrsqrt.f32 %v10403_v4  ;;  %15762 = vmatprep.mubr.msk.f32.mxu0 %vm17402_vm0, %v21749_v29  ;;  %v7261_v54 = vpop.f32.mrb[90].mxu1  ;;  %15765 = vmatprep.subr.mxu1 %v21749_v29  ;;  %v10430_v2 = vmul.f32 %v17308_v24, %v20159_v12  ;;  %v21099_v24 = vadd.f32 %v17351_v33, %v21022_v26  ;;  %v11776_v33 = vld [vmem:[%s21707_s7 + $0xb8] sm:$0xff] }
 0x6e0   :  { %17319 = vrsqrt.f32 %v10404_v31  ;;  %v11671_v25 = vsel %vm3811_vm1, %v11652_v44, 0.0  ;;  %v7567_v60 = vadd.f32 %v7566_v6, %v7261_v54  ;;  %v7334_v23 = vpop.f32.mrb[92].mxu0  ;;  %15758 = vmatmul.mubr.msk.f32.vlgmr.msra.gmra.mrb[130].mxu1 %vm3811_vm1, %v10427_v58  ;;  %15770 = vmatprep.subr.mxu0 %v21749_v29  ;;  %v15551_v32 = vpop.f32.mrb[91].mxu1  ;;  %v11653_v10 = vmul.f32 %v10429_v18, %v10429_v18  ;;  %v11758_v54 = vld [vmem:[%s21707_s7 + $0x28] sm:$0xff] }
 0x6e1   :  { %v17310_v30 = vpop.eup %17309  ;;  %v11672_v22 = vadd.f32 %v11671_v25, %v11670_v19  ;;  %15763 = vmatmul.mubr.msk.f32.vlgmr.msra.gmra.mrb[132].mxu0 %vm3811_vm1, %v10428_v47  ;;  %15766 = vmatpush3.xpose.msk.msra.mxu1 %vm3811_vm1, %v10429_v18  ;;  %v10385_v7 = vpop.xlane.xlu1 %10384  ;;  %v11654_v12 = vmul.f32 %v10430_v2, %v10430_v2  ;;  %v11753_v32 = vld [vmem:[%s21707_s7] sm:$0xff] }
 0x6e2   :  { %v10388_v0 = vpop.xlane.xlu0 %10387  ;;  %v17312_v3 = vpop.eup %17311  ;;  %v7568_v8 = vadd.f32 %v7567_v60, %v7334_v23  ;;  %v11673_v42 = vsel %vm3811_vm1, %v11653_v10, 0.0  ;;  %v10405_v1 = vmax.f32 %v10385_v7, 1e-24  ;;  %15771 = vmatpush3.xpose.msk.msra.mxu0 %vm3811_vm1, %v10430_v2  ;;  %15767 = vmatprep.mubr.msk.f32.mxu1 %vm17402_vm0, %v21749_v29  ;;  %v10431_v40 = vmul.f32 %v17310_v30, %v20161_v5  ;;  %v11757_v10 = vld [vmem:[%s21707_s7 + $0x20] sm:$0xff]  ;;  %v11756_v7 = vld [vmem:[%s21707_s7 + $0x18] sm:$0xff] }
 0x6e3   :  { %v10406_v51 = vmax.f32 %v10388_v0, 1e-24  ;;  %v15558_v35 = vpop.f32.mrb[93].mxu0  ;;  %v11674_v52 = vadd.f32 %v11673_v42, %v11672_v22  ;;  %15772 = vmatprep.mubr.msk.f32.mxu0 %vm17402_vm0, %v21749_v29  ;;  %15775 = vmatprep.subr.mxu1 %v21749_v29  ;;  %v10432_v21 = vmul.f32 %v17312_v3, %v20163_v13  ;;  %v11675_v55 = vsel %vm3811_vm1, %v11654_v12, 0.0  ;;  %v11760_v42 = vld [vmem:[%s21707_s7 + $0x38] sm:$0xff] }
 0x6e4   :  { %17321 = vrsqrt.f32 %v10405_v1  ;;  %v7407_v37 = vpop.f32.mrb[92].mxu1  ;;  %15768 = vmatmul.mubr.msk.f32.vlgmr.msra.gmra.mrb[132].mxu1 %vm3811_vm1, %v10429_v18  ;;  %15780 = vmatprep.subr.mxu0 %v21749_v29  ;;  %v11655_v5 = vmul.f32 %v10431_v40, %v10431_v40  ;;  %v11766_v1 = vld [vmem:[%s21707_s7 + $0x68] sm:$0xff]  ;;  %v17022_v35 = vpack.c.bf16 %v11757_v10, %v11753_v32  ;;  %v11781_v32 = vld [vmem:[%s21707_s7 + $0xe0] sm:$0xff] }
 0x6e5   :  { %v17314_v27 = vpop.eup %17313  ;;  %17323 = vrsqrt.f32 %v10406_v51  ;;  %v7569_v20 = vadd.f32 %v7568_v8, %v7407_v37  ;;  %v7480_v45 = vpop.f32.mrb[94].mxu0  ;;  %15773 = vmatmul.mubr.msk.f32.vlgmr.msra.gmra.mrb[134].mxu0 %vm3811_vm1, %v10430_v2  ;;  %15776 = vmatpush3.xpose.msk.msra.mxu1 %vm3811_vm1, %v10431_v40  ;;  %v11656_v48 = vmul.f32 %v10432_v21, %v10432_v21  ;;  %v11676_v38 = vadd.f32 %v11675_v55, %v11674_v52  ;;  %v11755_v52 = vld [vmem:[%s21707_s7 + $0x10] sm:$0xff] }
 0x6e6   :  { %v15565_v53 = vpop.f32.mrb[93].mxu1  ;;  %v17316_v13 = vpop.eup %17315  ;;  %15781 = vmatpush3.xpose.msk.msra.mxu0 %vm3811_vm1, %v10432_v21  ;;  %15777 = vmatprep.mubr.msk.f32.mxu1 %vm17402_vm0, %v21749_v29  ;;  %v10433_v16 = vmul.f32 %v17314_v27, %v20165_v9  ;;  %v11677_v15 = vsel %vm3811_vm1, %v11655_v5, 0.0  ;;  %v11759_v37 = vld [vmem:[%s21707_s7 + $0x30] sm:$0xff]  ;;  %v11761_v27 = vld [vmem:[%s21707_s7 + $0x40] sm:$0xff]  ;;  %v17052_v5 = vpack.c.bf16 %v11760_v42, %v11756_v7  ;;  %v11790_v7 = vld [vmem:[%s21707_s7 + $0x128] sm:$0xff] }
 0x6e7   :  { %v10391_v39 = vpop.xlane.xlu1 %10390  ;;  %v15572_v61 = vpop.f32.mrb[95].mxu0  ;;  %v7570_v58 = vadd.f32 %v7569_v20, %v7480_v45  ;;  %15782 = vmatprep.mubr.msk.f32.mxu0 %vm17402_vm0, %v21749_v29  ;;  %15785 = vmatprep.subr.mxu1 %v21749_v29  ;;  %v10434_v41 = vmul.f32 %v17316_v13, %v20167_v43  ;;  %v11678_v14 = vadd.f32 %v11677_v15, %v11676_v38  ;;  %v11679_v46 = vsel %vm3811_vm1, %v11656_v48, 0.0  ;;  %v11765_v20 = vld [vmem:[%s21707_s7 + $0x60] sm:$0xff]  ;;  %v11768_v38 = vld [vmem:[%s21707_s7 + $0x78] sm:$0xff]  ;;  %v11774_v15 = vld [vmem:[%s21707_s7 + $0xa8] sm:$0xff] }
 0x6e8   :  { %v10407_v50 = vmax.f32 %v10391_v39, 1e-24  ;;  %15778 = vmatmul.mubr.msk.f32.vlgmr.msra.gmra.mrb[134].mxu1 %vm3811_vm1, %v10431_v40  ;;  %15790 = vmatprep.subr.mxu0 %v21749_v29  ;;  %v11657_v11 = vmul.f32 %v10433_v16, %v10433_v16  ;;  %v11779_v42 = vld [vmem:[%s21707_s7 + $0xd0] sm:$0xff] }
 0x6e9   :  { %v17318_v17 = vpop.eup %17317  ;;  %v7553_v9 = vpop.f32.mrb[94].mxu1  ;;  %15783 = vmatmul.mubr.msk.f32.vlgmr.msra.gmra.mrb[136].mxu0 %vm3811_vm1, %v10432_v21  ;;  %15786 = vmatpush3.xpose.msk.msra.mxu1 %vm3811_vm1, %v10433_v16  ;;  %v11658_v36 = vmul.f32 %v10434_v41, %v10434_v41  ;;  %v11680_v6 = vadd.f32 %v11679_v46, %v11678_v14 }
 0x6ea   :  { %17325 = vrsqrt.f32 %v10407_v50  ;;  %v17320_v47 = vpop.eup %17319  ;;  %v7571_v43 = vadd.f32 %v7570_v58, %v7553_v9  ;;  %v15579_v59 = vpop.f32.mrb[95].mxu1  ;;  %15791 = vmatpush3.xpose.msk.msra.mxu0 %vm3811_vm1, %v10434_v41  ;;  %15787 = vmatprep.mubr.msk.f32.mxu1 %vm17402_vm0, %v21749_v29  ;;  %v10435_v28 = vmul.f32 %v17318_v17, %v20169_v62  ;;  %v11681_v4 = vsel %vm3811_vm1, %v11657_v11, 0.0  ;;  %v17352_v62 = vld [vmem:[%s21700_s0 + $0x8] sm:$0xff]  ;;  %v11763_v9 = vld [vmem:[%s21707_s7 + $0x50] sm:$0xff]  ;;  %s17404_s0 = smov [#allocation4]  }
 0x6eb   :  { %15792 = vmatprep.mubr.msk.f32.mxu0 %vm17402_vm0, %v21749_v29  ;;  %15795 = vmatprep.subr.mxu1 %v21749_v29  ;;  %v10436_v63 = vmul.f32 %v17320_v47, %v20171_v57  ;;  %v11682_v26 = vadd.f32 %v11681_v4, %v11680_v6  ;;  %v11683_v19 = vsel %vm3811_vm1, %v11658_v36, 0.0  ;;  %v11754_v57 = vld [vmem:[%s21707_s7 + $0x8] sm:$0xff]  ;;  %v17054_v50 = vpack.c.bf16 %v11759_v37, %v11755_v52  ;;  %v11767_v36 = vld [vmem:[%s21707_s7 + $0x70] sm:$0xff]  ;;  %v11772_v47 = vld [vmem:[%s21707_s7 + $0x98] sm:$0xff]  ;;  %s12350_s26 = sshll.u32 %s17404_s0, 4  ;;  %s12351_s26 = int_to_ptr.vmem [resolvable:$true] %s12350_s26 }
 0x6ec   :  { %v21108_v31 = vadd.f32 %v17352_v62, %v7571_v43  ;;  %15788 = vmatmul.mubr.msk.f32.vlgmr.msra.gmra.mrb[136].mxu1 %vm3811_vm1, %v10433_v16  ;;  %15800 = vmatprep.subr.mxu0 %v21749_v29  ;;  %v11659_v44 = vmul.f32 %v10435_v28, %v10435_v28  ;;  %v17020_v8 = vpack.c.bf16 %v11758_v54, %v11754_v57  ;;  %v11764_v16 = vld [vmem:[%s21707_s7 + $0x58] sm:$0xff]  ;;  %v11769_v43 = vld [vmem:[%s21707_s7 + $0x80] sm:$0xff]  ;;  %v11782_v62 = vld [vmem:[%s21707_s7 + $0xe8] sm:$0xff]  ;;  %s17353_s27 = scalar_lea.vmem %s12351_s26, 16  ;;  %s17357_s28 = scalar_lea.vmem %s12351_s26, 32 }
 0x6ed   :  { %15793 = vmatmul.mubr.msk.f32.vlgmr.msra.gmra.mrb[138].mxu0 %vm3811_vm1, %v10434_v41  ;;  %15796 = vmatpush3.xpose.msk.msra.mxu1 %vm3811_vm1, %v10435_v28  ;;  %v11660_v18 = vmul.f32 %v10436_v63, %v10436_v63  ;;  %v11684_v60 = vadd.f32 %v11683_v19, %v11682_v26  ;;  %v17026_v41 = vpack.c.bf16 %v11765_v20, %v11761_v27  ;;  %v11773_v59 = vld [vmem:[%s21707_s7 + $0xa0] sm:$0xff]  ;;  %v11771_v57 = vld [vmem:[%s21707_s7 + $0x90] sm:$0xff]  ;;  %p17354_p0 = scmp.ne.s32.totalorder %s12351_s26, %s17353_s27  ;;  %p17358_p1 = scmp.lt.s32.totalorder %s12351_s26, %s12351_s26 }
 0x6ee   :  { %v17322_v2 = vpop.eup %17321  ;;  %v11710_v25 = vadd.f32 %v21108_v31, %v21099_v24  ;;  %15801 = vmatpush3.xpose.msk.msra.mxu0 %vm3811_vm1, %v10436_v63  ;;  %15797 = vmatprep.mubr.msk.f32.mxu1 %vm17402_vm0, %v21749_v29  ;;  %v11685_v23 = vsel %vm3811_vm1, %v11659_v44, 0.0  ;;  %v17056_v46 = vpack.c.bf16 %v11768_v38, %v11764_v16  ;;  %v17030_v19 = vpack.c.bf16 %v11773_v59, %v11769_v43  ;;  %v11775_v54 = vld [vmem:[%s21707_s7 + $0xb0] sm:$0xff]  ;;  %v11800_v38 = vld [vmem:[%s21707_s7 + $0x178] sm:$0xff]  ;;  %p17359_p2 = scmp.lt.s32.totalorder %s17357_s28, %s17353_s27 }
 0x6ef   :  { %v17324_v30 = vpop.eup %17323  ;;  %15802 = vmatprep.mubr.msk.f32.mxu0 %vm17402_vm0, %v21749_v29  ;;  %15805 = vmatprep.subr.mxu1 %v21749_v29  ;;  %v10437_v22 = vmul.f32 %v17322_v2, %v20173_v34  ;;  %v11686_v3 = vadd.f32 %v11685_v23, %v11684_v60  ;;  %v11762_v34 = vld [vmem:[%s21707_s7 + $0x48] sm:$0xff]  ;;  %v17060_v2 = vpack.c.bf16 %v11776_v33, %v11772_v47  ;;  %v11780_v60 = vld [vmem:[%s21707_s7 + $0xd8] sm:$0xff]  ;;  %v11777_v23 = vld [vmem:[%s21707_s7 + $0xc0] sm:$0xff] }
 0x6f0   :  { %v11711_v0 = vrot.slane %v11710_v25, 4  ;;  %15798 = vmatmul.mubr.msk.f32.vlgmr.msra.gmra.mrb[138].mxu1 %vm3811_vm1, %v10435_v28  ;;  %15810 = vmatprep.subr.mxu0 %v21749_v29  ;;  %v10438_v12 = vmul.f32 %v17324_v30, %v20175_v49  ;;  %v11687_v49 = vsel %vm3811_vm1, %v11660_v18, 0.0  ;;  %v17024_v48 = vpack.c.bf16 %v11766_v1, %v11762_v34  ;;  %v11784_v30 = vld [vmem:[%s21707_s7 + $0xf8] sm:$0xff]  ;;  %v11783_v34 = vld [vmem:[%s21707_s7 + $0xf0] sm:$0xff]  ;;  %v11805_v47 = vld [vmem:[%s21707_s7 + $0x1a0] sm:$0xff]  ;;  %p17360_p3 = por %p17359_p2, %p17358_p1 }
 0x6f1   :  { %15803 = vmatmul.mubr.msk.f32.vlgmr.msra.gmra.mrb[140].mxu0 %vm3811_vm1, %v10436_v63  ;;  %15806 = vmatpush3.xpose.msk.msra.mxu1 %vm3811_vm1, %v10437_v22  ;;  %v11661_v51 = vmul.f32 %v10437_v22, %v10437_v22  ;;  %v11688_v55 = vadd.f32 %v11687_v49, %v11686_v3  ;;  %v11778_v63 = vld [vmem:[%s21707_s7 + $0xc8] sm:$0xff]  ;;  %v17058_v18 = vpack.c.bf16 %v11767_v36, %v11763_v9  ;;  %v11789_v49 = vld [vmem:[%s21707_s7 + $0x120] sm:$0xff]  ;;  %v11804_v36 = vld [vmem:[%s21707_s7 + $0x198] sm:$0xff] }
 0x6f2   :  { %v11712_v40 = vadd.f32 %v11711_v0, %v11710_v25  ;;  %15811 = vmatpush3.xpose.msk.msra.mxu0 %vm3811_vm1, %v10438_v12  ;;  %15807 = vmatprep.mubr.msk.f32.mxu1 %vm17402_vm0, %v21749_v29  ;;  %v11662_v21 = vmul.f32 %v10438_v12, %v10438_v12  ;;  %v17032_v25 = vpack.c.bf16 %v11782_v62, %v11778_v63  ;;  %v11808_v59 = vld [vmem:[%s21707_s7 + $0x1b8] sm:$0xff]  ;;  %v11803_v62 = vld [vmem:[%s21707_s7 + $0x190] sm:$0xff]  ;;  %p17361_p4 = pnand %p17360_p3, %p17354_p0 }
 0x6f3   :  { %15812 = vmatprep.mubr.msk.f32.mxu0 %vm17402_vm0, %v21749_v29  ;;  %15815 = vmatprep.subr.mxu1 %v21749_v29  ;;  %v11689_v53 = vsel %vm3811_vm1, %v11661_v51, 0.0  ;;  %v17062_v0 = vpack.c.bf16 %v11775_v54, %v11771_v57  ;;  %v17064_v1 = vpack.c.bf16 %v11784_v30, %v11780_v60  ;;  %v17066_v27 = vpack.c.bf16 %v11783_v34, %v11779_v42  ;;  %v11813_v57 = vld [vmem:[%s21707_s7 + $0x1e0] sm:$0xff]  ;;  %v11811_v30 = vld [vmem:[%s21707_s7 + $0x1d0] sm:$0xff] }
 0x6f4   :  { %v17326_v45 = vpop.eup %17325  ;;  %v11713_v13 = vrot.slane %v11712_v40, 2  ;;  %15808 = vmatmul.mubr.msk.f32.vlgmr.msra.gmra.mrb[140].mxu1 %vm3811_vm1, %v10437_v22  ;;  %v11690_v61 = vadd.f32 %v11689_v53, %v11688_v55  ;;  %17021 = vmatprep.subr.bf16.mxu0 %v17020_v8  ;;  %v11691_v58 = vsel %vm3811_vm1, %v11662_v21, 0.0  ;;  %v11786_v22 = vld [vmem:[%s21707_s7 + $0x108] sm:$0xff]  ;;  %v17034_v8 = vpack.c.bf16 %v11781_v32, %v11777_v23  ;;  %v11791_v53 = vld [vmem:[%s21707_s7 + $0x130] sm:$0xff]  ;;  %v12523_v34 = vld [vmem:[%s21705_s5] ss:$0 sm:$0xff] }
 0x6f5   :  { %v10439_v39 = vmul.f32 %v17326_v45, %v20177_v56  ;;  %15813 = vmatmul.mubr.msk.f32.vlgmr.msra.gmra.mrb[142].mxu0 %vm3811_vm1, %v10438_v12  ;;  %15817 = vmatprep.mubr.msk.f32.mxu1 %vm17402_vm0, %v21749_v29  ;;  %v11770_v56 = vld [vmem:[%s21707_s7 + $0x88] sm:$0xff]  ;;  %v17036_v51 = vpack.c.bf16 %v11790_v7, %v11786_v22  ;;  %v11787_v45 = vld [vmem:[%s21707_s7 + $0x110] sm:$0xff] }
 0x6f6   :  { %v11714_v11 = vadd.f32 %v11713_v13, %v11712_v40  ;;  %v11692_v17 = vadd.f32 %v11691_v58, %v11690_v61  ;;  %17023 = vmatpush1.bf16.msra.mxu0 %v17022_v35  ;;  %v17028_v4 = vpack.c.bf16 %v11774_v15, %v11770_v56  ;;  %11903 = vmatprep.mubr.f32.mxu0 %v21749_v29  ;;  %v11792_v40 = vld [vmem:[%s21707_s7 + $0x138] sm:$0xff]  ;;  %v11794_v21 = vld [vmem:[%s21707_s7 + $0x148] sm:$0xff]  ;;  %v11797_v61 = vld [vmem:[%s21707_s7 + $0x160] sm:$0xff] }
 0x6f7   :  { %15816 = vmatpush3.xpose.msk.msra.mxu1 %vm3811_vm1, %v10439_v39  ;;  %v11663_v14 = vmul.f32 %v10439_v39, %v10439_v39  ;;  %17025 = vmatprep.subr.bf16.mxu0 %v17024_v48  ;;  %v11798_v55 = vld [vmem:[%s21707_s7 + $0x168] sm:$0xff]  ;;  %v11796_v13 = vld [vmem:[%s21707_s7 + $0x158] sm:$0xff]  ;;  %v17070_v56 = vpack.c.bf16 %v11791_v53, %v11787_v45  ;;  %v11815_v22 = vld [vmem:[%s21707_s7 + $0x1f0] sm:$0xff] }
 0x6f8   :  { %17053 = vmatprep.subr.bf16.mxu1 %v17052_v5  ;;  %v11715_v28 = vrot.slane %v11714_v11, 1  ;;  %v17040_v48 = vpack.c.bf16 %v11798_v55, %v11794_v21  ;;  %v11802_v58 = vld [vmem:[%s21707_s7 + $0x188] sm:$0xff]  ;;  %v12065_v55 = vld [vmem:[%s21709_s9] sm:$0xff] }
 0x6f9   :  { %v11693_v6 = vsel %vm3811_vm1, %v11663_v14, 0.0  ;;  %v11799_v14 = vld [vmem:[%s21707_s7 + $0x170] sm:$0xff]  ;;  %v12097_v45 = vld [vmem:[%s21709_s9 + $0x100] sm:$0xff]  ;;  %v12098_v53 = vld [vmem:[%s21709_s9 + $0x108] sm:$0xff] }
 0x6fa   :  { %15818 = vmatmul.mubr.msk.f32.vlgmr.msra.gmra.mrb[142].mxu1 %vm3811_vm1, %v10439_v39  ;;  %v11694_v44 = vadd.f32 %v11693_v6, %v11692_v17  ;;  %v11716_v26 = vadd.f32 %v11715_v28, %v11714_v11  ;;  %17027 = vmatpush1.bf16.msra.mxu0 %v17026_v41  ;;  %v11793_v39 = vld [vmem:[%s21707_s7 + $0x140] sm:$0xff]  ;;  %v11795_v11 = vld [vmem:[%s21707_s7 + $0x150] sm:$0xff]  ;;  %v17072_v17 = vpack.c.bf16 %v11800_v38, %v11796_v13  ;;  %v11810_v28 = vld [vmem:[%s21707_s7 + $0x1c8] sm:$0xff] }
 0x6fb   :  { %17055 = vmatpush1.bf16.msra.mxu1 %v17054_v50  ;;  %17029 = vmatprep.subr.bf16.mxu0 %v17028_v4  ;;  %v11806_v50 = vld [vmem:[%s21707_s7 + $0x1a8] sm:$0xff]  ;;  %v17042_v15 = vpack.c.bf16 %v11797_v61, %v11793_v39  ;;  %v17074_v33 = vpack.c.bf16 %v11799_v14, %v11795_v11 }
 0x6fc   :  { %11695 = vadd.xlane.f32.xlu1 %v11694_v44  ;;  %17057 = vmatprep.subr.bf16.mxu1 %v17056_v46  ;;  %v11718_v10 = vmul.f32 0.0625, %v11716_v26  ;;  %v17044_v9 = vpack.c.bf16 %v11806_v50, %v11802_v58  ;;  %v11801_v46 = vld [vmem:[%s21707_s7 + $0x180] sm:$0xff]  ;;  %v11814_v6 = vld [vmem:[%s21707_s7 + $0x1e8] sm:$0xff]  ;;  %v17076_v44 = vpack.c.bf16 %v11808_v59, %v11804_v36  ;;  %v11807_v26 = vld [vmem:[%s21707_s7 + $0x1b0] sm:$0xff] }
 0x6fd   :  { %11980 = vmatprep.mubr.f32.mxu1 %v21749_v29  ;;  %v17046_v63 = vpack.c.bf16 %v11805_v47, %v11801_v46  ;;  %v17078_v23 = vpack.c.bf16 %v11807_v26, %v11803_v62 }
 0x6fe   :  { %v21246_v12 = vsub.f32 %v21099_v24, %v11718_v10  ;;  %v21249_v3 = vsub.f32 %v21108_v31, %v11718_v10  ;;  %17031 = vmatpush1.bf16.msra.mxu0 %v17030_v19  ;;  %v11788_v24 = vld [vmem:[%s21707_s7 + $0x118] sm:$0xff]  ;;  %v11785_v31 = vld [vmem:[%s21707_s7 + $0x100] sm:$0xff] }
 0x6ff   :  { %17059 = vmatpush1.bf16.msra.mxu1 %v17058_v18  ;;  %17033 = vmatprep.subr.bf16.mxu0 %v17032_v25  ;;  %v17038_v20 = vpack.c.bf16 %v11789_v49, %v11785_v31  ;;  %v17068_v5 = vpack.c.bf16 %v11792_v40, %v11788_v24  ;;  %v17048_v18 = vpack.c.bf16 %v11814_v6, %v11810_v28  ;;  %v11809_v19 = vld [vmem:[%s21707_s7 + $0x1c0] sm:$0xff]  ;;  %v11816_v25 = vld [vmem:[%s21707_s7 + $0x1f8] sm:$0xff] }
 0x700   :  { %17061 = vmatprep.subr.bf16.mxu1 %v17060_v2  ;;  %v11721_v35 = vmul.f32 %v21246_v12, %v21246_v12  ;;  %v11722_v52 = vmul.f32 %v21249_v3, %v21249_v3  ;;  %v11812_v2 = vld [vmem:[%s21707_s7 + $0x1d8] sm:$0xff]  ;;  %v17050_v32 = vpack.c.bf16 %v11813_v57, %v11809_v19  ;;  %v12524_v24 = vld [vmem:[%s21706_s6] ss:$0 sm:$0xff]  ;;  %v12115_v57 = vld [vmem:[%s21709_s9 + $0x190] sm:$0xff] }
 0x701   :  { %v17080_v10 = vpack.c.bf16 %v11816_v25, %v11812_v2  ;;  %v12113_v40 = vld [vmem:[%s21709_s9 + $0x180] sm:$0xff]  ;;  %v12084_v19 = vld [vmem:[%s21709_s9 + $0x98] sm:$0xff] }
 0x702   :  { %v11723_v37 = vadd.f32 %v11722_v52, %v11721_v35  ;;  %17035 = vmatpush1.bf16.msra.mxu0 %v17034_v8  ;;  %v17082_v8 = vpack.c.bf16 %v11815_v22, %v11811_v30 }
 0x703   :  { %17063 = vmatpush1.bf16.msra.mxu1 %v17062_v0  ;;  %17037 = vmatprep.subr.bf16.mxu0 %v17036_v51 }
 0x704   :  { %17065 = vmatprep.subr.bf16.mxu1 %v17064_v1  ;;  %v11724_v16 = vrot.slane %v11723_v37, 4 }
 0x706   :  { %v11725_v41 = vadd.f32 %v11724_v16, %v11723_v37  ;;  %17039 = vmatpush1.bf16.msra.mxu0 %v17038_v20  ;;  %v12066_v37 = vld [vmem:[%s21709_s9 + $0x8] sm:$0xff] }
 0x707   :  { %17067 = vmatpush1.bf16.msra.mxu1 %v17066_v27  ;;  %17041 = vmatprep.subr.bf16.mxu0 %v17040_v48  ;;  %v17086_v20 = vpack.c.bf16 %v12066_v37, %v12065_v55 }
 0x708   :  { %17069 = vmatprep.subr.bf16.mxu1 %v17068_v5  ;;  %v11726_v43 = vrot.slane %v11725_v41, 2  ;;  %v17118_v5 = vpack.c.bf16 %v12098_v53, %v12097_v45  ;;  %v12101_v53 = vld [vmem:[%s21709_s9 + $0x120] sm:$0xff] }
 0x70a   :  { %v11727_v4 = vadd.f32 %v11726_v43, %v11725_v41  ;;  %17043 = vmatpush1.bf16.msra.mxu0 %v17042_v15 }
 0x70b   :  { %17071 = vmatpush1.bf16.msra.mxu1 %v17070_v56  ;;  %17045 = vmatprep.subr.bf16.mxu0 %v17044_v9 }
 0x70c   :  { %17073 = vmatprep.subr.bf16.mxu1 %v17072_v17  ;;  %v11728_v54 = vrot.slane %v11727_v4, 1 }
 0x70e   :  { %v11729_v60 = vadd.f32 %v11728_v54, %v11727_v4  ;;  %17047 = vmatpush1.bf16.msra.mxu0 %v17046_v63 }
 0x70f   :  { %17075 = vmatpush1.bf16.msra.mxu1 %v17074_v33  ;;  %17049 = vmatprep.subr.bf16.mxu0 %v17048_v18  ;;  %v12083_v18 = vld [vmem:[%s21709_s9 + $0x90] sm:$0xff] }
 0x710   :  { %17077 = vmatprep.subr.bf16.mxu1 %v17076_v44  ;;  %v11730_v7 = vmul.f32 0.0625, %v11729_v60  ;;  %v17088_v60 = vpack.c.bf16 %v12084_v19, %v12083_v18  ;;  %v12122_v18 = vld [vmem:[%s21709_s9 + $0x1c8] sm:$0xff]  ;;  %v12073_v19 = vld [vmem:[%s21709_s9 + $0x40] sm:$0xff] }
 0x712   :  { %v11731_v0 = vadd.f32 1e-05, %v11730_v7  ;;  %17051 = vmatpush1.bf16.msra.mxu0 %v17050_v32  ;;  %v12067_v32 = vld [vmem:[%s21709_s9 + $0x10] sm:$0xff] }
 0x713   :  { %17079 = vmatpush1.bf16.msra.mxu1 %v17078_v23  ;;  %v12116_v23 = vld [vmem:[%s21709_s9 + $0x198] sm:$0xff] }
 0x714   :  { %17081 = vmatprep.subr.bf16.mxu1 %v17080_v10  ;;  %17327 = vrsqrt.f32 %v11731_v0  ;;  %v12068_v10 = vld [vmem:[%s21709_s9 + $0x18] sm:$0xff]  ;;  %v17120_v7 = vpack.c.bf16 %v12116_v23, %v12115_v57  ;;  %v12074_v57 = vld [vmem:[%s21709_s9 + $0x48] sm:$0xff]  ;;  %v12105_v23 = vld [vmem:[%s21709_s9 + $0x140] sm:$0xff] }
 0x715   :  { %v17090_v0 = vpack.c.bf16 %v12068_v10, %v12067_v32  ;;  %v12106_v32 = vld [vmem:[%s21709_s9 + $0x148] sm:$0xff]  ;;  %v12091_v10 = vld [vmem:[%s21709_s9 + $0xd0] sm:$0xff] }
 0x717   :  { %17083 = vmatpush1.bf16.msra.mxu1 %v17082_v8  ;;  %v12099_v8 = vld [vmem:[%s21709_s9 + $0x110] sm:$0xff] }
 0x71e   :  { %v17328_v42 = vpop.eup %17327 }
 0x71f   :  { %v11733_v1 = vmul.f32 %v17328_v42, %v21246_v12  ;;  %v11734_v51 = vmul.f32 %v17328_v42, %v21249_v3  ;;  %v12081_v12 = vld [vmem:[%s21709_s9 + $0x80] sm:$0xff]  ;;  %v12082_v3 = vld [vmem:[%s21709_s9 + $0x88] sm:$0xff]  ;;  %v12100_v42 = vld [vmem:[%s21709_s9 + $0x118] sm:$0xff] }
 0x720   :  { %v17084_v21 = vpack.c.bf16 %v12082_v3, %v12081_v12 }
 0x721   :  { %v11742_v31 = vmul.f32 %v12523_v34, %v11733_v1  ;;  %v11743_v35 = vmul.f32 %v12523_v34, %v11734_v51  ;;  %v17122_v1 = vpack.c.bf16 %v12100_v42, %v12099_v8  ;;  %v12092_v8 = vld [vmem:[%s21709_s9 + $0xd8] sm:$0xff]  ;;  %v12123_v42 = vld [vmem:[%s21709_s9 + $0x1d0] sm:$0xff] }
 0x722   :  { %17085 = vmatprep.subr.bf16.mxu0 %v17084_v21  ;;  %v12069_v21 = vld [vmem:[%s21709_s9 + $0x20] sm:$0xff] }
 0x723   :  { %v21359_v49 = vadd.f32 %v12524_v24, %v11742_v31  ;;  %v21365_v52 = vadd.f32 %v12524_v24, %v11743_v35  ;;  %v12085_v24 = vld [vmem:[%s21709_s9 + $0xa0] sm:$0xff]  ;;  %v12086_v31 = vld [vmem:[%s21709_s9 + $0xa8] sm:$0xff] }
 0x724   :  { %v12117_v35 = vld [vmem:[%s21709_s9 + $0x1a0] sm:$0xff]  ;;  %v17092_v3 = vpack.c.bf16 %v12086_v31, %v12085_v24  ;;  %v17104_v24 = vpack.c.bf16 %v12092_v8, %v12091_v10 }
 0x725   :  { %11904 = vmatmul.mubr.f32.vlgmr.msra.gmra.mrb[144].mxu0 %v21359_v49  ;;  %11981 = vmatmul.mubr.f32.vlgmr.msra.gmra.mrb[144].mxu1 %v21359_v49 }
 0x726   :  { %11909 = vmatprep.mubr.f32.mxu0 %v21749_v29  ;;  %11986 = vmatprep.mubr.f32.mxu1 %v21749_v29  ;;  %v12114_v29 = vld [vmem:[%s21709_s9 + $0x188] sm:$0xff] }
 0x727   :  { %v17116_v27 = vpack.c.bf16 %v12114_v29, %v12113_v40  ;;  %17087 = vmatpush3.bf16.msra.mxu0 %v17086_v20  ;;  %v12118_v40 = vld [vmem:[%s21709_s9 + $0x1a8] sm:$0xff] }
 0x728   :  { %17089 = vmatprep.subr.bf16.mxu0 %v17088_v60  ;;  %v12070_v29 = vld [vmem:[%s21709_s9 + $0x28] sm:$0xff]  ;;  %v17124_v20 = vpack.c.bf16 %v12118_v40, %v12117_v35  ;;  %v17102_v60 = vpack.c.bf16 %v12074_v57, %v12073_v19  ;;  %v12075_v35 = vld [vmem:[%s21709_s9 + $0x50] sm:$0xff] }
 0x729   :  { %11910 = vmatmul.mubr.f32.gmra.mrb[146].mxu0 %v21365_v52  ;;  %11987 = vmatmul.mubr.f32.gmra.mrb[146].mxu1 %v21365_v52  ;;  %v17094_v45 = vpack.c.bf16 %v12070_v29, %v12069_v21  ;;  %v12108_v29 = vld [vmem:[%s21709_s9 + $0x158] sm:$0xff] }
 0x72a   :  { %17117 = vmatprep.subr.bf16.mxu1 %v17116_v27 }
 0x72b   :  { %17119 = vmatpush3.bf16.msra.mxu1 %v17118_v5  ;;  %17091 = vmatpush3.bf16.msra.mxu0 %v17090_v0  ;;  %v12102_v5 = vld [vmem:[%s21709_s9 + $0x128] sm:$0xff]  ;;  %v17134_v0 = vpack.c.bf16 %v12106_v32, %v12105_v23 }
 0x72c   :  { %17121 = vmatprep.subr.bf16.mxu1 %v17120_v7  ;;  %17093 = vmatprep.subr.bf16.mxu0 %v17092_v3  ;;  %v12107_v3 = vld [vmem:[%s21709_s9 + $0x150] sm:$0xff] }
 0x72f   :  { %17123 = vmatpush3.bf16.msra.mxu1 %v17122_v1  ;;  %17095 = vmatpush3.bf16.msra.mxu0 %v17094_v45  ;;  %v17138_v45 = vpack.c.bf16 %v12108_v29, %v12107_v3 }
 0x730   :  { %17125 = vmatprep.subr.bf16.mxu1 %v17124_v20 }
 0x766   :  { %v7754_v48 = vpop.f32.mrb[96].mxu0 }
 0x767   :  { %v15584_v13 = vpop.f32.mrb[97].mxu0  ;;  %v8853_v61 = vsel %vm5044_vm2, %v7754_v48, 0.0 }
 0x76a   :  { %v7827_v39 = vpop.f32.mrb[96].mxu1 }
 0x76b   :  { %v8854_v16 = vsel %vm5044_vm2, %v7827_v39, 0.0  ;;  %v7900_v38 = vpop.f32.mrb[98].mxu0  ;;  %v15589_v58 = vpop.f32.mrb[97].mxu1  ;;  %v17126_v39 = vpack.c.bf16 %v12102_v5, %v12101_v53  ;;  %v12125_v5 = vld [vmem:[%s21709_s9 + $0x1e0] sm:$0xff] }
 0x76c   :  { %v8855_v50 = vadd.f32 %v8854_v16, %v8853_v61  ;;  %v15594_v41 = vpop.f32.mrb[99].mxu0  ;;  %v8856_v56 = vsel %vm5044_vm2, %v7900_v38, 0.0  ;;  %v12087_v16 = vld [vmem:[%s21709_s9 + $0xb0] sm:$0xff]  ;;  %v12088_v38 = vld [vmem:[%s21709_s9 + $0xb8] sm:$0xff] }
 0x76d   :  { %v12119_v58 = vld [vmem:[%s21709_s9 + $0x1b0] sm:$0xff]  ;;  %17127 = vmatpush3.bf16.msra.mxu1 %v17126_v39  ;;  %v17096_v41 = vpack.c.bf16 %v12088_v38, %v12087_v16 }
 0x76e   :  { %v8857_v15 = vadd.f32 %v8856_v56, %v8855_v50  ;;  %v7973_v11 = vpop.f32.mrb[98].mxu1  ;;  %v12120_v56 = vld [vmem:[%s21709_s9 + $0x1b8] sm:$0xff] }
 0x76f   :  { %v8858_v14 = vsel %vm5044_vm2, %v7973_v11, 0.0  ;;  %v8046_v17 = vpop.f32.mrb[100].mxu0  ;;  %v15599_v9 = vpop.f32.mrb[99].mxu1  ;;  %v12072_v11 = vld [vmem:[%s21709_s9 + $0x38] sm:$0xff]  ;;  %17097 = vmatprep.subr.bf16.mxu0 %v17096_v41  ;;  %v12110_v41 = vld [vmem:[%s21709_s9 + $0x168] sm:$0xff] }
 0x770   :  { %v8859_v36 = vadd.f32 %v8858_v14, %v8857_v15  ;;  %v15604_v46 = vpop.f32.mrb[101].mxu0  ;;  %v8860_v47 = vsel %vm5044_vm2, %v8046_v17, 0.0  ;;  %v12071_v15 = vld [vmem:[%s21709_s9 + $0x30] sm:$0xff]  ;;  %v17128_v17 = vpack.c.bf16 %v12120_v56, %v12119_v58  ;;  %v12078_v58 = vld [vmem:[%s21709_s9 + $0x68] sm:$0xff] }
 0x771   :  { %v17098_v9 = vpack.c.bf16 %v12072_v11, %v12071_v15  ;;  %v12104_v46 = vld [vmem:[%s21709_s9 + $0x138] sm:$0xff] }
 0x772   :  { %v8861_v43 = vadd.f32 %v8860_v47, %v8859_v36  ;;  %v12103_v36 = vld [vmem:[%s21709_s9 + $0x130] sm:$0xff]  ;;  %17129 = vmatprep.subr.bf16.mxu1 %v17128_v17  ;;  %v12096_v17 = vld [vmem:[%s21709_s9 + $0xf8] sm:$0xff] }
 0x773   :  { %v8119_v59 = vpop.f32.mrb[100].mxu1  ;;  %17099 = vmatpush3.bf16.msra.mxu0 %v17098_v9  ;;  %v12127_v9 = vld [vmem:[%s21709_s9 + $0x1f0] sm:$0xff] }
 0x774   :  { %v8862_v28 = vsel %vm5044_vm2, %v8119_v59, 0.0  ;;  %v8192_v6 = vpop.f32.mrb[102].mxu0  ;;  %v15609_v4 = vpop.f32.mrb[101].mxu1 }
 0x775   :  { %v8863_v33 = vadd.f32 %v8862_v28, %v8861_v43  ;;  %v15614_v63 = vpop.f32.mrb[103].mxu0  ;;  %v8864_v62 = vsel %vm5044_vm2, %v8192_v6, 0.0  ;;  %v17130_v28 = vpack.c.bf16 %v12104_v46, %v12103_v36 }
 0x776   :  { %v12090_v63 = vld [vmem:[%s21709_s9 + $0xc8] sm:$0xff] }
 0x777   :  { %v8865_v44 = vadd.f32 %v8864_v62, %v8863_v33  ;;  %v12089_v33 = vld [vmem:[%s21709_s9 + $0xc0] sm:$0xff]  ;;  %17131 = vmatpush3.bf16.msra.mxu1 %v17130_v28 }
 0x778   :  { %v8265_v26 = vpop.f32.mrb[102].mxu1  ;;  %v12121_v62 = vld [vmem:[%s21709_s9 + $0x1c0] sm:$0xff] }
 0x779   :  { %v8866_v54 = vsel %vm5044_vm2, %v8265_v26, 0.0  ;;  %v8338_v2 = vpop.f32.mrb[104].mxu0  ;;  %v15619_v25 = vpop.f32.mrb[103].mxu1  ;;  %v17100_v26 = vpack.c.bf16 %v12090_v63, %v12089_v33  ;;  %v12112_v33 = vld [vmem:[%s21709_s9 + $0x178] sm:$0xff] }
 0x77a   :  { %v8867_v30 = vadd.f32 %v8866_v54, %v8865_v44  ;;  %v15624_v22 = vpop.f32.mrb[105].mxu0  ;;  %v8868_v34 = vsel %vm5044_vm2, %v8338_v2, 0.0  ;;  %v17132_v25 = vpack.c.bf16 %v12122_v18, %v12121_v62 }
 0x77b   :  { %17101 = vmatprep.subr.bf16.mxu0 %v17100_v26 }
 0x77c   :  { %v8869_v51 = vadd.f32 %v8868_v34, %v8867_v30  ;;  %v12124_v34 = vld [vmem:[%s21709_s9 + $0x1d8] sm:$0xff]  ;;  %17133 = vmatprep.subr.bf16.mxu1 %v17132_v25  ;;  %17103 = vmatpush3.bf16.msra.mxu0 %v17102_v60 }
 0x77d   :  { %v8411_v12 = vpop.f32.mrb[104].mxu1  ;;  %v17136_v31 = vpack.c.bf16 %v12124_v34, %v12123_v42  ;;  %17135 = vmatpush3.bf16.msra.mxu1 %v17134_v0  ;;  %17105 = vmatprep.subr.bf16.mxu0 %v17104_v24 }
 0x77e   :  { %v8870_v55 = vsel %vm5044_vm2, %v8411_v12, 0.0  ;;  %v8484_v37 = vpop.f32.mrb[106].mxu0  ;;  %v15629_v27 = vpop.f32.mrb[105].mxu1  ;;  %v12076_v12 = vld [vmem:[%s21709_s9 + $0x58] sm:$0xff] }
 0x77f   :  { %v8871_v48 = vadd.f32 %v8870_v55, %v8869_v51  ;;  %v15634_v13 = vpop.f32.mrb[107].mxu0  ;;  %v8872_v61 = vsel %vm5044_vm2, %v8484_v37, 0.0  ;;  %v17106_v21 = vpack.c.bf16 %v12076_v12, %v12075_v35  ;;  %v12093_v55 = vld [vmem:[%s21709_s9 + $0xe0] sm:$0xff]  ;;  %v12094_v37 = vld [vmem:[%s21709_s9 + $0xe8] sm:$0xff]  ;;  %17137 = vmatprep.subr.bf16.mxu1 %v17136_v31 }
 0x780   :  { %v17108_v53 = vpack.c.bf16 %v12094_v37, %v12093_v55  ;;  %v12077_v13 = vld [vmem:[%s21709_s9 + $0x60] sm:$0xff] }
 0x781   :  { %v8873_v50 = vadd.f32 %v8872_v61, %v8871_v48  ;;  %v12126_v48 = vld [vmem:[%s21709_s9 + $0x1e8] sm:$0xff]  ;;  %17107 = vmatpush3.bf16.msra.mxu0 %v17106_v21  ;;  %v17110_v11 = vpack.c.bf16 %v12078_v58, %v12077_v13  ;;  %17139 = vmatpush3.bf16.msra.mxu1 %v17138_v45 }
 0x782   :  { %v8557_v14 = vpop.f32.mrb[106].mxu1  ;;  %v17140_v38 = vpack.c.bf16 %v12126_v48, %v12125_v5  ;;  %17109 = vmatprep.subr.bf16.mxu0 %v17108_v53 }
 0x783   :  { %v8874_v47 = vsel %vm5044_vm2, %v8557_v14, 0.0  ;;  %v8630_v43 = vpop.f32.mrb[108].mxu0  ;;  %v15639_v59 = vpop.f32.mrb[107].mxu1  ;;  %v12095_v14 = vld [vmem:[%s21709_s9 + $0xf0] sm:$0xff] }
 0x784   :  { %v8875_v6 = vadd.f32 %v8874_v47, %v8873_v50  ;;  %v15644_v4 = vpop.f32.mrb[109].mxu0  ;;  %v8876_v44 = vsel %vm5044_vm2, %v8630_v43, 0.0  ;;  %v12109_v50 = vld [vmem:[%s21709_s9 + $0x160] sm:$0xff]  ;;  %v17112_v46 = vpack.c.bf16 %v12096_v17, %v12095_v14  ;;  %v12128_v47 = vld [vmem:[%s21709_s9 + $0x1f8] sm:$0xff]  ;;  %v12079_v43 = vld [vmem:[%s21709_s9 + $0x70] sm:$0xff]  ;;  %17141 = vmatprep.subr.bf16.mxu1 %v17140_v38 }
 0x785   :  { %v17142_v36 = vpack.c.bf16 %v12110_v41, %v12109_v50  ;;  %v12080_v59 = vld [vmem:[%s21709_s9 + $0x78] sm:$0xff]  ;;  %v12111_v4 = vld [vmem:[%s21709_s9 + $0x170] sm:$0xff]  ;;  %17111 = vmatpush3.bf16.msra.mxu0 %v17110_v11 }
 0x786   :  { %v8877_v54 = vadd.f32 %v8876_v44, %v8875_v6  ;;  %v8703_v2 = vpop.f32.mrb[108].mxu1  ;;  %v17144_v6 = vpack.c.bf16 %v12128_v47, %v12127_v9  ;;  %v17114_v57 = vpack.c.bf16 %v12080_v59, %v12079_v43  ;;  %17113 = vmatprep.subr.bf16.mxu0 %v17112_v46 }
 0x787   :  { %v8878_v30 = vsel %vm5044_vm2, %v8703_v2, 0.0  ;;  %v8776_v22 = vpop.f32.mrb[110].mxu0  ;;  %v15649_v7 = vpop.f32.mrb[109].mxu1  ;;  %17143 = vmatpush3.bf16.msra.mxu1 %v17142_v36  ;;  %v17146_v2 = vpack.c.bf16 %v12112_v33, %v12111_v4 }
 0x788   :  { %v8879_v1 = vadd.f32 %v8878_v30, %v8877_v54  ;;  %v15654_v51 = vpop.f32.mrb[111].mxu0  ;;  %v8880_v40 = vsel %vm5044_vm2, %v8776_v22, 0.0  ;;  %17145 = vmatprep.subr.bf16.mxu1 %v17144_v6 }
 0x789   :  { %17115 = vmatpush3.bf16.msra.mxu0 %v17114_v57 }
 0x78a   :  { %v8881_v27 = vadd.f32 %v8880_v40, %v8879_v1  ;;  %v8849_v20 = vpop.f32.mrb[110].mxu1 }
 0x78b   :  { %v8882_v39 = vsel %vm5044_vm2, %v8849_v20, 0.0  ;;  %v9131_v61 = vpop.f32.mrb[112].mxu0  ;;  %v15659_v16 = vpop.f32.mrb[111].mxu1  ;;  %17147 = vmatpush3.bf16.msra.mxu1 %v17146_v2 }
 0x78c   :  { %v15664_v56 = vpop.f32.mrb[113].mxu0  ;;  %v8883_v15 = vadd.f32 %v8882_v39, %v8881_v27  ;;  %v10230_v63 = vsel %vm5044_vm2, %v9131_v61, 0.0 }
 0x78e   :  { %v9204_v28 = vpop.f32.mrb[112].mxu1  ;;  %8884 = vadd.xlane.f32.xlu0 %v8883_v15 }
 0x78f   :  { %v10231_v62 = vsel %vm5044_vm2, %v9204_v28, 0.0  ;;  %v9277_v44 = vpop.f32.mrb[114].mxu0  ;;  %v15669_v26 = vpop.f32.mrb[113].mxu1 }
 0x790   :  { %v10232_v18 = vadd.f32 %v10231_v62, %v10230_v63  ;;  %v15674_v19 = vpop.f32.mrb[115].mxu0  ;;  %v10233_v54 = vsel %vm5044_vm2, %v9277_v44, 0.0 }
 0x792   :  { %v10234_v25 = vadd.f32 %v10233_v54, %v10232_v18  ;;  %v9350_v60 = vpop.f32.mrb[114].mxu1 }
 0x793   :  { %v10235_v23 = vsel %vm5044_vm2, %v9350_v60, 0.0  ;;  %v9423_v32 = vpop.f32.mrb[116].mxu0  ;;  %v15679_v10 = vpop.f32.mrb[115].mxu1 }
 0x794   :  { %v10236_v30 = vadd.f32 %v10235_v23, %v10234_v25  ;;  %v15684_v22 = vpop.f32.mrb[117].mxu0  ;;  %v10237_v7 = vsel %vm5044_vm2, %v9423_v32, 0.0 }
 0x796   :  { %v10238_v0 = vadd.f32 %v10237_v7, %v10236_v30  ;;  %v9496_v8 = vpop.f32.mrb[116].mxu1 }
 0x797   :  { %v10239_v42 = vsel %vm5044_vm2, %v9496_v8, 0.0  ;;  %v9569_v34 = vpop.f32.mrb[118].mxu0  ;;  %v15689_v1 = vpop.f32.mrb[117].mxu1 }
 0x798   :  { %v10240_v51 = vadd.f32 %v10239_v42, %v10238_v0  ;;  %v15694_v24 = vpop.f32.mrb[119].mxu0  ;;  %v10241_v31 = vsel %vm5044_vm2, %v9569_v34, 0.0 }
 0x79a   :  { %v10242_v35 = vadd.f32 %v10241_v31, %v10240_v51  ;;  %v9642_v12 = vpop.f32.mrb[118].mxu1 }
 0x79b   :  { %v10243_v3 = vsel %vm5044_vm2, %v9642_v12, 0.0  ;;  %v9715_v40 = vpop.f32.mrb[120].mxu0  ;;  %v15699_v21 = vpop.f32.mrb[119].mxu1 }
 0x79c   :  { %v10244_v29 = vadd.f32 %v10243_v3, %v10242_v35  ;;  %v15704_v55 = vpop.f32.mrb[121].mxu0  ;;  %v10245_v37 = vsel %vm5044_vm2, %v9715_v40, 0.0 }
 0x79e   :  { %v10246_v27 = vadd.f32 %v10245_v37, %v10244_v29  ;;  %v9788_v20 = vpop.f32.mrb[120].mxu1 }
 0x79f   :  { %v10247_v45 = vsel %vm5044_vm2, %v9788_v20, 0.0  ;;  %v9861_v53 = vpop.f32.mrb[122].mxu0  ;;  %v15709_v5 = vpop.f32.mrb[121].mxu1 }
 0x7a0   :  { %v10248_v48 = vadd.f32 %v10247_v45, %v10246_v27  ;;  %v15714_v13 = vpop.f32.mrb[123].mxu0  ;;  %v10249_v39 = vsel %vm5044_vm2, %v9861_v53, 0.0 }
 0x7a2   :  { %v10250_v61 = vadd.f32 %v10249_v39, %v10248_v48  ;;  %v9934_v16 = vpop.f32.mrb[122].mxu1 }
 0x7a3   :  { %v10251_v38 = vsel %vm5044_vm2, %v9934_v16, 0.0  ;;  %v10007_v58 = vpop.f32.mrb[124].mxu0  ;;  %v15719_v50 = vpop.f32.mrb[123].mxu1 }
 0x7a4   :  { %v10252_v41 = vadd.f32 %v10251_v38, %v10250_v61  ;;  %v15724_v56 = vpop.f32.mrb[125].mxu0  ;;  %v10253_v15 = vsel %vm5044_vm2, %v10007_v58, 0.0 }
 0x7a6   :  { %v10254_v11 = vadd.f32 %v10253_v15, %v10252_v41  ;;  %v10080_v14 = vpop.f32.mrb[124].mxu1 }
 0x7a7   :  { %v10255_v17 = vsel %vm5044_vm2, %v10080_v14, 0.0  ;;  %v10153_v9 = vpop.f32.mrb[126].mxu0  ;;  %v15729_v36 = vpop.f32.mrb[125].mxu1 }
 0x7a8   :  { %v10256_v46 = vadd.f32 %v10255_v17, %v10254_v11  ;;  %v15734_v47 = vpop.f32.mrb[127].mxu0  ;;  %v10257_v43 = vsel %vm5044_vm2, %v10153_v9, 0.0 }
 0x7aa   :  { %v10258_v59 = vadd.f32 %v10257_v43, %v10256_v46  ;;  %v10226_v28 = vpop.f32.mrb[126].mxu1 }
 0x7ab   :  { %v10259_v6 = vsel %vm5044_vm2, %v10226_v28, 0.0  ;;  %v10509_v4 = vpop.f32.mrb[128].mxu0  ;;  %v15739_v33 = vpop.f32.mrb[127].mxu1 }
 0x7ac   :  { %v15744_v63 = vpop.f32.mrb[129].mxu0  ;;  %v10260_v62 = vadd.f32 %v10259_v6, %v10258_v59  ;;  %v11608_v26 = vsel %vm5044_vm2, %v10509_v4, 0.0 }
 0x7ae   :  { %v10582_v44 = vpop.f32.mrb[128].mxu1  ;;  %10261 = vadd.xlane.f32.xlu0 %v10260_v62  ;;  %v11819_v62 = vlaneseq }
 0x7af   :  { %v11609_v18 = vsel %vm5044_vm2, %v10582_v44, 0.0  ;;  %v10655_v19 = vpop.f32.mrb[130].mxu0  ;;  %v15749_v57 = vpop.f32.mrb[129].mxu1 }
 0x7b0   :  { %v11610_v54 = vadd.f32 %v11609_v18, %v11608_v26  ;;  %v15754_v2 = vpop.f32.mrb[131].mxu0  ;;  %v11611_v25 = vsel %vm5044_vm2, %v10655_v19, 0.0  ;;  %v11820_v44 = vshrl.u32 %v11819_v62, 7  ;;  %v11817_v19 = vld [vmem:[%s21708_s8] sm:$0xf] }
 0x7b2   :  { %v11612_v60 = vadd.f32 %v11611_v25, %v11610_v54  ;;  %v11821_v26 = vsub.s32 0, %v11820_v44  ;;  %v11829_v18 = vsub.s32 2, %v11820_v44  ;;  %v11825_v57 = vsub.s32 1, %v11820_v44 }
 0x7b3   :  { %v10728_v23 = vpop.f32.mrb[130].mxu1  ;;  %v11833_v54 = vsub.s32 3, %v11820_v44 }
 0x7b4   :  { %v11613_v32 = vsel %vm5044_vm2, %v10728_v23, 0.0  ;;  %v10801_v10 = vpop.f32.mrb[132].mxu0  ;;  %v15759_v30 = vpop.f32.mrb[131].mxu1  ;;  %v11822_v2 = vrot.slane %v11817_v19, %v11821_v26  ;;  %v11830_v25 = vrot.slane %v11817_v19, %v11829_v18 }
 0x7b5   :  { %v11614_v22 = vadd.f32 %v11613_v32, %v11612_v60  ;;  %v15764_v7 = vpop.f32.mrb[133].mxu0  ;;  %v11615_v0 = vsel %vm5044_vm2, %v10801_v10, 0.0  ;;  %v11826_v60 = vrot.slane %v11817_v19, %v11825_v57  ;;  %v11834_v23 = vrot.slane %v11817_v19, %v11833_v54  ;;  %v21653_v26 = vpop.xlane.xlu1 %10317 }
 0x7b7   :  { %v11616_v8 = vadd.f32 %v11615_v0, %v11614_v22  ;;  %v10874_v42 = vpop.f32.mrb[132].mxu1 }
 0x7b8   :  { %v11617_v34 = vsel %vm5044_vm2, %v10874_v42, 0.0  ;;  %v10947_v1 = vpop.f32.mrb[134].mxu0  ;;  %v15769_v51 = vpop.f32.mrb[133].mxu1 }
 0x7b9   :  { %v11618_v24 = vadd.f32 %v11617_v34, %v11616_v8  ;;  %v15774_v31 = vpop.f32.mrb[135].mxu0  ;;  %v11619_v35 = vsel %vm5044_vm2, %v10947_v1, 0.0 }
 0x7bb   :  { %v11620_v12 = vadd.f32 %v11619_v35, %v11618_v24  ;;  %v11020_v3 = vpop.f32.mrb[134].mxu1 }
 0x7bc   :  { %v11621_v40 = vsel %vm5044_vm2, %v11020_v3, 0.0  ;;  %v11093_v21 = vpop.f32.mrb[136].mxu0  ;;  %v15779_v29 = vpop.f32.mrb[135].mxu1 }
 0x7bd   :  { %v11622_v55 = vadd.f32 %v11621_v40, %v11620_v12  ;;  %v15784_v37 = vpop.f32.mrb[137].mxu0  ;;  %v11623_v27 = vsel %vm5044_vm2, %v11093_v21, 0.0 }
 0x7bf   :  { %v11624_v20 = vadd.f32 %v11623_v27, %v11622_v55  ;;  %v11166_v45 = vpop.f32.mrb[136].mxu1 }
 0x7c0   :  { %v11625_v53 = vsel %vm5044_vm2, %v11166_v45, 0.0  ;;  %v11239_v5 = vpop.f32.mrb[138].mxu0  ;;  %v15789_v48 = vpop.f32.mrb[137].mxu1 }
 0x7c1   :  { %v11626_v13 = vadd.f32 %v11625_v53, %v11624_v20  ;;  %v15794_v39 = vpop.f32.mrb[139].mxu0  ;;  %v11627_v61 = vsel %vm5044_vm2, %v11239_v5, 0.0 }
 0x7c3   :  { %v11628_v16 = vadd.f32 %v11627_v61, %v11626_v13  ;;  %v11312_v38 = vpop.f32.mrb[138].mxu1 }
 0x7c4   :  { %v11629_v58 = vsel %vm5044_vm2, %v11312_v38, 0.0  ;;  %v11385_v50 = vpop.f32.mrb[140].mxu0  ;;  %v15799_v41 = vpop.f32.mrb[139].mxu1 }
 0x7c5   :  { %v11630_v56 = vadd.f32 %v11629_v58, %v11628_v16  ;;  %v15804_v15 = vpop.f32.mrb[141].mxu0  ;;  %v11631_v11 = vsel %vm5044_vm2, %v11385_v50, 0.0 }
 0x7c7   :  { %v11632_v14 = vadd.f32 %v11631_v11, %v11630_v56  ;;  %v11458_v17 = vpop.f32.mrb[140].mxu1 }
 0x7c8   :  { %v11633_v9 = vsel %vm5044_vm2, %v11458_v17, 0.0  ;;  %v11531_v36 = vpop.f32.mrb[142].mxu0  ;;  %v15809_v46 = vpop.f32.mrb[141].mxu1 }
 0x7c9   :  { %v11634_v47 = vadd.f32 %v11633_v9, %v11632_v14  ;;  %v15814_v43 = vpop.f32.mrb[143].mxu0  ;;  %v11635_v59 = vsel %vm5044_vm2, %v11531_v36, 0.0 }
 0x7cb   :  { %v11636_v28 = vadd.f32 %v11635_v59, %v11634_v47 }
 0x7cd   :  { %v11604_v6 = vpop.f32.mrb[142].mxu1 }
 0x7ce   :  { %v11637_v4 = vsel %vm5044_vm2, %v11604_v6, 0.0  ;;  %v15819_v33 = vpop.f32.mrb[143].mxu1 }
 0x7cf   :  { %v11638_v63 = vadd.f32 %v11637_v4, %v11636_v28 }
 0x7d1   :  { %11639 = vadd.xlane.f32.xlu0 %v11638_v63 }
 0x7f8   :  { %v11905_v32 = vpop.f32.mrb[144].mxu0  ;;  %v11982_v10 = vpop.f32.mrb[144].mxu1 }
 0x7f9   :  { %v21612_v30 = vadd.f32 %v11905_v32, %v11822_v2  ;;  %v21614_v22 = vadd.f32 %v11982_v10, %v11830_v25  ;;  %v11907_v7 = vpop.f32.mrb[145].mxu0  ;;  %v11984_v0 = vpop.f32.mrb[145].mxu1 }
 0x7fa   :  { %v21616_v8 = vadd.f32 %v11907_v7, %v11826_v60  ;;  %v21618_v42 = vadd.f32 %v11984_v0, %v11834_v23 }
 0x7fb   :  { %v12001_v34 = vmul.f32 0.044715, %v21612_v30  ;;  %v12003_v1 = vmul.f32 0.044715, %v21614_v22 }
 0x7fc   :  { %v12002_v51 = vmul.f32 0.044715, %v21616_v8  ;;  %v12004_v24 = vmul.f32 0.044715, %v21618_v42  ;;  %v11911_v31 = vpop.f32.mrb[146].mxu0  ;;  %v11988_v35 = vpop.f32.mrb[146].mxu1 }
 0x7fd   :  { %v12009_v12 = vmul.f32 %v12001_v34, %v21612_v30  ;;  %v12011_v3 = vmul.f32 %v12003_v1, %v21614_v22  ;;  %v21626_v40 = vadd.f32 %v11911_v31, %v11822_v2  ;;  %v21628_v21 = vadd.f32 %v11988_v35, %v11830_v25  ;;  %v11913_v29 = vpop.f32.mrb[147].mxu0  ;;  %v11990_v55 = vpop.f32.mrb[147].mxu1 }
 0x7fe   :  { %v12010_v37 = vmul.f32 %v12002_v51, %v21616_v8  ;;  %v12012_v27 = vmul.f32 %v12004_v24, %v21618_v42  ;;  %v11914_v20 = vadd.f32 %v11913_v29, %v11826_v60  ;;  %v21632_v45 = vadd.f32 %v11990_v55, %v11834_v23  ;;  %v8941_v2 = vpop.xlane.xlu1 %8940 }
 0x7ff   :  { %v12017_v53 = vmul.f32 %v12009_v12, %v21612_v30  ;;  %v12019_v5 = vmul.f32 %v12011_v3, %v21614_v22  ;;  %v12005_v48 = vmul.f32 0.044715, %v21626_v40  ;;  %v12007_v13 = vmul.f32 0.044715, %v21628_v21 }
 0x800   :  { %v12006_v39 = vmul.f32 0.044715, %v11914_v20  ;;  %v12008_v61 = vmul.f32 0.044715, %v21632_v45  ;;  %v12018_v16 = vmul.f32 %v12010_v37, %v21616_v8  ;;  %v12020_v9 = vmul.f32 %v12012_v27, %v21618_v42 }
 0x801   :  { %v12025_v38 = vadd.f32 %v12017_v53, %v21612_v30  ;;  %v12027_v58 = vadd.f32 %v12019_v5, %v21614_v22  ;;  %v12013_v50 = vmul.f32 %v12005_v48, %v21626_v40  ;;  %v12015_v17 = vmul.f32 %v12007_v13, %v21628_v21 }
 0x802   :  { %v12014_v41 = vmul.f32 %v12006_v39, %v11914_v20  ;;  %v12016_v56 = vmul.f32 %v12008_v61, %v21632_v45  ;;  %v12026_v15 = vadd.f32 %v12018_v16, %v21616_v8  ;;  %v12028_v43 = vadd.f32 %v12020_v9, %v21618_v42 }
 0x803   :  { %v12033_v11 = vmul.f32 0.7978846, %v12025_v38  ;;  %v12035_v14 = vmul.f32 0.7978846, %v12027_v58  ;;  %v12021_v59 = vmul.f32 %v12013_v50, %v21626_v40  ;;  %v12023_v63 = vmul.f32 %v12015_v17, %v21628_v21 }
 0x804   :  { %v12034_v36 = vmul.f32 0.7978846, %v12026_v15  ;;  %v12022_v46 = vmul.f32 %v12014_v41, %v11914_v20  ;;  %v12024_v47 = vmul.f32 %v12016_v56, %v21632_v45  ;;  %v12036_v4 = vmul.f32 0.7978846, %v12028_v43 }
 0x805   :  { %17329 = vtanh.f32 %v12033_v11  ;;  %v12029_v33 = vadd.f32 %v12021_v59, %v21626_v40  ;;  %v12031_v19 = vadd.f32 %v12023_v63, %v21628_v21  ;;  %v8942_v32 = vrot.slane %v8941_v2, 4 }
 0x806   :  { %17331 = vtanh.f32 %v12035_v14  ;;  %v12030_v28 = vadd.f32 %v12022_v46, %v11914_v20  ;;  %v12032_v6 = vadd.f32 %v12024_v47, %v21632_v45  ;;  %v11994_v10 = vmul.f32 0.5, %v21616_v8 }
 0x807   :  { %17333 = vtanh.f32 %v12034_v36  ;;  %v12037_v18 = vmul.f32 0.7978846, %v12029_v33  ;;  %v12039_v57 = vmul.f32 0.7978846, %v12031_v19  ;;  %v11993_v34 = vmul.f32 0.5, %v21612_v30  ;;  %v11696_v19 = vpop.xlane.xlu1 %11695 }
 0x808   :  { %v12038_v62 = vmul.f32 0.7978846, %v12030_v28  ;;  %v12040_v44 = vmul.f32 0.7978846, %v12032_v6  ;;  %17335 = vtanh.f32 %v12036_v4  ;;  %v11996_v31 = vmul.f32 0.5, %v21618_v42 }
 0x809   :  { %v11995_v3 = vmul.f32 0.5, %v21614_v22  ;;  %v11998_v55 = vmul.f32 0.5, %v11914_v20  ;;  %v8943_v53 = vadd.f32 %v8942_v32, %v8941_v2  ;;  %v12000_v5 = vmul.f32 0.5, %v21632_v45 }
 0x80a   :  { %17337 = vtanh.f32 %v12038_v62  ;;  %v11997_v42 = vmul.f32 0.5, %v21626_v40  ;;  %v11999_v38 = vmul.f32 0.5, %v21628_v21  ;;  %v10319_v46 = vrot.slane %v21653_v26, 4 }
 0x80b   :  { %17339 = vtanh.f32 %v12040_v44  ;;  %v8944_v58 = vrot.slane %v8943_v53, 2 }
 0x80c   :  { %17341 = vtanh.f32 %v12037_v18  ;;  %v10320_v21 = vadd.f32 %v10319_v46, %v21653_v26 }
 0x80d   :  { %17343 = vtanh.f32 %v12039_v57  ;;  %v8945_v15 = vadd.f32 %v8944_v58, %v8943_v53  ;;  %v11697_v57 = vrot.slane %v11696_v19, 4 }
 0x80e   :  { %v10321_v47 = vrot.slane %v10320_v21, 2 }
 0x80f   :  { %v17330_v54 = vpop.eup %17329  ;;  %v8946_v14 = vrot.slane %v8945_v15, 1 }
 0x810   :  { %v17332_v25 = vpop.eup %17331  ;;  %v12049_v23 = vadd.f32 1.0, %v17330_v54  ;;  %v10322_v6 = vadd.f32 %v10321_v47, %v10320_v21  ;;  %v11698_v54 = vadd.f32 %v11697_v57, %v11696_v19 }
 0x811   :  { %v17334_v60 = vpop.eup %17333  ;;  %v12051_v1 = vadd.f32 1.0, %v17332_v25  ;;  %v8947_v36 = vadd.f32 %v8946_v14, %v8945_v15 }
 0x812   :  { %v12050_v7 = vadd.f32 1.0, %v17334_v60  ;;  %v17336_v0 = vpop.eup %17335  ;;  %v12057_v29 = vmul.f32 %v12049_v23, %v11993_v34  ;;  %v10323_v63 = vrot.slane %v10322_v6, 1  ;;  %v11699_v2 = vrot.slane %v11698_v54, 2 }
 0x813   :  { %v12052_v35 = vadd.f32 1.0, %v17336_v0  ;;  %v12059_v13 = vmul.f32 %v12051_v1, %v11995_v3 }
 0x814   :  { %v17338_v51 = vpop.eup %17337  ;;  %v12058_v24 = vmul.f32 %v12050_v7, %v11994_v10  ;;  %v10324_v18 = vadd.f32 %v10323_v63, %v10322_v6  ;;  %v11700_v23 = vadd.f32 %v11699_v2, %v11698_v54 }
 0x815   :  { %v17340_v12 = vpop.eup %17339  ;;  %v12054_v37 = vadd.f32 1.0, %v17338_v51  ;;  %v12060_v8 = vmul.f32 %v12052_v35, %v11996_v31 }
 0x816   :  { %v17342_v27 = vpop.eup %17341  ;;  %12200 = vmatprep.mubr.f32.mxu0 %v12058_v24  ;;  %v12056_v48 = vadd.f32 1.0, %v17340_v12  ;;  %v11701_v7 = vrot.slane %v11700_v23, 1 }
 0x817   :  { %v17344_v30 = vpop.eup %17343  ;;  %12201 = vmatmul.mubr.f32.vlgmr.msra.gmra.mrb[148].mxu0 %v12057_v29  ;;  %v12062_v39 = vmul.f32 %v12054_v37, %v11998_v55  ;;  %v12053_v61 = vadd.f32 1.0, %v17342_v27  ;;  %12275 = vmatprep.mubr.f32.mxu1 %v12060_v8 }
 0x818   :  { %v12064_v16 = vmul.f32 %v12056_v48, %v12000_v5  ;;  %v12055_v22 = vadd.f32 1.0, %v17344_v30  ;;  %12276 = vmatmul.mubr.f32.vlgmr.msra.gmra.mrb[148].mxu1 %v12059_v13  ;;  %v11702_v1 = vadd.f32 %v11701_v7, %v11700_v23 }
 0x819   :  { %12205 = vmatprep.mubr.f32.mxu0 %v12062_v39  ;;  %v12061_v20 = vmul.f32 %v12053_v61, %v11997_v42 }
 0x81a   :  { %12280 = vmatprep.mubr.f32.mxu1 %v12064_v16  ;;  %v12063_v45 = vmul.f32 %v12055_v22, %v11999_v38 }
 0x81b   :  { %12206 = vmatmul.mubr.f32.gmra.mrb[150].mxu0 %v12061_v20  ;;  %v8885_v50 = vpop.xlane.xlu0 %8884 }
 0x81c   :  { %v8886_v41 = vrot.slane %v8885_v50, 4  ;;  %12281 = vmatmul.mubr.f32.gmra.mrb[150].mxu1 %v12063_v45 }
 0x81e   :  { %v8887_v56 = vadd.f32 %v8886_v41, %v8885_v50 }
 0x820   :  { %v8888_v11 = vrot.slane %v8887_v56, 2 }
 0x822   :  { %v8889_v40 = vadd.f32 %v8888_v11, %v8887_v56 }
 0x824   :  { %v8890_v17 = vrot.slane %v8889_v40, 1 }
 0x826   :  { %v8891_v9 = vadd.f32 %v8890_v17, %v8889_v40 }
 0x828   :  { %17148 = vpush %v8891_v9 }
 0x829   :  { %17150 = vpush %v8947_v36 }
 0x83b   :  { %v10262_v43 = vpop.xlane.xlu0 %10261 }
 0x83c   :  { %v10263_v59 = vrot.slane %v10262_v43, 4 }
 0x83e   :  { %v10264_v28 = vadd.f32 %v10263_v59, %v10262_v43 }
 0x840   :  { %v10265_v4 = vrot.slane %v10264_v28, 2 }
 0x842   :  { %v10266_v33 = vadd.f32 %v10265_v4, %v10264_v28 }
 0x844   :  { %v10267_v62 = vrot.slane %v10266_v33, 1 }
 0x846   :  { %v10268_v44 = vadd.f32 %v10267_v62, %v10266_v33 }
 0x848   :  { %17152 = vpush %v10268_v44 }
 0x849   :  { %17154 = vpush %v10324_v18 }
 0x859   :  { %s17149_s8 = spop %17148 }
 0x85a   :  { %s17151_s18 = spop %17150 }
 0x85b   :  { %s8949_s21 = ssub.f32 %s17149_s8, %s17151_s18 }
 0x85e   :  { %v11640_v25 = vpop.xlane.xlu0 %11639 }
 0x85f   :  { %v11641_v60 = vrot.slane %v11640_v25, 4 }
 0x861   :  { %v11642_v26 = vadd.f32 %v11641_v60, %v11640_v25 }
 0x863   :  { %v11643_v32 = vrot.slane %v11642_v26, 2 }
 0x865   :  { %v11644_v10 = vadd.f32 %v11643_v32, %v11642_v26 }
 0x867   :  { %v11645_v0 = vrot.slane %v11644_v10, 1 }
 0x869   :  { %v11646_v34 = vadd.f32 %v11645_v0, %v11644_v10 }
 0x86b   :  { %17156 = vpush %v11646_v34 }
 0x86c   :  { %17158 = vpush %v11702_v1 }
 0x879   :  { %s17153_s2 = spop %17152 }
 0x87a   :  { %s17155_s19 = spop %17154 }
 0x87b   :  { %s10326_s20 = ssub.f32 %s17153_s2, %s17155_s19 }
 0x87d   :  { %s10327_s22 = sadd.f32 %s10326_s20, %s8949_s21 }
 0x89c   :  { %s17157_s4 = spop %17156 }
 0x89d   :  { %s17159_s23 = spop %17158 }
 0x89e   :  { %s11704_s24 = ssub.f32 %s17157_s4, %s17159_s23 }
 0x8a0   :  { %s11705_s25 = sadd.f32 %s11704_s24, %s10327_s22 }
 0x8a2   :  { %s11706_s3 = smul.f32 0.00032552084, %s11705_s25 }
 0x8a4   :  { %v11707_v51 = vstv %s11706_s3 }
 0x8a5   :  { %11709 = vst.msk [vmem:[#allocation4] sm:$0x1] %vm11708_vm3, %v11707_v51 }
 0x8a6   :  { %17364 = shalt.err (!%p17361_p4)
}
 0x8a7   :  { %s17365_s7 = scalar_lea.hbm %s21714_s14, 16 }
 0x8a8   :  { %p17366_p5 = scmp.ne.s32.totalorder %s21714_s14, %s17365_s7  ;;  %p17369_p6 = scmp.lt.u32.totalorder %s17365_s7, %s21714_s14 }
 0x8aa   :  { %p17371_p7 = pnand %p17369_p6, %p17366_p5 }
 0x8ac   :  { %17374 = shalt.err (!%p17371_p7)
}
 0x8ad   :  { %12353 = dma.vmem_to_hbm [thread:$0]  %s12351_s26, 16, %s21714_s14, [#allocation5]   ;;  %v12525_v31 = vld [vmem:[%s21710_s10] ss:$0 sm:$0xff] }
 0x8ae   :  { %v12526_v28 = vld [vmem:[%s21711_s11] ss:$0 sm:$0xff]  ;;  %s17405_s19 = smov [#allocation2]  }
 0x8af   :  { %v12527_v33 = vld [vmem:[%s21712_s12] ss:$0 sm:$0xff]  ;;  %s12337_s20 = sshll.u32 %s17405_s19, 4  ;;  %s12338_s20 = int_to_ptr.vmem [resolvable:$true] %s12337_s20 }
 0x8b0   :  { %s17375_s21 = scalar_lea.vmem %s12338_s20, 256  ;;  %p17380_p9 = scmp.lt.s32.totalorder %s12338_s20, %s12338_s20 }
 0x8b1   :  { %p17376_p8 = scmp.ne.s32.totalorder %s12338_s20, %s17375_s21  ;;  %p17381_p10 = scmp.lt.s32.totalorder %s17375_s21, %s17375_s21 }
 0x8b3   :  { %p17382_p11 = por %p17381_p10, %p17380_p9 }
 0x8b5   :  { %p17383_p12 = pnand %p17382_p11, %p17376_p8 }
 0x8ea   :  { %v13584_v24 = vpop.f32.mrb[148].mxu0 }
 0x8eb   :  { %v13585_v35 = vpop.f32.mrb[149].mxu0  ;;  %v13622_v12 = vpop.f32.mrb[148].mxu1 }
 0x8ec   :  { %v13586_v3 = vadd.f32 %v13585_v35, %v13584_v24  ;;  %v13623_v29 = vpop.f32.mrb[149].mxu1 }
 0x8ed   :  { %v13624_v37 = vadd.f32 %v13623_v29, %v13622_v12 }
 0x8ee   :  { %v12203_v55 = vadd.f32 %v13586_v3, %v12525_v31  ;;  %v13587_v27 = vpop.f32.mrb[150].mxu0 }
 0x8ef   :  { %v13588_v53 = vpop.f32.mrb[151].mxu0  ;;  %v13625_v5 = vpop.f32.mrb[150].mxu1 }
 0x8f0   :  { %v12278_v8 = vadd.f32 %v13624_v37, %v12203_v55  ;;  %v13589_v48 = vadd.f32 %v13588_v53, %v13587_v27  ;;  %v13626_v30 = vpop.f32.mrb[151].mxu1 }
 0x8f1   :  { %v13627_v39 = vadd.f32 %v13626_v30, %v13625_v5 }
 0x8f2   :  { %v12208_v13 = vadd.f32 %v13589_v48, %v12525_v31  ;;  %v12286_v61 = vadd.f32 %v12278_v8, %v21359_v49 }
 0x8f4   :  { %v12283_v42 = vadd.f32 %v13627_v39, %v12208_v13 }
 0x8f6   :  { %v12287_v16 = vadd.f32 %v12283_v42, %v21365_v52 }
 0x8f8   :  { %v12288_v22 = vadd.f32 %v12287_v16, %v12286_v61 }
 0x8fa   :  { %v12289_v20 = vrot.slane %v12288_v22, 4 }
 0x8fc   :  { %v12290_v38 = vadd.f32 %v12289_v20, %v12288_v22 }
 0x8fe   :  { %v12291_v58 = vrot.slane %v12290_v38, 2 }
 0x900   :  { %v12292_v45 = vadd.f32 %v12291_v58, %v12290_v38 }
 0x902   :  { %v12293_v50 = vrot.slane %v12292_v45, 1 }
 0x904   :  { %v12294_v41 = vadd.f32 %v12293_v50, %v12292_v45 }
 0x906   :  { %v12295_v56 = vmul.f32 0.0625, %v12294_v41 }
 0x908   :  { %v12296_v15 = vsub.f32 %v12286_v61, %v12295_v56  ;;  %v12297_v11 = vsub.f32 %v12287_v16, %v12295_v56 }
 0x90a   :  { %v12298_v40 = vmul.f32 %v12296_v15, %v12296_v15  ;;  %v12299_v14 = vmul.f32 %v12297_v11, %v12297_v11 }
 0x90c   :  { %v12300_v17 = vadd.f32 %v12299_v14, %v12298_v40 }
 0x90e   :  { %v12301_v9 = vrot.slane %v12300_v17, 4 }
 0x910   :  { %v12302_v36 = vadd.f32 %v12301_v9, %v12300_v17 }
 0x912   :  { %v12303_v46 = vrot.slane %v12302_v36, 2 }
 0x914   :  { %v12304_v21 = vadd.f32 %v12303_v46, %v12302_v36 }
 0x916   :  { %v12305_v49 = vrot.slane %v12304_v21, 1 }
 0x918   :  { %v12306_v47 = vadd.f32 %v12305_v49, %v12304_v21 }
 0x91a   :  { %v12307_v52 = vmul.f32 0.0625, %v12306_v47 }
 0x91c   :  { %v12308_v43 = vadd.f32 1e-05, %v12307_v52 }
 0x91e   :  { %17345 = vrsqrt.f32 %v12308_v43 }
 0x928   :  { %v17346_v59 = vpop.eup %17345 }
 0x929   :  { %v12311_v6 = vmul.f32 %v17346_v59, %v12297_v11  ;;  %v12310_v4 = vmul.f32 %v17346_v59, %v12296_v15 }
 0x92b   :  { %v12319_v63 = vmul.f32 %v12526_v28, %v12310_v4  ;;  %v12320_v62 = vmul.f32 %v12526_v28, %v12311_v6 }
 0x92d   :  { %v12328_v44 = vadd.f32 %v12527_v33, %v12319_v63  ;;  %v12329_v18 = vadd.f32 %v12527_v33, %v12320_v62 }
 0x92f   :  { %12330 = vst [vmem:[#allocation2] sm:$0xff] %v12328_v44  ;;  %12331 = vst [vmem:[#allocation2 + $0x8] sm:$0xff] %v12329_v18 }
 0x930   :  { %17386 = shalt.err (!%p17383_p12)
}
 0x931   :  { %s17387_s12 = scalar_lea.hbm %s21713_s13, 256 }
 0x932   :  { %p17388_p13 = scmp.ne.s32.totalorder %s21713_s13, %s17387_s12  ;;  %p17391_p0 = scmp.lt.u32.totalorder %s17387_s12, %s21713_s13 }
 0x934   :  { %p17393_p1 = pnand %p17391_p0, %p17388_p13 }
 0x936   :  { %17396 = shalt.err (!%p17393_p1)
}
 0x937   :  { %s17406_s3 = smov 128   ;;  %s17407_s0 = smov 8  }
 0x938   :  { %12343 = dma.vmem_to_hbm [thread:$0]  %s12338_s20, 256, %s21713_s13, [#allocation3], %s17406_s3, %s17406_s3, %s17407_s0  }
 0x939   :  { %17397 = dma.done.wait [#allocation3], 256  }
 0x93a   :  { %17398 = vsyncadd [#allocation3], 4294967040 }
 0x93b   :  { %17399 = dma.done.wait [#allocation5], 16  }
 0x93c   :  { %17400 = vsyncadd [#allocation5], 4294967280 }
 0x93d   :  { %12360 = vsyncpa [#allocation3], 1 }
 0x93e   :  { %12361 = vsyncpa [#allocation5], 1 }

</bundles_post_ra>
